<compile_context>
chip_gen: v7x
topology: tpu7x:2x2x1
jax: 0.10.0
libtpu: 0.0.40
codegen_flags: <defaults>
</compile_context>

<pallas_src>
import functools

import numpy as np
import jax
import jax.numpy as jnp
from jax import lax
from jax.experimental import pallas as pl
from jax.experimental.pallas import tpu as pltpu

MESHX = 150     # fixed by the conv stack: 150 -> 49 -> 15 -> 6 -> 1
HIDDEN = 10     # LSTM hidden size
ACT_DIM = 2     # LSTM input size
HP = 128        # lane block used to pad the LSTM hidden state / each gate


# ---------------------------------------------------------------------------
# Parameter setup (deterministic, PyTorch-default-style uniform init)
# ---------------------------------------------------------------------------
def _conv1d_to_dense(weight, bias, stride, l_in):
    """Dense matrix M s.t. flatten(conv1d(x)) == flatten(x) @ M + b_rep."""
    c_out, c_in, k = weight.shape
    l_out = (l_in - k) // stride + 1
    m = np.zeros((c_in * l_in, c_out * l_out), dtype=np.float32)
    w = np.asarray(weight, dtype=np.float32)
    for co in range(c_out):
        for ci in range(c_in):
            for kk in range(k):
                for t in range(l_out):
                    m[ci * l_in + t * stride + kk, co * l_out + t] = w[co, ci, kk]
    b_rep = np.repeat(np.asarray(bias, dtype=np.float32), l_out)
    return m, b_rep[None, :], l_out


def init_params(key):
    ks = jax.random.split(key, 32)

    def u(k, shape, fan_in):
        bound = 1.0 / np.sqrt(fan_in)
        return jax.random.uniform(k, shape, jnp.float32, -bound, bound)

    i = 0
    raw = {}
    # encoder: Conv1d(1,8,6,s=3), (8,16,7,s=3), (16,32,5,s=2), (32,48,6,s=1)
    conv_cfg = [(1, 8, 6, 3), (8, 16, 7, 3), (16, 32, 5, 2), (32, 48, 6, 1)]
    convs = []
    for (cin, cout, k, s) in conv_cfg:
        w = u(ks[i], (cout, cin, k), cin * k); i += 1
        b = u(ks[i], (cout,), cin * k); i += 1
        convs.append((w, b, s))
    raw["convs"] = convs

    def linear(cin, cout):
        nonlocal i
        w = u(ks[i], (cout, cin), cin); i += 1
        b = u(ks[i], (cout,), cin); i += 1
        return w, b

    raw["l1"] = linear(48, 24)
    raw["l2"] = linear(24, HIDDEN)
    # LSTM(2, 10, 1, batch_first=True); gate order i, f, g, o
    raw["lstm"] = (
        u(ks[i + 0], (4 * HIDDEN, ACT_DIM), HIDDEN),
        u(ks[i + 1], (4 * HIDDEN, HIDDEN), HIDDEN),
        u(ks[i + 2], (4 * HIDDEN,), HIDDEN),
        u(ks[i + 3], (4 * HIDDEN,), HIDDEN),
    )
    i += 4
    raw["d1"] = linear(HIDDEN, 36)
    raw["d2"] = linear(36, 72)
    raw["d3"] = linear(72, MESHX)
    return raw


def pack_kernel_params(raw):
    """Flatten parameters into the kernel's (in_features, out_features) layout.

    * conv stack lowered to dense matmuls; conv4 fused with l1 (no ReLU between)
    * LSTM / hidden-state-facing matrices padded so each gate lives in its own
      128-lane block; pad rows/lanes are exactly zero (load-bearing invariant)
    * the large matrices are stored bf16 (halves weight DMA; MXU is bf16-native)
    """
    flat = []   # list of (np_array, jnp_dtype)
    l_in = MESHX
    dense = []
    for (w, b, s) in raw["convs"]:
        m, brep, l_in = _conv1d_to_dense(np.asarray(w), np.asarray(b), s, l_in)
        dense.append((m, brep))
    # first three convs as-is (each followed by ReLU in the kernel)
    for m, brep in dense[:3]:
        flat += [(m, jnp.bfloat16), (brep, jnp.float32)]
    # fuse conv4 (no ReLU after it) with l1: relu((x@m4+b4)@W1^T + b1)
    #                                      == relu(x@(m4@W1^T) + (b4@W1^T + b1))
    m4, b4 = dense[3]
    wl1 = np.asarray(raw["l1"][0], np.float32)       # (24, 48)
    bl1 = np.asarray(raw["l1"][1], np.float32)       # (24,)
    w_f = m4 @ wl1.T                                 # (192, 24)
    b_f = b4 @ wl1.T + bl1[None, :]                  # (1, 24)
    flat += [(w_f, jnp.bfloat16), (b_f, jnp.float32)]
    # l2 -> LSTM init, padded to HP lanes (pad lanes stay exactly zero)
    wl2 = np.asarray(raw["l2"][0], np.float32)       # (10, 24)
    bl2 = np.asarray(raw["l2"][1], np.float32)       # (10,)
    wl2p = np.zeros((24, HP), np.float32); wl2p[:, :HIDDEN] = wl2.T
    bl2p = np.zeros((1, HP), np.float32); bl2p[0, :HIDDEN] = bl2
    flat += [(wl2p, jnp.float32), (bl2p, jnp.float32)]
    # LSTM: gate k occupies lanes [k*HP, k*HP+HIDDEN); gate order i, f, g, o
    wih, whh, bih, bhh = (np.asarray(a, np.float32) for a in raw["lstm"])
    wih_t, whh_t, btot = wih.T, whh.T, bih + bhh     # (2,40), (10,40), (40,)
    wihp = np.zeros((ACT_DIM, 4 * HP), np.float32)
    whhp = np.zeros((HP, 4 * HP), np.float32)
    bp = np.zeros((1, 4 * HP), np.float32)
    for k in range(4):
        wihp[:, k * HP:k * HP + HIDDEN] = wih_t[:, k * HIDDEN:(k + 1) * HIDDEN]
        whhp[:HIDDEN, k * HP:k * HP + HIDDEN] = whh_t[:, k * HIDDEN:(k + 1) * HIDDEN]
        bp[0, k * HP:k * HP + HIDDEN] = btot[k * HIDDEN:(k + 1) * HIDDEN]
    flat += [(wihp, jnp.float32), (whhp, jnp.bfloat16), (bp, jnp.float32)]
    # decoder; d1 consumes the 128-lane-padded hidden state (extra rows zero)
    wd1 = np.asarray(raw["d1"][0], np.float32)       # (36, 10)
    bd1 = np.asarray(raw["d1"][1], np.float32)
    wd1p = np.zeros((HP, 36), np.float32); wd1p[:HIDDEN, :] = wd1.T
    flat += [(wd1p, jnp.float32), (bd1[None, :], jnp.float32)]
    for name in ("d2", "d3"):
        w = np.asarray(raw[name][0], np.float32)
        b = np.asarray(raw[name][1], np.float32)
        flat += [(w.T, jnp.float32), (b[None, :], jnp.float32)]

    # Pad-lane invariant asserts (per perf review): everything the hidden
    # state's pad lanes touch must be exactly zero, so garbage never leaks
    # into the gates or the decoder.
    assert not wl2p[:, HIDDEN:].any()
    assert not bl2p[:, HIDDEN:].any()
    assert not whhp[HIDDEN:, :].any()
    for k in range(4):
        assert not wihp[:, k * HP + HIDDEN:(k + 1) * HP].any()
        assert not whhp[:, k * HP + HIDDEN:(k + 1) * HP].any()
        assert not bp[:, k * HP + HIDDEN:(k + 1) * HP].any()
    assert not wd1p[HIDDEN:, :].any()

    return [jnp.asarray(a, dt) for (a, dt) in flat]


# ---------------------------------------------------------------------------
# Pallas kernel: ref-row select + encoder + linear head + LSTM + decoder
# ---------------------------------------------------------------------------
def _forward_kernel(
    length_ref, state_ref, act_ref, ref_ref,
    m1_ref, b1_ref, m2_ref, b2_ref, m3_ref, b3_ref,
    m4l1_ref, b4l1_ref, wl2_ref, bl2_ref,
    wih_ref, whh_ref, blstm_ref,
    wd1_ref, bd1_ref, wd2_ref, bd2_ref, wd3_ref, bd3_ref,
    out_ref, result_ref,
    h_scr,
):
    f32 = jnp.float32
    B, S, meshx = result_ref.shape
    T = ref_ref.shape[0]

    def mm(x, w_ref, b_ref):
        w = w_ref[...]
        # bf16 weights -> cast activation to bf16 at the MXU input only;
        # accumulation stays f32 (preferred_element_type).
        return jnp.dot(x.astype(w.dtype), w, preferred_element_type=f32) + b_ref[...]

    def relu(v):
        return jnp.maximum(v, 0.0)

    # --- ref[len-1] / ref[len] selected in-kernel via one-hot matmuls
    # (removes two XLA gather launches around this latency-bound call).
    len_col = length_ref[...]                                     # (B, 1) int32
    t_iota = lax.broadcasted_iota(jnp.int32, (B, T), 1)           # (B, T)
    ref_tab = ref_ref[...]                                        # (T, meshx)
    ref_prev = jnp.dot((t_iota == (len_col - 1)).astype(f32), ref_tab,
                       preferred_element_type=f32)                # (B, meshx)
    ref_next = jnp.dot((t_iota == len_col).astype(f32), ref_tab,
                       preferred_element_type=f32)                # (B, meshx)

    # pdestate = state + ref[len - 1]
    x0 = state_ref[...] + ref_prev                                # (B, 150)
    # encoder (conv stack as dense matmuls, bf16 weights); conv4 fused with l1
    h = relu(mm(x0, m1_ref, b1_ref))                              # (B, 8*49)
    h = relu(mm(h, m2_ref, b2_ref))                               # (B, 16*15)
    h = relu(mm(h, m3_ref, b3_ref))                               # (B, 32*6)
    h = relu(mm(h, m4l1_ref, b4l1_ref))                           # (B, 24)  conv4+l1 fused
    h0 = mm(h, wl2_ref, bl2_ref)                                  # (B, 128); lanes>=10 exactly 0

    # act is repeated along the sequence -> input-gate contribution is constant
    gates_in = mm(act_ref[...], wih_ref, blstm_ref)               # (B, 4*128)
    whh = whh_ref[...]                                            # (128, 4*128) bf16

    hh = h0
    cc = h0
    # Fully unrolled recurrence (S is a static Python int). Each gate sits in
    # its own 128-lane block, so the slices below are whole-vreg cuts.
    # TODO(synk): v5e-targeted 32-lane compact gate packing (1 MXU tile/step
    # + pltpu.roll realign) left out to keep the recurrence lowering simple.
    for t in range(S):
        gates = gates_in + jnp.dot(hh.astype(whh.dtype), whh,
                                   preferred_element_type=f32)
        i_g = jax.nn.sigmoid(gates[:, 0 * HP:1 * HP])
        f_g = jax.nn.sigmoid(gates[:, 1 * HP:2 * HP])
        g_g = jnp.tanh(gates[:, 2 * HP:3 * HP])
        o_g = jax.nn.sigmoid(gates[:, 3 * HP:4 * HP])
        cc = f_g * cc + i_g * g_g
        hh = o_g * jnp.tanh(cc)
        h_scr[:, t, :] = hh                                       # tiny VMEM store only

    # Decoder hoisted out of the loop: one (B*S, 128) slab through 3 matmuls.
    h_all = h_scr[...].reshape(B * S, HP)                         # rows ordered (b, t)
    d = relu(mm(h_all, wd1_ref, bd1_ref))                         # (B*S, 36)
    d = relu(mm(d, wd2_ref, bd2_ref))                             # (B*S, 72)
    d = mm(d, wd3_ref, bd3_ref)                                   # (B*S, 150)
    d3 = d.reshape(B, S, meshx)                                   # layout-preserving

    result_ref[...] = d3                                          # single lane-dense store
    # return self.result[:, -1] - self.ref[len]
    out_ref[...] = d3[:, S - 1, :] - ref_next


@functools.partial(jax.jit, static_argnames=("seq_len",))
def fake_burgers_forward(state, act, length, ref, kparams, seq_len):
    B, meshx = state.shape
    length2d = length.reshape(B, 1).astype(jnp.int32)
    n_in = 4 + len(kparams)
    vmem = pl.BlockSpec(memory_space=pltpu.MemorySpace.VMEM)
    out_shapes = (
        jax.ShapeDtypeStruct((B, meshx), jnp.float32),
        jax.ShapeDtypeStruct((B, seq_len, meshx), jnp.float32),   # final layout, no transpose
    )
    out, result = pl.pallas_call(
        _forward_kernel,
        out_shape=out_shapes,
        in_specs=[vmem] * n_in,
        out_specs=(vmem, vmem),
        scratch_shapes=[pltpu.VMEM((B, seq_len, HP), jnp.float32)],
        # actual footprint well under 1 MiB of weights + small activations;
        # keep the limit far below every generation's physical VMEM.
        compiler_params=pltpu.CompilerParams(vmem_limit_bytes=8 * 1024 * 1024),
    )(length2d, state, act, ref, *kparams)
    return out, result


# ---------------------------------------------------------------------------
# Pure-JAX reference (lax.conv + explicit LSTM) for a correctness check
# ---------------------------------------------------------------------------
def reference_forward(state, act, length, ref, raw, seq_len):
    x = state + ref[length - 1]
    x = x[:, None, :]                                            # (B, 1, 150) NCW
    dn = ("NCH", "OIH", "NCH")
    n_convs = len(raw["convs"])
    for idx, (w, b, s) in enumerate(raw["convs"]):
        x = lax.conv_general_dilated(x, w, (s,), "VALID", dimension_numbers=dn)
        x = x + b[None, :, None]
        if idx < n_convs - 1:
            x = jnp.maximum(x, 0.0)
    x = x[:, :, 0]                                               # (B, 48)
    w, b = raw["l1"]; x = jnp.maximum(x @ w.T + b, 0.0)
    w, b = raw["l2"]; x = x @ w.T + b                            # (B, 10)
    wih, whh, bih, bhh = raw["lstm"]
    h, c = x, x
    outs = []
    for _ in range(seq_len):
        gates = act @ wih.T + bih + h @ whh.T + bhh
        i_g, f_g, g_g, o_g = jnp.split(gates, 4, axis=1)
        i_g, f_g, o_g = jax.nn.sigmoid(i_g), jax.nn.sigmoid(f_g), jax.nn.sigmoid(o_g)
        g_g = jnp.tanh(g_g)
        c = f_g * c + i_g * g_g
        h = o_g * jnp.tanh(c)
        outs.append(h)
    seq = jnp.stack(outs, axis=1)                                # (B, seq_len, 10)
    w, b = raw["d1"]; d = jnp.maximum(seq @ w.T + b, 0.0)
    w, b = raw["d2"]; d = jnp.maximum(d @ w.T + b, 0.0)
    w, b = raw["d3"]; result = d @ w.T + b                       # (B, seq_len, 150)
    return result[:, -1] - ref[length], result


if __name__ == "__main__":
    B = 8            # 8 rows fill an f32 vreg's sublanes -> free vs. B=4
    SEQ_LEN = 8      # int(num_steps / ratio) for this synthetic env
    T = 16           # rows in the synthetic reference trajectory table self.ref

    key = jax.random.PRNGKey(0)
    k_param, k_state, k_act, k_ref, k_len = jax.random.split(key, 5)

    raw = init_params(k_param)
    kparams = pack_kernel_params(raw)

    state = jax.random.normal(k_state, (B, MESHX), jnp.float32) * 0.1
    act = jax.random.normal(k_act, (B, ACT_DIM), jnp.float32)
    ref = jax.random.normal(k_ref, (T, MESHX), jnp.float32) * 0.1
    length = jax.random.randint(k_len, (B,), 1, T - 1)

    out, result = fake_burgers_forward(state, act, length, ref, kparams, SEQ_LEN)
    out = jax.block_until_ready(out)
    result = jax.block_until_ready(result)

    assert out.shape == (B, MESHX)
    assert result.shape == (B, SEQ_LEN, MESHX)
    assert bool(jnp.all(jnp.isfinite(out)))
    assert bool(jnp.all(jnp.isfinite(result)))

    ref_out, ref_result = reference_forward(state, act, length, ref, raw, SEQ_LEN)
    # bf16-stored weights -> slightly looser tolerance than the pure-f32 build
    np.testing.assert_allclose(np.asarray(out), np.asarray(ref_out), rtol=2e-2, atol=2e-2)
    np.testing.assert_allclose(np.asarray(result), np.asarray(ref_result), rtol=2e-2, atol=2e-2)

    print("KERNEL_OK")
</pallas_src>

<mosaic_0001>
module attributes {stable_mosaic.version = 11 : i64} {
  func.func @_forward_kernel(%arg0: memref<8x1xi32, #tpu.memory_space<vmem>>, %arg1: memref<8x150xf32, #tpu.memory_space<vmem>>, %arg2: memref<8x2xf32, #tpu.memory_space<vmem>>, %arg3: memref<16x150xf32, #tpu.memory_space<vmem>>, %arg4: memref<150x392xbf16, #tpu.memory_space<vmem>>, %arg5: memref<1x392xf32, #tpu.memory_space<vmem>>, %arg6: memref<392x240xbf16, #tpu.memory_space<vmem>>, %arg7: memref<1x240xf32, #tpu.memory_space<vmem>>, %arg8: memref<240x192xbf16, #tpu.memory_space<vmem>>, %arg9: memref<1x192xf32, #tpu.memory_space<vmem>>, %arg10: memref<192x24xbf16, #tpu.memory_space<vmem>>, %arg11: memref<1x24xf32, #tpu.memory_space<vmem>>, %arg12: memref<24x128xf32, #tpu.memory_space<vmem>>, %arg13: memref<1x128xf32, #tpu.memory_space<vmem>>, %arg14: memref<2x512xf32, #tpu.memory_space<vmem>>, %arg15: memref<128x512xbf16, #tpu.memory_space<vmem>>, %arg16: memref<1x512xf32, #tpu.memory_space<vmem>>, %arg17: memref<128x36xf32, #tpu.memory_space<vmem>>, %arg18: memref<1x36xf32, #tpu.memory_space<vmem>>, %arg19: memref<36x72xf32, #tpu.memory_space<vmem>>, %arg20: memref<1x72xf32, #tpu.memory_space<vmem>>, %arg21: memref<72x150xf32, #tpu.memory_space<vmem>>, %arg22: memref<1x150xf32, #tpu.memory_space<vmem>>, %arg23: memref<8x150xf32, #tpu.memory_space<vmem>>, %arg24: memref<8x8x150xf32, #tpu.memory_space<vmem>>, %arg25: memref<8x8x128xf32, #tpu.memory_space<vmem>>) attributes {dimension_semantics = [], scalar_prefetch = 0 : i64, scratch_operands = 1 : i64, tpu.core_type = #tpu.core_type<tc>} {
    %c0 = arith.constant 0 : index
    %c0_0 = arith.constant 0 : index
    %0 = vector.load %arg0[%c0, %c0_0] : memref<8x1xi32, #tpu.memory_space<vmem>>, vector<8x1xi32>
    %1 = tpu.iota {dimensions = array<i32: 1>} : vector<8x16xi32>
    %c0_1 = arith.constant 0 : index
    %c0_2 = arith.constant 0 : index
    %2 = vector.load %arg3[%c0_1, %c0_2] : memref<16x150xf32, #tpu.memory_space<vmem>>, vector<16x150xf32>
    %c1_i32 = arith.constant 1 : i32
    %3 = vector.broadcast %c1_i32 : i32 to vector<8x1xi32>
    %4 = arith.subi %0, %3 : vector<8x1xi32>
    %5 = vector.broadcast %4 : vector<8x1xi32> to vector<8x16xi32>
    %6 = arith.cmpi eq, %1, %5 : vector<8x16xi32>
    %7 = arith.extui %6 : vector<8x16xi1> to vector<8x16xi32>
    %8 = arith.sitofp %7 : vector<8x16xi32> to vector<8x16xf32>
    %cst = arith.constant dense<0.000000e+00> : vector<8x150xf32>
    %9 = tpu.matmul %8, %2, %cst {dimension_numbers = #tpu.dot_dimension_numbers<[1], [0], [0], [1], [0, 0, 1, 1], [], []>} : vector<8x16xf32>, vector<16x150xf32>, vector<8x150xf32> -> vector<8x150xf32>
    %10 = vector.broadcast %0 : vector<8x1xi32> to vector<8x16xi32>
    %11 = arith.cmpi eq, %1, %10 : vector<8x16xi32>
    %12 = arith.extui %11 : vector<8x16xi1> to vector<8x16xi32>
    %13 = arith.sitofp %12 : vector<8x16xi32> to vector<8x16xf32>
    %cst_3 = arith.constant dense<0.000000e+00> : vector<8x150xf32>
    %14 = tpu.matmul %13, %2, %cst_3 {dimension_numbers = #tpu.dot_dimension_numbers<[1], [0], [0], [1], [0, 0, 1, 1], [], []>} : vector<8x16xf32>, vector<16x150xf32>, vector<8x150xf32> -> vector<8x150xf32>
    %c0_4 = arith.constant 0 : index
    %c0_5 = arith.constant 0 : index
    %15 = vector.load %arg1[%c0_4, %c0_5] : memref<8x150xf32, #tpu.memory_space<vmem>>, vector<8x150xf32>
    %16 = arith.addf %15, %9 : vector<8x150xf32>
    %c0_6 = arith.constant 0 : index
    %c0_7 = arith.constant 0 : index
    %17 = vector.load %arg4[%c0_6, %c0_7] : memref<150x392xbf16, #tpu.memory_space<vmem>>, vector<150x392xbf16>
    %18 = arith.truncf %16 : vector<8x150xf32> to vector<8x150xbf16>
    %cst_8 = arith.constant dense<0.000000e+00> : vector<8x392xf32>
    %19 = tpu.matmul %18, %17, %cst_8 {dimension_numbers = #tpu.dot_dimension_numbers<[1], [0], [0], [1], [0, 0, 1, 1], [], []>} : vector<8x150xbf16>, vector<150x392xbf16>, vector<8x392xf32> -> vector<8x392xf32>
    %c0_9 = arith.constant 0 : index
    %c0_10 = arith.constant 0 : index
    %20 = vector.load %arg5[%c0_9, %c0_10] : memref<1x392xf32, #tpu.memory_space<vmem>>, vector<1x392xf32>
    %21 = vector.broadcast %20 : vector<1x392xf32> to vector<8x392xf32>
    %22 = arith.addf %19, %21 : vector<8x392xf32>
    %cst_11 = arith.constant 0.000000e+00 : f32
    %23 = vector.broadcast %cst_11 : f32 to vector<8x392xf32>
    %24 = arith.maximumf %22, %23 : vector<8x392xf32>
    %c0_12 = arith.constant 0 : index
    %c0_13 = arith.constant 0 : index
    %25 = vector.load %arg6[%c0_12, %c0_13] : memref<392x240xbf16, #tpu.memory_space<vmem>>, vector<392x240xbf16>
    %26 = arith.truncf %24 : vector<8x392xf32> to vector<8x392xbf16>
    %cst_14 = arith.constant dense<0.000000e+00> : vector<8x240xf32>
    %27 = tpu.matmul %26, %25, %cst_14 {dimension_numbers = #tpu.dot_dimension_numbers<[1], [0], [0], [1], [0, 0, 1, 1], [], []>} : vector<8x392xbf16>, vector<392x240xbf16>, vector<8x240xf32> -> vector<8x240xf32>
    %c0_15 = arith.constant 0 : index
    %c0_16 = arith.constant 0 : index
    %28 = vector.load %arg7[%c0_15, %c0_16] : memref<1x240xf32, #tpu.memory_space<vmem>>, vector<1x240xf32>
    %29 = vector.broadcast %28 : vector<1x240xf32> to vector<8x240xf32>
    %30 = arith.addf %27, %29 : vector<8x240xf32>
    %cst_17 = arith.constant 0.000000e+00 : f32
    %31 = vector.broadcast %cst_17 : f32 to vector<8x240xf32>
    %32 = arith.maximumf %30, %31 : vector<8x240xf32>
    %c0_18 = arith.constant 0 : index
    %c0_19 = arith.constant 0 : index
    %33 = vector.load %arg8[%c0_18, %c0_19] : memref<240x192xbf16, #tpu.memory_space<vmem>>, vector<240x192xbf16>
    %34 = arith.truncf %32 : vector<8x240xf32> to vector<8x240xbf16>
    %cst_20 = arith.constant dense<0.000000e+00> : vector<8x192xf32>
    %35 = tpu.matmul %34, %33, %cst_20 {dimension_numbers = #tpu.dot_dimension_numbers<[1], [0], [0], [1], [0, 0, 1, 1], [], []>} : vector<8x240xbf16>, vector<240x192xbf16>, vector<8x192xf32> -> vector<8x192xf32>
    %c0_21 = arith.constant 0 : index
    %c0_22 = arith.constant 0 : index
    %36 = vector.load %arg9[%c0_21, %c0_22] : memref<1x192xf32, #tpu.memory_space<vmem>>, vector<1x192xf32>
    %37 = vector.broadcast %36 : vector<1x192xf32> to vector<8x192xf32>
    %38 = arith.addf %35, %37 : vector<8x192xf32>
    %cst_23 = arith.constant 0.000000e+00 : f32
    %39 = vector.broadcast %cst_23 : f32 to vector<8x192xf32>
    %40 = arith.maximumf %38, %39 : vector<8x192xf32>
    %c0_24 = arith.constant 0 : index
    %c0_25 = arith.constant 0 : index
    %41 = vector.load %arg10[%c0_24, %c0_25] : memref<192x24xbf16, #tpu.memory_space<vmem>>, vector<192x24xbf16>
    %42 = arith.truncf %40 : vector<8x192xf32> to vector<8x192xbf16>
    %cst_26 = arith.constant dense<0.000000e+00> : vector<8x24xf32>
    %43 = tpu.matmul %42, %41, %cst_26 {dimension_numbers = #tpu.dot_dimension_numbers<[1], [0], [0], [1], [0, 0, 1, 1], [], []>} : vector<8x192xbf16>, vector<192x24xbf16>, vector<8x24xf32> -> vector<8x24xf32>
    %c0_27 = arith.constant 0 : index
    %c0_28 = arith.constant 0 : index
    %44 = vector.load %arg11[%c0_27, %c0_28] : memref<1x24xf32, #tpu.memory_space<vmem>>, vector<1x24xf32>
    %45 = vector.broadcast %44 : vector<1x24xf32> to vector<8x24xf32>
    %46 = arith.addf %43, %45 : vector<8x24xf32>
    %cst_29 = arith.constant 0.000000e+00 : f32
    %47 = vector.broadcast %cst_29 : f32 to vector<8x24xf32>
    %48 = arith.maximumf %46, %47 : vector<8x24xf32>
    %c0_30 = arith.constant 0 : index
    %c0_31 = arith.constant 0 : index
    %49 = vector.load %arg12[%c0_30, %c0_31] : memref<24x128xf32, #tpu.memory_space<vmem>>, vector<24x128xf32>
    %cst_32 = arith.constant dense<0.000000e+00> : vector<8x128xf32>
    %50 = tpu.matmul %48, %49, %cst_32 {dimension_numbers = #tpu.dot_dimension_numbers<[1], [0], [0], [1], [0, 0, 1, 1], [], []>} : vector<8x24xf32>, vector<24x128xf32>, vector<8x128xf32> -> vector<8x128xf32>
    %c0_33 = arith.constant 0 : index
    %c0_34 = arith.constant 0 : index
    %51 = vector.load %arg13[%c0_33, %c0_34] : memref<1x128xf32, #tpu.memory_space<vmem>>, vector<1x128xf32>
    %52 = vector.broadcast %51 : vector<1x128xf32> to vector<8x128xf32>
    %53 = arith.addf %50, %52 : vector<8x128xf32>
    %c0_35 = arith.constant 0 : index
    %c0_36 = arith.constant 0 : index
    %54 = vector.load %arg2[%c0_35, %c0_36] : memref<8x2xf32, #tpu.memory_space<vmem>>, vector<8x2xf32>
    %c0_37 = arith.constant 0 : index
    %c0_38 = arith.constant 0 : index
    %55 = vector.load %arg14[%c0_37, %c0_38] : memref<2x512xf32, #tpu.memory_space<vmem>>, vector<2x512xf32>
    %cst_39 = arith.constant dense<0.000000e+00> : vector<8x512xf32>
    %56 = tpu.matmul %54, %55, %cst_39 {dimension_numbers = #tpu.dot_dimension_numbers<[1], [0], [0], [1], [0, 0, 1, 1], [], []>} : vector<8x2xf32>, vector<2x512xf32>, vector<8x512xf32> -> vector<8x512xf32>
    %c0_40 = arith.constant 0 : index
    %c0_41 = arith.constant 0 : index
    %57 = vector.load %arg16[%c0_40, %c0_41] : memref<1x512xf32, #tpu.memory_space<vmem>>, vector<1x512xf32>
    %58 = vector.broadcast %57 : vector<1x512xf32> to vector<8x512xf32>
    %59 = arith.addf %56, %58 : vector<8x512xf32>
    %c0_42 = arith.constant 0 : index
    %c0_43 = arith.constant 0 : index
    %60 = vector.load %arg15[%c0_42, %c0_43] : memref<128x512xbf16, #tpu.memory_space<vmem>>, vector<128x512xbf16>
    %61 = arith.truncf %53 : vector<8x128xf32> to vector<8x128xbf16>
    %cst_44 = arith.constant dense<0.000000e+00> : vector<8x512xf32>
    %62 = tpu.matmul %61, %60, %cst_44 {dimension_numbers = #tpu.dot_dimension_numbers<[1], [0], [0], [1], [0, 0, 1, 1], [], []>} : vector<8x128xbf16>, vector<128x512xbf16>, vector<8x512xf32> -> vector<8x512xf32>
    %63 = arith.addf %59, %62 : vector<8x512xf32>
    %64 = vector.extract_strided_slice %63 {offsets = [0, 0], sizes = [8, 128], strides = [1, 1]} : vector<8x512xf32> to vector<8x128xf32>
    %65 = arith.negf %64 : vector<8x128xf32>
    %66 = math.exp %65 : vector<8x128xf32>
    %cst_45 = arith.constant 1.000000e+00 : f32
    %67 = vector.broadcast %cst_45 : f32 to vector<8x128xf32>
    %68 = arith.addf %67, %66 : vector<8x128xf32>
    %69 = arith.divf %67, %68 : vector<8x128xf32>
    %70 = vector.extract_strided_slice %63 {offsets = [0, 128], sizes = [8, 128], strides = [1, 1]} : vector<8x512xf32> to vector<8x128xf32>
    %71 = arith.negf %70 : vector<8x128xf32>
    %72 = math.exp %71 : vector<8x128xf32>
    %cst_46 = arith.constant 1.000000e+00 : f32
    %73 = vector.broadcast %cst_46 : f32 to vector<8x128xf32>
    %74 = arith.addf %73, %72 : vector<8x128xf32>
    %75 = arith.divf %73, %74 : vector<8x128xf32>
    %76 = vector.extract_strided_slice %63 {offsets = [0, 256], sizes = [8, 128], strides = [1, 1]} : vector<8x512xf32> to vector<8x128xf32>
    %77 = math.tanh %76 : vector<8x128xf32>
    %78 = vector.extract_strided_slice %63 {offsets = [0, 384], sizes = [8, 128], strides = [1, 1]} : vector<8x512xf32> to vector<8x128xf32>
    %79 = arith.negf %78 : vector<8x128xf32>
    %80 = math.exp %79 : vector<8x128xf32>
    %cst_47 = arith.constant 1.000000e+00 : f32
    %81 = vector.broadcast %cst_47 : f32 to vector<8x128xf32>
    %82 = arith.addf %81, %80 : vector<8x128xf32>
    %83 = arith.divf %81, %82 : vector<8x128xf32>
    %84 = arith.mulf %75, %53 : vector<8x128xf32>
    %85 = arith.mulf %69, %77 : vector<8x128xf32>
    %86 = arith.addf %84, %85 : vector<8x128xf32>
    %87 = math.tanh %86 : vector<8x128xf32>
    %88 = arith.mulf %83, %87 : vector<8x128xf32>
    %c0_48 = arith.constant 0 : index
    %c0_49 = arith.constant 0 : index
    %c0_50 = arith.constant 0 : index
    %89 = vector.load %arg25[%c0_48, %c0_49, %c0_50] : memref<8x8x128xf32, #tpu.memory_space<vmem>>, vector<8x1x128xf32>
    %90 = vector.shape_cast %89 : vector<8x1x128xf32> to vector<8x128xf32>
    %91 = vector.shape_cast %88 : vector<8x128xf32> to vector<8x1x128xf32>
    tpu.vector_store %arg25[%c0_48, %c0_49, %c0_50], %91 {strides = array<i32>} : memref<8x8x128xf32, #tpu.memory_space<vmem>>, vector<8x1x128xf32>,
    %92 = arith.truncf %88 : vector<8x128xf32> to vector<8x128xbf16>
    %cst_51 = arith.constant dense<0.000000e+00> : vector<8x512xf32>
    %93 = tpu.matmul %92, %60, %cst_51 {dimension_numbers = #tpu.dot_dimension_numbers<[1], [0], [0], [1], [0, 0, 1, 1], [], []>} : vector<8x128xbf16>, vector<128x512xbf16>, vector<8x512xf32> -> vector<8x512xf32>
    %94 = arith.addf %59, %93 : vector<8x512xf32>
    %95 = vector.extract_strided_slice %94 {offsets = [0, 0], sizes = [8, 128], strides = [1, 1]} : vector<8x512xf32> to vector<8x128xf32>
    %96 = arith.negf %95 : vector<8x128xf32>
    %97 = math.exp %96 : vector<8x128xf32>
    %cst_52 = arith.constant 1.000000e+00 : f32
    %98 = vector.broadcast %cst_52 : f32 to vector<8x128xf32>
    %99 = arith.addf %98, %97 : vector<8x128xf32>
    %100 = arith.divf %98, %99 : vector<8x128xf32>
    %101 = vector.extract_strided_slice %94 {offsets = [0, 128], sizes = [8, 128], strides = [1, 1]} : vector<8x512xf32> to vector<8x128xf32>
    %102 = arith.negf %101 : vector<8x128xf32>
    %103 = math.exp %102 : vector<8x128xf32>
    %cst_53 = arith.constant 1.000000e+00 : f32
    %104 = vector.broadcast %cst_53 : f32 to vector<8x128xf32>
    %105 = arith.addf %104, %103 : vector<8x128xf32>
    %106 = arith.divf %104, %105 : vector<8x128xf32>
    %107 = vector.extract_strided_slice %94 {offsets = [0, 256], sizes = [8, 128], strides = [1, 1]} : vector<8x512xf32> to vector<8x128xf32>
    %108 = math.tanh %107 : vector<8x128xf32>
    %109 = vector.extract_strided_slice %94 {offsets = [0, 384], sizes = [8, 128], strides = [1, 1]} : vector<8x512xf32> to vector<8x128xf32>
    %110 = arith.negf %109 : vector<8x128xf32>
    %111 = math.exp %110 : vector<8x128xf32>
    %cst_54 = arith.constant 1.000000e+00 : f32
    %112 = vector.broadcast %cst_54 : f32 to vector<8x128xf32>
    %113 = arith.addf %112, %111 : vector<8x128xf32>
    %114 = arith.divf %112, %113 : vector<8x128xf32>
    %115 = arith.mulf %106, %86 : vector<8x128xf32>
    %116 = arith.mulf %100, %108 : vector<8x128xf32>
    %117 = arith.addf %115, %116 : vector<8x128xf32>
    %118 = math.tanh %117 : vector<8x128xf32>
    %119 = arith.mulf %114, %118 : vector<8x128xf32>
    %c0_55 = arith.constant 0 : index
    %c1 = arith.constant 1 : index
    %c0_56 = arith.constant 0 : index
    %120 = vector.load %arg25[%c0_55, %c1, %c0_56] : memref<8x8x128xf32, #tpu.memory_space<vmem>>, vector<8x1x128xf32>
    %121 = vector.shape_cast %120 : vector<8x1x128xf32> to vector<8x128xf32>
    %122 = vector.shape_cast %119 : vector<8x128xf32> to vector<8x1x128xf32>
    tpu.vector_store %arg25[%c0_55, %c1, %c0_56], %122 {strides = array<i32>} : memref<8x8x128xf32, #tpu.memory_space<vmem>>, vector<8x1x128xf32>,
    %123 = arith.truncf %119 : vector<8x128xf32> to vector<8x128xbf16>
    %cst_57 = arith.constant dense<0.000000e+00> : vector<8x512xf32>
    %124 = tpu.matmul %123, %60, %cst_57 {dimension_numbers = #tpu.dot_dimension_numbers<[1], [0], [0], [1], [0, 0, 1, 1], [], []>} : vector<8x128xbf16>, vector<128x512xbf16>, vector<8x512xf32> -> vector<8x512xf32>
    %125 = arith.addf %59, %124 : vector<8x512xf32>
    %126 = vector.extract_strided_slice %125 {offsets = [0, 0], sizes = [8, 128], strides = [1, 1]} : vector<8x512xf32> to vector<8x128xf32>
    %127 = arith.negf %126 : vector<8x128xf32>
    %128 = math.exp %127 : vector<8x128xf32>
    %cst_58 = arith.constant 1.000000e+00 : f32
    %129 = vector.broadcast %cst_58 : f32 to vector<8x128xf32>
    %130 = arith.addf %129, %128 : vector<8x128xf32>
    %131 = arith.divf %129, %130 : vector<8x128xf32>
    %132 = vector.extract_strided_slice %125 {offsets = [0, 128], sizes = [8, 128], strides = [1, 1]} : vector<8x512xf32> to vector<8x128xf32>
    %133 = arith.negf %132 : vector<8x128xf32>
    %134 = math.exp %133 : vector<8x128xf32>
    %cst_59 = arith.constant 1.000000e+00 : f32
    %135 = vector.broadcast %cst_59 : f32 to vector<8x128xf32>
    %136 = arith.addf %135, %134 : vector<8x128xf32>
    %137 = arith.divf %135, %136 : vector<8x128xf32>
    %138 = vector.extract_strided_slice %125 {offsets = [0, 256], sizes = [8, 128], strides = [1, 1]} : vector<8x512xf32> to vector<8x128xf32>
    %139 = math.tanh %138 : vector<8x128xf32>
    %140 = vector.extract_strided_slice %125 {offsets = [0, 384], sizes = [8, 128], strides = [1, 1]} : vector<8x512xf32> to vector<8x128xf32>
    %141 = arith.negf %140 : vector<8x128xf32>
    %142 = math.exp %141 : vector<8x128xf32>
    %cst_60 = arith.constant 1.000000e+00 : f32
    %143 = vector.broadcast %cst_60 : f32 to vector<8x128xf32>
    %144 = arith.addf %143, %142 : vector<8x128xf32>
    %145 = arith.divf %143, %144 : vector<8x128xf32>
    %146 = arith.mulf %137, %117 : vector<8x128xf32>
    %147 = arith.mulf %131, %139 : vector<8x128xf32>
    %148 = arith.addf %146, %147 : vector<8x128xf32>
    %149 = math.tanh %148 : vector<8x128xf32>
    %150 = arith.mulf %145, %149 : vector<8x128xf32>
    %c0_61 = arith.constant 0 : index
    %c2 = arith.constant 2 : index
    %c0_62 = arith.constant 0 : index
    %151 = vector.load %arg25[%c0_61, %c2, %c0_62] : memref<8x8x128xf32, #tpu.memory_space<vmem>>, vector<8x1x128xf32>
    %152 = vector.shape_cast %151 : vector<8x1x128xf32> to vector<8x128xf32>
    %153 = vector.shape_cast %150 : vector<8x128xf32> to vector<8x1x128xf32>
    tpu.vector_store %arg25[%c0_61, %c2, %c0_62], %153 {strides = array<i32>} : memref<8x8x128xf32, #tpu.memory_space<vmem>>, vector<8x1x128xf32>,
    %154 = arith.truncf %150 : vector<8x128xf32> to vector<8x128xbf16>
    %cst_63 = arith.constant dense<0.000000e+00> : vector<8x512xf32>
    %155 = tpu.matmul %154, %60, %cst_63 {dimension_numbers = #tpu.dot_dimension_numbers<[1], [0], [0], [1], [0, 0, 1, 1], [], []>} : vector<8x128xbf16>, vector<128x512xbf16>, vector<8x512xf32> -> vector<8x512xf32>
    %156 = arith.addf %59, %155 : vector<8x512xf32>
    %157 = vector.extract_strided_slice %156 {offsets = [0, 0], sizes = [8, 128], strides = [1, 1]} : vector<8x512xf32> to vector<8x128xf32>
    %158 = arith.negf %157 : vector<8x128xf32>
    %159 = math.exp %158 : vector<8x128xf32>
    %cst_64 = arith.constant 1.000000e+00 : f32
    %160 = vector.broadcast %cst_64 : f32 to vector<8x128xf32>
    %161 = arith.addf %160, %159 : vector<8x128xf32>
    %162 = arith.divf %160, %161 : vector<8x128xf32>
    %163 = vector.extract_strided_slice %156 {offsets = [0, 128], sizes = [8, 128], strides = [1, 1]} : vector<8x512xf32> to vector<8x128xf32>
    %164 = arith.negf %163 : vector<8x128xf32>
    %165 = math.exp %164 : vector<8x128xf32>
    %cst_65 = arith.constant 1.000000e+00 : f32
    %166 = vector.broadcast %cst_65 : f32 to vector<8x128xf32>
    %167 = arith.addf %166, %165 : vector<8x128xf32>
    %168 = arith.divf %166, %167 : vector<8x128xf32>
    %169 = vector.extract_strided_slice %156 {offsets = [0, 256], sizes = [8, 128], strides = [1, 1]} : vector<8x512xf32> to vector<8x128xf32>
    %170 = math.tanh %169 : vector<8x128xf32>
    %171 = vector.extract_strided_slice %156 {offsets = [0, 384], sizes = [8, 128], strides = [1, 1]} : vector<8x512xf32> to vector<8x128xf32>
    %172 = arith.negf %171 : vector<8x128xf32>
    %173 = math.exp %172 : vector<8x128xf32>
    %cst_66 = arith.constant 1.000000e+00 : f32
    %174 = vector.broadcast %cst_66 : f32 to vector<8x128xf32>
    %175 = arith.addf %174, %173 : vector<8x128xf32>
    %176 = arith.divf %174, %175 : vector<8x128xf32>
    %177 = arith.mulf %168, %148 : vector<8x128xf32>
    %178 = arith.mulf %162, %170 : vector<8x128xf32>
    %179 = arith.addf %177, %178 : vector<8x128xf32>
    %180 = math.tanh %179 : vector<8x128xf32>
    %181 = arith.mulf %176, %180 : vector<8x128xf32>
    %c0_67 = arith.constant 0 : index
    %c3 = arith.constant 3 : index
    %c0_68 = arith.constant 0 : index
    %182 = vector.load %arg25[%c0_67, %c3, %c0_68] : memref<8x8x128xf32, #tpu.memory_space<vmem>>, vector<8x1x128xf32>
    %183 = vector.shape_cast %182 : vector<8x1x128xf32> to vector<8x128xf32>
    %184 = vector.shape_cast %181 : vector<8x128xf32> to vector<8x1x128xf32>
    tpu.vector_store %arg25[%c0_67, %c3, %c0_68], %184 {strides = array<i32>} : memref<8x8x128xf32, #tpu.memory_space<vmem>>, vector<8x1x128xf32>,
    %185 = arith.truncf %181 : vector<8x128xf32> to vector<8x128xbf16>
    %cst_69 = arith.constant dense<0.000000e+00> : vector<8x512xf32>
    %186 = tpu.matmul %185, %60, %cst_69 {dimension_numbers = #tpu.dot_dimension_numbers<[1], [0], [0], [1], [0, 0, 1, 1], [], []>} : vector<8x128xbf16>, vector<128x512xbf16>, vector<8x512xf32> -> vector<8x512xf32>
    %187 = arith.addf %59, %186 : vector<8x512xf32>
    %188 = vector.extract_strided_slice %187 {offsets = [0, 0], sizes = [8, 128], strides = [1, 1]} : vector<8x512xf32> to vector<8x128xf32>
    %189 = arith.negf %188 : vector<8x128xf32>
    %190 = math.exp %189 : vector<8x128xf32>
    %cst_70 = arith.constant 1.000000e+00 : f32
    %191 = vector.broadcast %cst_70 : f32 to vector<8x128xf32>
    %192 = arith.addf %191, %190 : vector<8x128xf32>
    %193 = arith.divf %191, %192 : vector<8x128xf32>
    %194 = vector.extract_strided_slice %187 {offsets = [0, 128], sizes = [8, 128], strides = [1, 1]} : vector<8x512xf32> to vector<8x128xf32>
    %195 = arith.negf %194 : vector<8x128xf32>
    %196 = math.exp %195 : vector<8x128xf32>
    %cst_71 = arith.constant 1.000000e+00 : f32
    %197 = vector.broadcast %cst_71 : f32 to vector<8x128xf32>
    %198 = arith.addf %197, %196 : vector<8x128xf32>
    %199 = arith.divf %197, %198 : vector<8x128xf32>
    %200 = vector.extract_strided_slice %187 {offsets = [0, 256], sizes = [8, 128], strides = [1, 1]} : vector<8x512xf32> to vector<8x128xf32>
    %201 = math.tanh %200 : vector<8x128xf32>
    %202 = vector.extract_strided_slice %187 {offsets = [0, 384], sizes = [8, 128], strides = [1, 1]} : vector<8x512xf32> to vector<8x128xf32>
    %203 = arith.negf %202 : vector<8x128xf32>
    %204 = math.exp %203 : vector<8x128xf32>
    %cst_72 = arith.constant 1.000000e+00 : f32
    %205 = vector.broadcast %cst_72 : f32 to vector<8x128xf32>
    %206 = arith.addf %205, %204 : vector<8x128xf32>
    %207 = arith.divf %205, %206 : vector<8x128xf32>
    %208 = arith.mulf %199, %179 : vector<8x128xf32>
    %209 = arith.mulf %193, %201 : vector<8x128xf32>
    %210 = arith.addf %208, %209 : vector<8x128xf32>
    %211 = math.tanh %210 : vector<8x128xf32>
    %212 = arith.mulf %207, %211 : vector<8x128xf32>
    %c0_73 = arith.constant 0 : index
    %c4 = arith.constant 4 : index
    %c0_74 = arith.constant 0 : index
    %213 = vector.load %arg25[%c0_73, %c4, %c0_74] : memref<8x8x128xf32, #tpu.memory_space<vmem>>, vector<8x1x128xf32>
    %214 = vector.shape_cast %213 : vector<8x1x128xf32> to vector<8x128xf32>
    %215 = vector.shape_cast %212 : vector<8x128xf32> to vector<8x1x128xf32>
    tpu.vector_store %arg25[%c0_73, %c4, %c0_74], %215 {strides = array<i32>} : memref<8x8x128xf32, #tpu.memory_space<vmem>>, vector<8x1x128xf32>,
    %216 = arith.truncf %212 : vector<8x128xf32> to vector<8x128xbf16>
    %cst_75 = arith.constant dense<0.000000e+00> : vector<8x512xf32>
    %217 = tpu.matmul %216, %60, %cst_75 {dimension_numbers = #tpu.dot_dimension_numbers<[1], [0], [0], [1], [0, 0, 1, 1], [], []>} : vector<8x128xbf16>, vector<128x512xbf16>, vector<8x512xf32> -> vector<8x512xf32>
    %218 = arith.addf %59, %217 : vector<8x512xf32>
    %219 = vector.extract_strided_slice %218 {offsets = [0, 0], sizes = [8, 128], strides = [1, 1]} : vector<8x512xf32> to vector<8x128xf32>
    %220 = arith.negf %219 : vector<8x128xf32>
    %221 = math.exp %220 : vector<8x128xf32>
    %cst_76 = arith.constant 1.000000e+00 : f32
    %222 = vector.broadcast %cst_76 : f32 to vector<8x128xf32>
    %223 = arith.addf %222, %221 : vector<8x128xf32>
    %224 = arith.divf %222, %223 : vector<8x128xf32>
    %225 = vector.extract_strided_slice %218 {offsets = [0, 128], sizes = [8, 128], strides = [1, 1]} : vector<8x512xf32> to vector<8x128xf32>
    %226 = arith.negf %225 : vector<8x128xf32>
    %227 = math.exp %226 : vector<8x128xf32>
    %cst_77 = arith.constant 1.000000e+00 : f32
    %228 = vector.broadcast %cst_77 : f32 to vector<8x128xf32>
    %229 = arith.addf %228, %227 : vector<8x128xf32>
    %230 = arith.divf %228, %229 : vector<8x128xf32>
    %231 = vector.extract_strided_slice %218 {offsets = [0, 256], sizes = [8, 128], strides = [1, 1]} : vector<8x512xf32> to vector<8x128xf32>
    %232 = math.tanh %231 : vector<8x128xf32>
    %233 = vector.extract_strided_slice %218 {offsets = [0, 384], sizes = [8, 128], strides = [1, 1]} : vector<8x512xf32> to vector<8x128xf32>
    %234 = arith.negf %233 : vector<8x128xf32>
    %235 = math.exp %234 : vector<8x128xf32>
    %cst_78 = arith.constant 1.000000e+00 : f32
    %236 = vector.broadcast %cst_78 : f32 to vector<8x128xf32>
    %237 = arith.addf %236, %235 : vector<8x128xf32>
    %238 = arith.divf %236, %237 : vector<8x128xf32>
    %239 = arith.mulf %230, %210 : vector<8x128xf32>
    %240 = arith.mulf %224, %232 : vector<8x128xf32>
    %241 = arith.addf %239, %240 : vector<8x128xf32>
    %242 = math.tanh %241 : vector<8x128xf32>
    %243 = arith.mulf %238, %242 : vector<8x128xf32>
    %c0_79 = arith.constant 0 : index
    %c5 = arith.constant 5 : index
    %c0_80 = arith.constant 0 : index
    %244 = vector.load %arg25[%c0_79, %c5, %c0_80] : memref<8x8x128xf32, #tpu.memory_space<vmem>>, vector<8x1x128xf32>
    %245 = vector.shape_cast %244 : vector<8x1x128xf32> to vector<8x128xf32>
    %246 = vector.shape_cast %243 : vector<8x128xf32> to vector<8x1x128xf32>
    tpu.vector_store %arg25[%c0_79, %c5, %c0_80], %246 {strides = array<i32>} : memref<8x8x128xf32, #tpu.memory_space<vmem>>, vector<8x1x128xf32>,
    %247 = arith.truncf %243 : vector<8x128xf32> to vector<8x128xbf16>
    %cst_81 = arith.constant dense<0.000000e+00> : vector<8x512xf32>
    %248 = tpu.matmul %247, %60, %cst_81 {dimension_numbers = #tpu.dot_dimension_numbers<[1], [0], [0], [1], [0, 0, 1, 1], [], []>} : vector<8x128xbf16>, vector<128x512xbf16>, vector<8x512xf32> -> vector<8x512xf32>
    %249 = arith.addf %59, %248 : vector<8x512xf32>
    %250 = vector.extract_strided_slice %249 {offsets = [0, 0], sizes = [8, 128], strides = [1, 1]} : vector<8x512xf32> to vector<8x128xf32>
    %251 = arith.negf %250 : vector<8x128xf32>
    %252 = math.exp %251 : vector<8x128xf32>
    %cst_82 = arith.constant 1.000000e+00 : f32
    %253 = vector.broadcast %cst_82 : f32 to vector<8x128xf32>
    %254 = arith.addf %253, %252 : vector<8x128xf32>
    %255 = arith.divf %253, %254 : vector<8x128xf32>
    %256 = vector.extract_strided_slice %249 {offsets = [0, 128], sizes = [8, 128], strides = [1, 1]} : vector<8x512xf32> to vector<8x128xf32>
    %257 = arith.negf %256 : vector<8x128xf32>
    %258 = math.exp %257 : vector<8x128xf32>
    %cst_83 = arith.constant 1.000000e+00 : f32
    %259 = vector.broadcast %cst_83 : f32 to vector<8x128xf32>
    %260 = arith.addf %259, %258 : vector<8x128xf32>
    %261 = arith.divf %259, %260 : vector<8x128xf32>
    %262 = vector.extract_strided_slice %249 {offsets = [0, 256], sizes = [8, 128], strides = [1, 1]} : vector<8x512xf32> to vector<8x128xf32>
    %263 = math.tanh %262 : vector<8x128xf32>
    %264 = vector.extract_strided_slice %249 {offsets = [0, 384], sizes = [8, 128], strides = [1, 1]} : vector<8x512xf32> to vector<8x128xf32>
    %265 = arith.negf %264 : vector<8x128xf32>
    %266 = math.exp %265 : vector<8x128xf32>
    %cst_84 = arith.constant 1.000000e+00 : f32
    %267 = vector.broadcast %cst_84 : f32 to vector<8x128xf32>
    %268 = arith.addf %267, %266 : vector<8x128xf32>
    %269 = arith.divf %267, %268 : vector<8x128xf32>
    %270 = arith.mulf %261, %241 : vector<8x128xf32>
    %271 = arith.mulf %255, %263 : vector<8x128xf32>
    %272 = arith.addf %270, %271 : vector<8x128xf32>
    %273 = math.tanh %272 : vector<8x128xf32>
    %274 = arith.mulf %269, %273 : vector<8x128xf32>
    %c0_85 = arith.constant 0 : index
    %c6 = arith.constant 6 : index
    %c0_86 = arith.constant 0 : index
    %275 = vector.load %arg25[%c0_85, %c6, %c0_86] : memref<8x8x128xf32, #tpu.memory_space<vmem>>, vector<8x1x128xf32>
    %276 = vector.shape_cast %275 : vector<8x1x128xf32> to vector<8x128xf32>
    %277 = vector.shape_cast %274 : vector<8x128xf32> to vector<8x1x128xf32>
    tpu.vector_store %arg25[%c0_85, %c6, %c0_86], %277 {strides = array<i32>} : memref<8x8x128xf32, #tpu.memory_space<vmem>>, vector<8x1x128xf32>,
    %278 = arith.truncf %274 : vector<8x128xf32> to vector<8x128xbf16>
    %cst_87 = arith.constant dense<0.000000e+00> : vector<8x512xf32>
    %279 = tpu.matmul %278, %60, %cst_87 {dimension_numbers = #tpu.dot_dimension_numbers<[1], [0], [0], [1], [0, 0, 1, 1], [], []>} : vector<8x128xbf16>, vector<128x512xbf16>, vector<8x512xf32> -> vector<8x512xf32>
    %280 = arith.addf %59, %279 : vector<8x512xf32>
    %281 = vector.extract_strided_slice %280 {offsets = [0, 0], sizes = [8, 128], strides = [1, 1]} : vector<8x512xf32> to vector<8x128xf32>
    %282 = arith.negf %281 : vector<8x128xf32>
    %283 = math.exp %282 : vector<8x128xf32>
    %cst_88 = arith.constant 1.000000e+00 : f32
    %284 = vector.broadcast %cst_88 : f32 to vector<8x128xf32>
    %285 = arith.addf %284, %283 : vector<8x128xf32>
    %286 = arith.divf %284, %285 : vector<8x128xf32>
    %287 = vector.extract_strided_slice %280 {offsets = [0, 128], sizes = [8, 128], strides = [1, 1]} : vector<8x512xf32> to vector<8x128xf32>
    %288 = arith.negf %287 : vector<8x128xf32>
    %289 = math.exp %288 : vector<8x128xf32>
    %cst_89 = arith.constant 1.000000e+00 : f32
    %290 = vector.broadcast %cst_89 : f32 to vector<8x128xf32>
    %291 = arith.addf %290, %289 : vector<8x128xf32>
    %292 = arith.divf %290, %291 : vector<8x128xf32>
    %293 = vector.extract_strided_slice %280 {offsets = [0, 256], sizes = [8, 128], strides = [1, 1]} : vector<8x512xf32> to vector<8x128xf32>
    %294 = math.tanh %293 : vector<8x128xf32>
    %295 = vector.extract_strided_slice %280 {offsets = [0, 384], sizes = [8, 128], strides = [1, 1]} : vector<8x512xf32> to vector<8x128xf32>
    %296 = arith.negf %295 : vector<8x128xf32>
    %297 = math.exp %296 : vector<8x128xf32>
    %cst_90 = arith.constant 1.000000e+00 : f32
    %298 = vector.broadcast %cst_90 : f32 to vector<8x128xf32>
    %299 = arith.addf %298, %297 : vector<8x128xf32>
    %300 = arith.divf %298, %299 : vector<8x128xf32>
    %301 = arith.mulf %292, %272 : vector<8x128xf32>
    %302 = arith.mulf %286, %294 : vector<8x128xf32>
    %303 = arith.addf %301, %302 : vector<8x128xf32>
    %304 = math.tanh %303 : vector<8x128xf32>
    %305 = arith.mulf %300, %304 : vector<8x128xf32>
    %c0_91 = arith.constant 0 : index
    %c7 = arith.constant 7 : index
    %c0_92 = arith.constant 0 : index
    %306 = vector.load %arg25[%c0_91, %c7, %c0_92] : memref<8x8x128xf32, #tpu.memory_space<vmem>>, vector<8x1x128xf32>
    %307 = vector.shape_cast %306 : vector<8x1x128xf32> to vector<8x128xf32>
    %308 = vector.shape_cast %305 : vector<8x128xf32> to vector<8x1x128xf32>
    tpu.vector_store %arg25[%c0_91, %c7, %c0_92], %308 {strides = array<i32>} : memref<8x8x128xf32, #tpu.memory_space<vmem>>, vector<8x1x128xf32>,
    %c0_93 = arith.constant 0 : index
    %c0_94 = arith.constant 0 : index
    %c0_95 = arith.constant 0 : index
    %309 = vector.load %arg25[%c0_93, %c0_94, %c0_95] : memref<8x8x128xf32, #tpu.memory_space<vmem>>, vector<8x8x128xf32>
    %310 = vector.shape_cast %309 : vector<8x8x128xf32> to vector<64x128xf32>
    %c0_96 = arith.constant 0 : index
    %c0_97 = arith.constant 0 : index
    %311 = vector.load %arg17[%c0_96, %c0_97] : memref<128x36xf32, #tpu.memory_space<vmem>>, vector<128x36xf32>
    %cst_98 = arith.constant dense<0.000000e+00> : vector<64x36xf32>
    %312 = tpu.matmul %310, %311, %cst_98 {dimension_numbers = #tpu.dot_dimension_numbers<[1], [0], [0], [1], [0, 0, 1, 1], [], []>} : vector<64x128xf32>, vector<128x36xf32>, vector<64x36xf32> -> vector<64x36xf32>
    %c0_99 = arith.constant 0 : index
    %c0_100 = arith.constant 0 : index
    %313 = vector.load %arg18[%c0_99, %c0_100] : memref<1x36xf32, #tpu.memory_space<vmem>>, vector<1x36xf32>
    %314 = vector.broadcast %313 : vector<1x36xf32> to vector<64x36xf32>
    %315 = arith.addf %312, %314 : vector<64x36xf32>
    %cst_101 = arith.constant 0.000000e+00 : f32
    %316 = vector.broadcast %cst_101 : f32 to vector<64x36xf32>
    %317 = arith.maximumf %315, %316 : vector<64x36xf32>
    %c0_102 = arith.constant 0 : index
    %c0_103 = arith.constant 0 : index
    %318 = vector.load %arg19[%c0_102, %c0_103] : memref<36x72xf32, #tpu.memory_space<vmem>>, vector<36x72xf32>
    %cst_104 = arith.constant dense<0.000000e+00> : vector<64x72xf32>
    %319 = tpu.matmul %317, %318, %cst_104 {dimension_numbers = #tpu.dot_dimension_numbers<[1], [0], [0], [1], [0, 0, 1, 1], [], []>} : vector<64x36xf32>, vector<36x72xf32>, vector<64x72xf32> -> vector<64x72xf32>
    %c0_105 = arith.constant 0 : index
    %c0_106 = arith.constant 0 : index
    %320 = vector.load %arg20[%c0_105, %c0_106] : memref<1x72xf32, #tpu.memory_space<vmem>>, vector<1x72xf32>
    %321 = vector.broadcast %320 : vector<1x72xf32> to vector<64x72xf32>
    %322 = arith.addf %319, %321 : vector<64x72xf32>
    %cst_107 = arith.constant 0.000000e+00 : f32
    %323 = vector.broadcast %cst_107 : f32 to vector<64x72xf32>
    %324 = arith.maximumf %322, %323 : vector<64x72xf32>
    %c0_108 = arith.constant 0 : index
    %c0_109 = arith.constant 0 : index
    %325 = vector.load %arg21[%c0_108, %c0_109] : memref<72x150xf32, #tpu.memory_space<vmem>>, vector<72x150xf32>
    %cst_110 = arith.constant dense<0.000000e+00> : vector<64x150xf32>
    %326 = tpu.matmul %324, %325, %cst_110 {dimension_numbers = #tpu.dot_dimension_numbers<[1], [0], [0], [1], [0, 0, 1, 1], [], []>} : vector<64x72xf32>, vector<72x150xf32>, vector<64x150xf32> -> vector<64x150xf32>
    %c0_111 = arith.constant 0 : index
    %c0_112 = arith.constant 0 : index
    %327 = vector.load %arg22[%c0_111, %c0_112] : memref<1x150xf32, #tpu.memory_space<vmem>>, vector<1x150xf32>
    %328 = vector.broadcast %327 : vector<1x150xf32> to vector<64x150xf32>
    %329 = arith.addf %326, %328 : vector<64x150xf32>
    %330 = vector.shape_cast %329 : vector<64x150xf32> to vector<8x8x150xf32>
    %c0_113 = arith.constant 0 : index
    %c0_114 = arith.constant 0 : index
    %c0_115 = arith.constant 0 : index
    %331 = vector.load %arg24[%c0_113, %c0_114, %c0_115] : memref<8x8x150xf32, #tpu.memory_space<vmem>>, vector<8x8x150xf32>
    tpu.vector_store %arg24[%c0_113, %c0_114, %c0_115], %330 {strides = array<i32>} : memref<8x8x150xf32, #tpu.memory_space<vmem>>, vector<8x8x150xf32>,
    %332 = vector.extract_strided_slice %330 {offsets = [0, 7, 0], sizes = [8, 1, 150], strides = [1, 1, 1]} : vector<8x8x150xf32> to vector<8x1x150xf32>
    %333 = vector.shape_cast %332 : vector<8x1x150xf32> to vector<8x150xf32>
    %334 = arith.subf %333, %14 : vector<8x150xf32>
    %c0_116 = arith.constant 0 : index
    %c0_117 = arith.constant 0 : index
    %335 = vector.load %arg23[%c0_116, %c0_117] : memref<8x150xf32, #tpu.memory_space<vmem>>, vector<8x150xf32>
    tpu.vector_store %arg23[%c0_116, %c0_117], %334 {strides = array<i32>} : memref<8x150xf32, #tpu.memory_space<vmem>>, vector<8x150xf32>,
    return
  }
}

</mosaic_0001>

<bundles_post_ra>
// kernel: fake_burgers_forward.1
= control target key start
LH: loop header
LB: loop body
LE: loop exit
PB: predicated region body
PF: predicated region fallthrough
CT: control target
= control target key end

     0   :  { %s6652_s0 = inlined_call_operand.vmem [shape: s32[8,1], index: 0, kind: input, shape index: {}]   ;;  %s6653_s1 = inlined_call_operand.hbm [shape: f32[8,150], index: 1, kind: input, shape index: {}]   ;;  %s6654_s2 = inlined_call_operand.vmem [shape: f32[8,2], index: 2, kind: input, shape index: {}]   ;;  %s6655_s3 = inlined_call_operand.hbm [shape: f32[16,150], index: 3, kind: input, shape index: {}]   ;;  %s6656_s4 = inlined_call_operand.vmem [shape: bf16[150,392], index: 4, kind: input, shape index: {}]   ;;  %s6657_s5 = inlined_call_operand.hbm [shape: f32[1,392], index: 5, kind: input, shape index: {}]   ;;  %s6658_s6 = inlined_call_operand.vmem [shape: bf16[392,240], index: 6, kind: input, shape index: {}]   ;;  %s6659_s7 = inlined_call_operand.hbm [shape: f32[1,240], index: 7, kind: input, shape index: {}]   ;;  %s6660_s8 = inlined_call_operand.vmem [shape: bf16[240,192], index: 8, kind: input, shape index: {}]   ;;  %s6661_s9 = inlined_call_operand.hbm [shape: f32[1,192], index: 9, kind: input, shape index: {}]   ;;  %s6662_s10 = inlined_call_operand.vmem [shape: bf16[192,24], index: 10, kind: input, shape index: {}]   ;;  %s6663_s11 = inlined_call_operand.hbm [shape: f32[1,24], index: 11, kind: input, shape index: {}]   ;;  %s6664_s12 = inlined_call_operand.hbm [shape: f32[24,128], index: 12, kind: input, shape index: {}]   ;;  %s6665_s13 = inlined_call_operand.hbm [shape: f32[1,128], index: 13, kind: input, shape index: {}]   ;;  %s6666_s14 = inlined_call_operand.vmem [shape: f32[2,512], index: 14, kind: input, shape index: {}]   ;;  %s6667_s15 = inlined_call_operand.hbm [shape: bf16[128,512], index: 15, kind: input, shape index: {}]   ;;  %s6668_s16 = inlined_call_operand.vmem [shape: f32[1,512], index: 16, kind: input, shape index: {}]   ;;  %s6669_s17 = inlined_call_operand.vmem [shape: f32[128,36], index: 17, kind: input, shape index: {}]   ;;  %s6670_s18 = inlined_call_operand.vmem [shape: f32[1,36], index: 18, kind: input, shape index: {}]   ;;  %s6671_s19 = inlined_call_operand.vmem [shape: f32[36,72], index: 19, kind: input, shape index: {}]   ;;  %s6672_s20 = inlined_call_operand.vmem [shape: f32[1,72], index: 20, kind: input, shape index: {}]   ;;  %s6673_s21 = inlined_call_operand.hbm [shape: f32[72,150], index: 21, kind: input, shape index: {}]   ;;  %s6674_s22 = inlined_call_operand.vmem [shape: f32[1,150], index: 22, kind: input, shape index: {}]   ;;  %s6675_s23 = inlined_call_operand.hbm [shape: f32[8,150], index: 23, kind: output, shape index: {0}]   ;;  %s6676_s24 = inlined_call_operand.hbm [shape: f32[8,8,150], index: 24, kind: output, shape index: {1}]  }
   0x1   :  { %6686 = sst [smem:[#allocation31_spill]] %s6652_s0 }
   0x2   :  { %6687 = sst [smem:[#allocation32_spill]] %s6653_s1 }
   0x3   :  { %6688 = sst [smem:[#allocation33_spill]] %s6654_s2 }
   0x4   :  { %6689 = sst [smem:[#allocation34_spill]] %s6655_s3 }
   0x5   :  { %6690 = sst [smem:[#allocation35_spill]] %s6656_s4 }
   0x6   :  { %6691 = sst [smem:[#allocation36_spill]] %s6657_s5 }
   0x7   :  { %6692 = sst [smem:[#allocation37_spill]] %s6658_s6 }
   0x8   :  { %6693 = sst [smem:[#allocation38_spill]] %s6659_s7 }
   0x9   :  { %6694 = sst [smem:[#allocation39_spill]] %s6660_s8 }
   0xa   :  { %6695 = sst [smem:[#allocation40_spill]] %s6674_s22 }
   0xb   :  { %6696 = sst [smem:[#allocation41_spill]] %s6675_s23 }
   0xc   :  { %6697 = sst [smem:[#allocation42_spill]] %s6676_s24 }
   0xd   :  { %30 = vsyncpa [#allocation4], 0 }
   0xe   :  { %31 = vsyncpa [#allocation7], 0 }
   0xf   :  { %32 = vsyncpa [#allocation10], 0 }
  0x10   :  { %33 = vsyncpa [#allocation13], 0 }
  0x11   :  { %34 = vsyncpa [#allocation16], 0 }
  0x12   :  { %35 = vsyncpa [#allocation19], 0 }
  0x13   :  { %36 = vsyncpa [#allocation5], 0 }
  0x14   :  { %37 = vsyncpa [#allocation22], 0  ;;  %s5197_s5 = smov [#allocation6]   ;;  %s6698_s6 = sld [smem:[#allocation34_spill]] }
  0x15   :  { %s57_s26 = sshll.u32 %s5197_s5, 4  ;;  %s58_s26 = int_to_ptr.vmem [resolvable:$true] %s57_s26 }
  0x1a   :  { %s4917_s2 = scalar_lea.hbm %s6698_s6, 512 }
  0x1b   :  { %p4918_p0 = scmp.ne.s32.totalorder %s6698_s6, %s4917_s2  ;;  %p4921_p1 = scmp.lt.u32.totalorder %s4917_s2, %s6698_s6 }
  0x1d   :  { %p4923_p2 = pnand %p4921_p1, %p4918_p0 }
  0x1f   :  { %4926 = shalt.err (!%p4923_p2)
}
  0x20   :  { %s4927_s3 = scalar_lea.vmem %s58_s26, 512  ;;  %p4932_p4 = scmp.lt.s32.totalorder %s58_s26, %s58_s26 }
  0x21   :  { %p4928_p3 = scmp.ne.s32.totalorder %s58_s26, %s4927_s3  ;;  %p4933_p5 = scmp.lt.s32.totalorder %s4927_s3, %s4927_s3 }
  0x23   :  { %p4934_p6 = por %p4933_p5, %p4932_p4 }
  0x25   :  { %p4935_p7 = pnand %p4934_p6, %p4928_p3 }
  0x27   :  { %4938 = shalt.err (!%p4935_p7)
}
  0x28   :  { %s5198_s25 = smov 256   ;;  %s5199_s8 = smov 16  }
  0x29   :  { %63 = dma.hbm_to_vmem [thread:$0]  %s6698_s6, 512, %s58_s26, [#allocation7], %s5198_s25, %s5198_s25, %s5199_s8  }
  0x2a   :  { %s5200_s5 = smov [#allocation9]   ;;  %s5201_s28 = smov [#allocation12]  }
  0x2b   :  { %s84_s27 = sshll.u32 %s5200_s5, 4  ;;  %s108_s2 = sshll.u32 %s5201_s28, 4  ;;  %s85_s27 = int_to_ptr.vmem [resolvable:$true] %s84_s27  ;;  %s109_s2 = int_to_ptr.vmem [resolvable:$true] %s108_s2 }
  0x2c   :  { %s6699_s7 = sld [smem:[#allocation38_spill]] }
  0x32   :  { %s4939_s30 = scalar_lea.hbm %s6699_s7, 32 }
  0x33   :  { %p4940_p8 = scmp.ne.s32.totalorder %s6699_s7, %s4939_s30  ;;  %p4943_p9 = scmp.lt.u32.totalorder %s4939_s30, %s6699_s7 }
  0x35   :  { %p4945_p10 = pnand %p4943_p9, %p4940_p8 }
  0x37   :  { %4948 = shalt.err (!%p4945_p10)
}
  0x38   :  { %s4949_s26 = scalar_lea.vmem %s85_s27, 32  ;;  %p4954_p12 = scmp.lt.s32.totalorder %s85_s27, %s85_s27 }
  0x39   :  { %p4950_p11 = scmp.ne.s32.totalorder %s85_s27, %s4949_s26  ;;  %p4955_p13 = scmp.lt.s32.totalorder %s4949_s26, %s4949_s26 }
  0x3b   :  { %p4956_p0 = por %p4955_p13, %p4954_p12 }
  0x3d   :  { %p4957_p1 = pnand %p4956_p0, %p4950_p11 }
  0x3f   :  { %4960 = shalt.err (!%p4957_p1)
}
  0x40   :  { %87 = dma.hbm_to_vmem [thread:$0]  %s6699_s7, 32, %s85_s27, [#allocation10]  }
  0x41   :  { %s4961_s5 = scalar_lea.hbm %s6663_s11, 16 }
  0x42   :  { %p4962_p2 = scmp.ne.s32.totalorder %s6663_s11, %s4961_s5  ;;  %p4965_p3 = scmp.lt.u32.totalorder %s4961_s5, %s6663_s11 }
  0x44   :  { %p4967_p4 = pnand %p4965_p3, %p4962_p2 }
  0x46   :  { %4970 = shalt.err (!%p4967_p4)
}
  0x47   :  { %s4971_s0 = scalar_lea.vmem %s109_s2, 16  ;;  %s4975_s30 = scalar_lea.vmem %s109_s2, 32 }
  0x48   :  { %p4972_p5 = scmp.ne.s32.totalorder %s109_s2, %s4971_s0  ;;  %p4976_p6 = scmp.lt.s32.totalorder %s109_s2, %s109_s2 }
  0x49   :  { %p4977_p7 = scmp.lt.s32.totalorder %s4975_s30, %s4971_s0 }
  0x4b   :  { %p4978_p8 = por %p4977_p7, %p4976_p6 }
  0x4d   :  { %p4979_p9 = pnand %p4978_p8, %p4972_p5 }
  0x4f   :  { %4982 = shalt.err (!%p4979_p9)
}
  0x50   :  { %111 = dma.hbm_to_vmem [thread:$0]  %s6663_s11, 16, %s109_s2, [#allocation13]  }
  0x51   :  { %s5202_s3 = smov [#allocation15]   ;;  %s5203_s6 = smov [#allocation3]  }
  0x52   :  { %s130_s26 = sshll.u32 %s5202_s3, 4  ;;  %s46_s4 = sshll.u32 %s5203_s6, 4  ;;  %s131_s26 = int_to_ptr.vmem [resolvable:$true] %s130_s26  ;;  %s47_s4 = int_to_ptr.vmem [resolvable:$true] %s46_s4 }
  0x53   :  { %s4983_s5 = scalar_lea.hbm %s6665_s13, 16 }
  0x54   :  { %p4984_p10 = scmp.ne.s32.totalorder %s6665_s13, %s4983_s5  ;;  %p4987_p11 = scmp.lt.u32.totalorder %s4983_s5, %s6665_s13 }
  0x56   :  { %p4989_p12 = pnand %p4987_p11, %p4984_p10 }
  0x58   :  { %4992 = shalt.err (!%p4989_p12)
}
  0x59   :  { %s4993_s11 = scalar_lea.vmem %s131_s26, 16  ;;  %s4997_s2 = scalar_lea.vmem %s131_s26, 32 }
  0x5a   :  { %p4994_p13 = scmp.ne.s32.totalorder %s131_s26, %s4993_s11  ;;  %p4998_p0 = scmp.lt.s32.totalorder %s131_s26, %s131_s26 }
  0x5b   :  { %p4999_p1 = scmp.lt.s32.totalorder %s4997_s2, %s4993_s11 }
  0x5d   :  { %p5000_p2 = por %p4999_p1, %p4998_p0 }
  0x5f   :  { %p5001_p3 = pnand %p5000_p2, %p4994_p13 }
  0x61   :  { %5004 = shalt.err (!%p5001_p3)
}
  0x62   :  { %133 = dma.hbm_to_vmem [thread:$0]  %s6665_s13, 16, %s131_s26, [#allocation16]  }
  0x63   :  { %s6700_s3 = sld [smem:[#allocation32_spill]] }
  0x69   :  { %s5005_s6 = scalar_lea.hbm %s6700_s3, 256 }
  0x6a   :  { %p5006_p4 = scmp.ne.s32.totalorder %s6700_s3, %s5005_s6  ;;  %p5009_p5 = scmp.lt.u32.totalorder %s5005_s6, %s6700_s3 }
  0x6c   :  { %p5011_p6 = pnand %p5009_p5, %p5006_p4 }
  0x6e   :  { %5014 = shalt.err (!%p5011_p6)
}
  0x6f   :  { %s5015_s24 = scalar_lea.vmem %s47_s4, 256  ;;  %p5020_p8 = scmp.lt.s32.totalorder %s47_s4, %s47_s4 }
  0x70   :  { %p5016_p7 = scmp.ne.s32.totalorder %s47_s4, %s5015_s24  ;;  %p5021_p9 = scmp.lt.s32.totalorder %s5015_s24, %s5015_s24 }
  0x72   :  { %p5022_p10 = por %p5021_p9, %p5020_p8 }
  0x74   :  { %p5023_p11 = pnand %p5022_p10, %p5016_p7 }
  0x76   :  { %5026 = shalt.err (!%p5023_p11)
}
  0x77   :  { %49 = dma.hbm_to_vmem [thread:$0]  %s6700_s3, 256, %s47_s4, [#allocation4]  }
  0x78   :  { %s5204_s28 = smov [#allocation8]   ;;  %s5205_s11 = smov [#allocation11]  }
  0x79   :  { %s72_s29 = sshll.u32 %s5204_s28, 4  ;;  %s96_s2 = sshll.u32 %s5205_s11, 4  ;;  %s73_s29 = int_to_ptr.vmem [resolvable:$true] %s72_s29  ;;  %s97_s2 = int_to_ptr.vmem [resolvable:$true] %s96_s2 }
  0x7a   :  { %s6701_s27 = sld [smem:[#allocation36_spill]] }
  0x80   :  { %s5027_s7 = scalar_lea.hbm %s6701_s27, 64 }
  0x81   :  { %p5028_p12 = scmp.ne.s32.totalorder %s6701_s27, %s5027_s7  ;;  %p5031_p13 = scmp.lt.u32.totalorder %s5027_s7, %s6701_s27 }
  0x83   :  { %p5033_p0 = pnand %p5031_p13, %p5028_p12 }
  0x85   :  { %5036 = shalt.err (!%p5033_p0)
}
  0x86   :  { %s5037_s4 = scalar_lea.vmem %s73_s29, 64  ;;  %p5042_p2 = scmp.lt.s32.totalorder %s73_s29, %s73_s29 }
  0x87   :  { %p5038_p1 = scmp.ne.s32.totalorder %s73_s29, %s5037_s4  ;;  %p5043_p3 = scmp.lt.s32.totalorder %s5037_s4, %s5037_s4 }
  0x89   :  { %p5044_p4 = por %p5043_p3, %p5042_p2 }
  0x8b   :  { %p5045_p5 = pnand %p5044_p4, %p5038_p1 }
  0x8d   :  { %5048 = shalt.err (!%p5045_p5)
}
  0x8e   :  { %75 = dma.hbm_to_vmem [thread:$0]  %s6701_s27, 64, %s73_s29, [#allocation7]  }
  0x8f   :  { %s5049_s26 = scalar_lea.hbm %s6661_s9, 32 }
  0x90   :  { %p5050_p6 = scmp.ne.s32.totalorder %s6661_s9, %s5049_s26  ;;  %p5053_p7 = scmp.lt.u32.totalorder %s5049_s26, %s6661_s9 }
  0x92   :  { %p5055_p8 = pnand %p5053_p7, %p5050_p6 }
  0x94   :  { %5058 = shalt.err (!%p5055_p8)
}
  0x95   :  { %s5059_s7 = scalar_lea.vmem %s97_s2, 32  ;;  %p5064_p10 = scmp.lt.s32.totalorder %s97_s2, %s97_s2 }
  0x96   :  { %p5060_p9 = scmp.ne.s32.totalorder %s97_s2, %s5059_s7  ;;  %p5065_p11 = scmp.lt.s32.totalorder %s5059_s7, %s5059_s7 }
  0x98   :  { %p5066_p12 = por %p5065_p11, %p5064_p10 }
  0x9a   :  { %p5067_p13 = pnand %p5066_p12, %p5060_p9 }
  0x9c   :  { %5070 = shalt.err (!%p5067_p13)
}
  0x9d   :  { %99 = dma.hbm_to_vmem [thread:$0]  %s6661_s9, 32, %s97_s2, [#allocation10]  }
  0x9e   :  { %s5206_s6 = smov [#allocation14]   ;;  %s5071_s4 = scalar_lea.hbm %s6664_s12, 384 }
  0x9f   :  { %s117_s23 = sshll.u32 %s5206_s6, 4  ;;  %p5072_p0 = scmp.ne.s32.totalorder %s6664_s12, %s5071_s4  ;;  %s118_s23 = int_to_ptr.vmem [resolvable:$true] %s117_s23 }
  0xa0   :  { %p5075_p1 = scmp.lt.u32.totalorder %s5071_s4, %s6664_s12 }
  0xa2   :  { %p5077_p2 = pnand %p5075_p1, %p5072_p0 }
  0xa4   :  { %5080 = shalt.err (!%p5077_p2)
}
  0xa5   :  { %s5081_s26 = scalar_lea.vmem %s118_s23, 384  ;;  %p5086_p4 = scmp.lt.s32.totalorder %s118_s23, %s118_s23 }
  0xa6   :  { %p5082_p3 = scmp.ne.s32.totalorder %s118_s23, %s5081_s26  ;;  %p5087_p5 = scmp.lt.s32.totalorder %s5081_s26, %s5081_s26 }
  0xa8   :  { %p5088_p6 = por %p5087_p5, %p5086_p4 }
  0xaa   :  { %p5089_p7 = pnand %p5088_p6, %p5082_p3 }
  0xac   :  { %5092 = shalt.err (!%p5089_p7)
}
  0xad   :  { %s5207_s9 = smov 128   ;;  %s5208_s2 = smov 8  }
  0xae   :  { %123 = dma.hbm_to_vmem [thread:$0]  %s6664_s12, 384, %s118_s23, [#allocation13], %s5207_s9, %s5207_s9, %s5208_s2  }
  0xaf   :  { %s5209_s0 = smov [#allocation17]   ;;  %s5210_s7 = smov [#allocation18]  }
  0xb0   :  { %s141_s30 = sshll.u32 %s5209_s0, 4  ;;  %s163_s29 = sshll.u32 %s5210_s7, 4  ;;  %s142_s30 = int_to_ptr.vmem [resolvable:$true] %s141_s30  ;;  %s5443_s29 = int_to_ptr.vmem [resolvable:$true] %s163_s29 }
  0xb1   :  { %s5093_s1 = scalar_lea.hbm %s6667_s15, 4096 }
  0xb2   :  { %p5094_p8 = scmp.ne.s32.totalorder %s6667_s15, %s5093_s1  ;;  %p5097_p9 = scmp.lt.u32.totalorder %s5093_s1, %s6667_s15 }
  0xb4   :  { %p5099_p10 = pnand %p5097_p9, %p5094_p8 }
  0xb6   :  { %5102 = shalt.err (!%p5099_p10)
}
  0xb7   :  { %s5103_s12 = scalar_lea.vmem %s142_s30, 4096  ;;  %p5108_p12 = scmp.lt.s32.totalorder %s142_s30, %s142_s30 }
  0xb8   :  { %p5104_p11 = scmp.ne.s32.totalorder %s142_s30, %s5103_s12  ;;  %p5109_p13 = scmp.lt.s32.totalorder %s5103_s12, %s5103_s12 }
  0xba   :  { %p5110_p0 = por %p5109_p13, %p5108_p12 }
  0xbc   :  { %p5111_p1 = pnand %p5110_p0, %p5104_p11 }
  0xbe   :  { %5114 = shalt.err (!%p5111_p1)
}
  0xbf   :  { %147 = dma.hbm_to_vmem [thread:$0]  %s6667_s15, 4096, %s142_s30, [#allocation16], %s5198_s25, %s5198_s25, %s5199_s8  }
  0xc0   :  { %s5115_s9 = scalar_lea.hbm %s6673_s21, 2304 }
  0xc1   :  { %p5116_p2 = scmp.ne.s32.totalorder %s6673_s21, %s5115_s9  ;;  %p5119_p3 = scmp.lt.u32.totalorder %s5115_s9, %s6673_s21 }
  0xc3   :  { %p5121_p4 = pnand %p5119_p3, %p5116_p2 }
  0xc5   :  { %5124 = shalt.err (!%p5121_p4)
}
  0xc6   :  { %s5125_s7 = scalar_lea.vmem %s5443_s29, 2304  ;;  %p5130_p6 = scmp.lt.s32.totalorder %s5443_s29, %s5443_s29 }
  0xc7   :  { %p5126_p5 = scmp.ne.s32.totalorder %s5443_s29, %s5125_s7  ;;  %p5131_p7 = scmp.lt.s32.totalorder %s5125_s7, %s5125_s7 }
  0xc9   :  { %p5132_p8 = por %p5131_p7, %p5130_p6 }
  0xcb   :  { %p5133_p9 = pnand %p5132_p8, %p5126_p5 }
  0xcd   :  { %5136 = shalt.err (!%p5133_p9)
}
  0xce   :  { %169 = dma.hbm_to_vmem [thread:$0]  %s6673_s21, 2304, %s5443_s29, [#allocation19], %s5198_s25, %s5198_s25, %s5199_s8  }
  0xcf   :  { %5181 = dma.done.wait [#allocation4], 256  }
  0xd0   :  { %5182 = vsyncadd [#allocation4], 4294967040 }
  0xd1   :  { %5183 = dma.done.wait [#allocation7], 576  }
  0xd2   :  { %5184 = vsyncadd [#allocation7], 4294966720 }
  0xd3   :  { %5185 = dma.done.wait [#allocation10], 64  }
  0xd4   :  { %5186 = vsyncadd [#allocation10], 4294967232 }
  0xd5   :  { %5187 = dma.done.wait [#allocation13], 400  }
  0xd6   :  { %5188 = vsyncadd [#allocation13], 4294966896 }
  0xd7   :  { %5189 = dma.done.wait [#allocation16], 4112  }
  0xd8   :  { %5190 = vsyncadd [#allocation16], 4294963184 }
  0xd9   :  { %5191 = dma.done.wait [#allocation19], 2304  }
  0xda   :  { %5192 = vsyncadd [#allocation19], 4294964992  ;;  %v5211_v0 = vmov 0   ;;  %v5212_v1 = vmov 0.0   ;;  %s6702_s27 = sld [smem:[#allocation31_spill]]  ;;  %v207_v3 = vld [vmem:[#allocation6 + $0x8] sm:$0xff]  ;;  %v204_v12 = vlaneseq }
  0xdb   :  { %4518 = vset.pattern.permute.xlu0 %v5211_v0  ;;  %285 = vmatprep.mubr.f32.mxu0 %v5212_v1  ;;  %v209_v4 = vld [vmem:[#allocation6 + $0x18] sm:$0xff]  ;;  %v206_v7 = vld [vmem:[#allocation6] sm:$0xff]  ;;  %v208_v8 = vld [vmem:[#allocation6 + $0x10] sm:$0xff]  ;;  %s6703_s5 = sld [smem:[#allocation35_spill]]  ;;  %vm217_vm0 = vcmask 130048   ;;  %vm632_vm3 = vcmask 1042432  }
  0xdc   :  { %365 = vmatprep.mubr.f32.mxu1 %v5212_v1  ;;  %v4413_v6 = vpack.c.bf16 %v209_v4, %v207_v3  ;;  %v4415_v9 = vpack.c.bf16 %v208_v8, %v206_v7  ;;  %v205_v13 = vand.u32 127, %v204_v12  ;;  %s6704_s7 = sld [smem:[#allocation37_spill]]  ;;  %v372_v61 = vld [vmem:[#allocation3] sm:$0xff]  ;;  %v373_v62 = vld [vmem:[#allocation3 + $0x8] sm:$0xff]  ;;  %vm628_vm4 = vcmask 179200   ;;  %s6705_s21 = sld [smem:[#allocation39_spill]] }
  0xdd   :  { %vm1041_vm5 = vcmask 64512   ;;  %vm1045_vm6 = vcmask 1043456   ;;  %vm1330_vm7 = vcmask 916480   ;;  %vm1482_vm8 = vcmask 523264   ;;  %s6706_s9 = sld [smem:[#allocation33_spill]]  ;;  %s6707_s13 = sld [smem:[#allocation40_spill]] }
  0xde   :  { %4414 = vmatprep.subr.bf16.mxu0 %v4413_v6  ;;  %4418 = vmatprep.subr.bf16.mxu1 %v4413_v6  ;;  %vm5214_vm9 = vmmov 0   ;;  %vm1657_vm10 = vcmask 1041408   ;;  %vm1537_vm11 = vcmask 195584   ;;  %vm1653_vm12 = vcmask 15360  }
  0xdf   :  { %4416 = vmatpush1.bf16.msra.mxu0 %v4415_v9  ;;  %4420 = vmatpush1.bf16.msra.mxu1 %v4415_v9  ;;  %vm3572_vm13 = vcmask 293888   ;;  %vm3743_vm14 = vcmask 588800   ;;  %vm3963_vm15 = vcmask 1041409  }
  0xe0   :  { %v203_v2 = vld [vmem:[%s6702_s27] sm:$0xff] }
  0xe1   :  { %v4036_v5 = vadd.s32 4294967295, %v203_v2  ;;  %v4521_v10 = vld [vmem:[%s6703_s5 + $0x4] ss:$16 sps:$4 sm:$0xff]   ;;  %v4524_v11 = vld [vmem:[%s6703_s5 + $0xc] ss:$16 sps:$4 sm:$0xff]  }
  0xe2   :  { %645 = vmatprep.subr.bf16.mxu0 %v4521_v10  ;;  %686 = vmatprep.subr.bf16.mxu1 %v4524_v11  ;;  %v4519_v15 = vld [vmem:[%s6703_s5] ss:$16 sps:$4 sm:$0xff]   ;;  %v4527_v16 = vld [vmem:[%s6703_s5 + $0x24] ss:$16 sps:$4 sm:$0xff]   ;;  %v4522_v19 = vld [vmem:[%s6703_s5 + $0x8] ss:$16 sps:$4 sm:$0xff]  }
  0xe3   :  { %212 = vperm.xlu0 %4518, %v4036_v5   ;;  %v4525_v20 = vld [vmem:[%s6703_s5 + $0x20] ss:$16 sps:$4 sm:$0xff]   ;;  %v4530_v21 = vld [vmem:[%s6703_s5 + $0x2c] ss:$16 sps:$4 sm:$0xff]   ;;  %v4533_v22 = vld [vmem:[%s6703_s5 + $0x44] ss:$16 sps:$4 sm:$0xff]  }
  0xe4   :  { %v4528_v24 = vld [vmem:[%s6703_s5 + $0x28] ss:$16 sps:$4 sm:$0xff]   ;;  %v4531_v25 = vld [vmem:[%s6703_s5 + $0x40] ss:$16 sps:$4 sm:$0xff]   ;;  %v4536_v26 = vld [vmem:[%s6703_s5 + $0x4c] ss:$16 sps:$4 sm:$0xff]  }
  0xe5   :  { %v4539_v27 = vld [vmem:[%s6703_s5 + $0x64] ss:$16 sps:$4 sm:$0xff]   ;;  %v4534_v28 = vld [vmem:[%s6703_s5 + $0x48] ss:$16 sps:$4 sm:$0xff]   ;;  %v4537_v29 = vld [vmem:[%s6703_s5 + $0x60] ss:$16 sps:$4 sm:$0xff]  }
  0xe6   :  { %v4542_v30 = vld [vmem:[%s6703_s5 + $0x6c] ss:$16 sps:$4 sm:$0xff]   ;;  %v4545_v31 = vld [vmem:[%s6703_s5 + $0x84] ss:$16 sps:$4 sm:$0xff]   ;;  %v4540_v32 = vld [vmem:[%s6703_s5 + $0x68] ss:$16 sps:$4 sm:$0xff]  }
  0xe7   :  { %293 = vperm.xlu0 %4518, %v203_v2   ;;  %v4543_v33 = vld [vmem:[%s6703_s5 + $0x80] ss:$16 sps:$4 sm:$0xff]   ;;  %v4548_v34 = vld [vmem:[%s6703_s5 + $0x8c] ss:$16 sps:$4 sm:$0xff]   ;;  %v4551_v35 = vld [vmem:[%s6703_s5 + $0xa4] ss:$16 sps:$4 sm:$0xff]  }
  0xe8   :  { %v4546_v36 = vld [vmem:[%s6703_s5 + $0x88] ss:$16 sps:$4 sm:$0xff]   ;;  %v4549_v37 = vld [vmem:[%s6703_s5 + $0xa0] ss:$16 sps:$4 sm:$0xff]   ;;  %v4554_v38 = vld [vmem:[%s6703_s5 + $0xac] ss:$16 sps:$4 sm:$0xff]  }
  0xe9   :  { %v4557_v39 = vld [vmem:[%s6703_s5 + $0xc4] ss:$16 sps:$4 sm:$0xff]   ;;  %v4552_v40 = vld [vmem:[%s6703_s5 + $0xa8] ss:$16 sps:$4 sm:$0xff]   ;;  %v4555_v41 = vld [vmem:[%s6703_s5 + $0xc0] ss:$16 sps:$4 sm:$0xff]  }
  0xea   :  { %v4560_v42 = vld [vmem:[%s6703_s5 + $0xcc] ss:$16 sps:$4 sm:$0xff]   ;;  %v4563_v43 = vld [vmem:[%s6703_s5 + $0xe4] ss:$16 sps:$4 sm:$0xff]   ;;  %v4558_v44 = vld [vmem:[%s6703_s5 + $0xc8] ss:$16 sps:$4 sm:$0xff]  }
  0xeb   :  { %v4561_v45 = vld [vmem:[%s6703_s5 + $0xe0] ss:$16 sps:$4 sm:$0xff]   ;;  %v4566_v46 = vld [vmem:[%s6703_s5 + $0xec] ss:$16 sps:$4 sm:$0xff]   ;;  %v4569_v47 = vld [vmem:[%s6703_s5 + $0x104] ss:$16 sps:$4 sm:$0xff]  }
  0xec   :  { %v4564_v48 = vld [vmem:[%s6703_s5 + $0xe8] ss:$16 sps:$4 sm:$0xff]   ;;  %v4567_v49 = vld [vmem:[%s6703_s5 + $0x100] ss:$16 sps:$4 sm:$0xff]   ;;  %v4572_v50 = vld [vmem:[%s6703_s5 + $0x10c] ss:$16 sps:$4 sm:$0xff]  }
  0xed   :  { %v4570_v51 = vld [vmem:[%s6703_s5 + $0x108] ss:$16 sps:$4 sm:$0xff]   ;;  %v412_v52 = vld [vmem:[%s6703_s5 + $0x120] sm:$0x77]  ;;  %v4582_v10 = vld [vmem:[%s6704_s7 + $0x14] ss:$8 sps:$4 sm:$0xff]  }
  0xee   :  { %v413_v53 = vld [vmem:[%s6703_s5 + $0x128] sm:$0x77]  ;;  %v4078_v54 = vcombine.high %v412_v52, %v412_v52  ;;  %v4077_v56 = vcombine.low %v412_v52, %v412_v52  ;;  %v4580_v11 = vld [vmem:[%s6704_s7 + $0x10] ss:$8 sps:$4 sm:$0xff]   ;;  %v4668_v52 = vld [vmem:[%s6705_s21 + $0x54] ss:$8 sps:$4 sm:$0xff]  }
  0xef   :  { %v4080_v55 = vcombine.high %v413_v53, %v413_v53  ;;  %v4079_v57 = vcombine.low %v413_v53, %v413_v53  ;;  %v4579_v60 = vld [vmem:[%s6704_s7 + $0x4] ss:$8 sps:$4 sm:$0xff]   ;;  %v4577_v7 = vld [vmem:[%s6704_s7] ss:$8 sps:$4 sm:$0xff]   ;;  %v4666_v53 = vld [vmem:[%s6705_s21 + $0x50] ss:$8 sps:$4 sm:$0xff]  }
  0xf0   :  { %v634_v58 = vsel %vm632_vm3, %v4077_v56, 0  ;;  %v4674_v56 = vld [vmem:[%s6705_s21 + $0x74] ss:$8 sps:$4 sm:$0xff]  }
  0xf1   :  { %v640_v59 = vsel %vm632_vm3, %v4079_v57, 0  ;;  %v4672_v57 = vld [vmem:[%s6705_s21 + $0x70] ss:$8 sps:$4 sm:$0xff]  }
 0x162   :  { %v213_v14 = vpop.permute.xlu0 %212 }
 0x163   :  { %vm214_vm1 = vcmp.eq.s32.totalorder %v205_v13, %v213_v14  ;;  %v4583_v14 = vld [vmem:[%s6704_s7 + $0x20] ss:$8 sps:$4 sm:$0xff]  }
 0x164   :  { %v4037_v17 = vsel %vm214_vm1, 1.0, %v5212_v1  ;;  %vm3969_vm1 = vcmask 1043459  }
 0x165   :  { %4038 = vmatmul.mubr.msk.f32.vlgmr.msra.gmra.mrb[0].mxu0 %vm217_vm0, %v4037_v17  ;;  %v4591_v17 = vld [vmem:[%s6704_s7 + $0x44] ss:$8 sps:$4 sm:$0xff]  }
 0x166   :  { %v294_v18 = vpop.permute.xlu0 %293  ;;  %646 = vmatpush1.bf16.msra.mxu0 %v4519_v15  ;;  %v4588_v15 = vld [vmem:[%s6704_s7 + $0x34] ss:$8 sps:$4 sm:$0xff]  }
 0x167   :  { %vm295_vm2 = vcmp.eq.s32.totalorder %v205_v13, %v294_v18  ;;  %647 = vmatprep.subr.bf16.mxu0 %v4527_v16  ;;  %v4585_v13 = vld [vmem:[%s6704_s7 + $0x24] ss:$8 sps:$4 sm:$0xff]   ;;  %v4586_v16 = vld [vmem:[%s6704_s7 + $0x30] ss:$8 sps:$4 sm:$0xff]   ;;  %v4589_v18 = vld [vmem:[%s6704_s7 + $0x40] ss:$8 sps:$4 sm:$0xff]  }
 0x168   :  { %v4039_v23 = vsel %vm295_vm2, 1.0, %v5212_v1  ;;  %vm3972_vm2 = vcmask 1044484  }
 0x169   :  { %4040 = vmatmul.mubr.msk.f32.vlgmr.msra.gmra.mrb[0].mxu1 %vm217_vm0, %v4039_v23  ;;  %v4600_v23 = vld [vmem:[%s6704_s7 + $0x74] ss:$8 sps:$4 sm:$0xff]   ;;  %vm3966_vm0 = vcmask 1042434  }
 0x16a   :  { %687 = vmatpush1.bf16.msra.mxu1 %v4522_v19  ;;  %648 = vmatpush1.bf16.msra.mxu0 %v4525_v20  ;;  %v4594_v19 = vld [vmem:[%s6704_s7 + $0x54] ss:$8 sps:$4 sm:$0xff]   ;;  %v4592_v20 = vld [vmem:[%s6704_s7 + $0x50] ss:$8 sps:$4 sm:$0xff]  }
 0x16b   :  { %688 = vmatprep.subr.bf16.mxu1 %v4530_v21  ;;  %649 = vmatprep.subr.bf16.mxu0 %v4533_v22  ;;  %v4597_v21 = vld [vmem:[%s6704_s7 + $0x64] ss:$8 sps:$4 sm:$0xff]   ;;  %v4595_v22 = vld [vmem:[%s6704_s7 + $0x60] ss:$8 sps:$4 sm:$0xff]  }
 0x16e   :  { %689 = vmatpush1.bf16.msra.mxu1 %v4528_v24  ;;  %650 = vmatpush1.bf16.msra.mxu0 %v4531_v25  ;;  %v4598_v24 = vld [vmem:[%s6704_s7 + $0x70] ss:$8 sps:$4 sm:$0xff]   ;;  %v4603_v25 = vld [vmem:[%s6704_s7 + $0x84] ss:$8 sps:$4 sm:$0xff]  }
 0x16f   :  { %690 = vmatprep.subr.bf16.mxu1 %v4536_v26  ;;  %651 = vmatprep.subr.bf16.mxu0 %v4539_v27  ;;  %v4601_v26 = vld [vmem:[%s6704_s7 + $0x80] ss:$8 sps:$4 sm:$0xff]   ;;  %v4606_v27 = vld [vmem:[%s6704_s7 + $0x94] ss:$8 sps:$4 sm:$0xff]  }
 0x172   :  { %691 = vmatpush1.bf16.msra.mxu1 %v4534_v28  ;;  %652 = vmatpush1.bf16.msra.mxu0 %v4537_v29  ;;  %v4604_v28 = vld [vmem:[%s6704_s7 + $0x90] ss:$8 sps:$4 sm:$0xff]   ;;  %v4609_v29 = vld [vmem:[%s6704_s7 + $0xa4] ss:$8 sps:$4 sm:$0xff]  }
 0x173   :  { %692 = vmatprep.subr.bf16.mxu1 %v4542_v30  ;;  %653 = vmatprep.subr.bf16.mxu0 %v4545_v31  ;;  %v4607_v30 = vld [vmem:[%s6704_s7 + $0xa0] ss:$8 sps:$4 sm:$0xff]   ;;  %v4612_v31 = vld [vmem:[%s6704_s7 + $0xb4] ss:$8 sps:$4 sm:$0xff]  }
 0x176   :  { %693 = vmatpush1.bf16.msra.mxu1 %v4540_v32  ;;  %654 = vmatpush1.bf16.msra.mxu0 %v4543_v33  ;;  %v4610_v32 = vld [vmem:[%s6704_s7 + $0xb0] ss:$8 sps:$4 sm:$0xff]   ;;  %v4615_v33 = vld [vmem:[%s6704_s7 + $0xc4] ss:$8 sps:$4 sm:$0xff]  }
 0x177   :  { %694 = vmatprep.subr.bf16.mxu1 %v4548_v34  ;;  %655 = vmatprep.subr.bf16.mxu0 %v4551_v35  ;;  %v4613_v34 = vld [vmem:[%s6704_s7 + $0xc0] ss:$8 sps:$4 sm:$0xff]   ;;  %v4618_v35 = vld [vmem:[%s6704_s7 + $0xd4] ss:$8 sps:$4 sm:$0xff]  }
 0x17a   :  { %695 = vmatpush1.bf16.msra.mxu1 %v4546_v36  ;;  %656 = vmatpush1.bf16.msra.mxu0 %v4549_v37  ;;  %v4616_v36 = vld [vmem:[%s6704_s7 + $0xd0] ss:$8 sps:$4 sm:$0xff]   ;;  %v4621_v37 = vld [vmem:[%s6704_s7 + $0xe4] ss:$8 sps:$4 sm:$0xff]  }
 0x17b   :  { %696 = vmatprep.subr.bf16.mxu1 %v4554_v38  ;;  %657 = vmatprep.subr.bf16.mxu0 %v4557_v39  ;;  %v4619_v38 = vld [vmem:[%s6704_s7 + $0xe0] ss:$8 sps:$4 sm:$0xff]   ;;  %v4624_v39 = vld [vmem:[%s6704_s7 + $0xf4] ss:$8 sps:$4 sm:$0xff]  }
 0x17e   :  { %697 = vmatpush1.bf16.msra.mxu1 %v4552_v40  ;;  %658 = vmatpush1.bf16.msra.mxu0 %v4555_v41  ;;  %v4622_v40 = vld [vmem:[%s6704_s7 + $0xf0] ss:$8 sps:$4 sm:$0xff]   ;;  %v4627_v41 = vld [vmem:[%s6704_s7 + $0x104] ss:$8 sps:$4 sm:$0xff]  }
 0x17f   :  { %698 = vmatprep.subr.bf16.mxu1 %v4560_v42  ;;  %659 = vmatprep.subr.bf16.mxu0 %v4563_v43  ;;  %v4651_v42 = vld [vmem:[%s6705_s21] ss:$8 sps:$4 sm:$0xff]   ;;  %v4653_v43 = vld [vmem:[%s6705_s21 + $0x4] ss:$8 sps:$4 sm:$0xff]  }
 0x182   :  { %699 = vmatpush1.bf16.msra.mxu1 %v4558_v44  ;;  %660 = vmatpush1.bf16.msra.mxu0 %v4561_v45  ;;  %v4656_v44 = vld [vmem:[%s6705_s21 + $0x14] ss:$8 sps:$4 sm:$0xff]   ;;  %v4654_v45 = vld [vmem:[%s6705_s21 + $0x10] ss:$8 sps:$4 sm:$0xff]  }
 0x183   :  { %700 = vmatprep.subr.bf16.mxu1 %v4566_v46  ;;  %661 = vmatprep.subr.bf16.mxu0 %v4569_v47  ;;  %v4659_v46 = vld [vmem:[%s6705_s21 + $0x24] ss:$8 sps:$4 sm:$0xff]   ;;  %v4657_v47 = vld [vmem:[%s6705_s21 + $0x20] ss:$8 sps:$4 sm:$0xff]  }
 0x186   :  { %701 = vmatpush1.bf16.msra.mxu1 %v4564_v48  ;;  %662 = vmatpush1.bf16.msra.mxu0 %v4567_v49  ;;  %v4662_v48 = vld [vmem:[%s6705_s21 + $0x34] ss:$8 sps:$4 sm:$0xff]   ;;  %v4660_v49 = vld [vmem:[%s6705_s21 + $0x30] ss:$8 sps:$4 sm:$0xff]  }
 0x187   :  { %702 = vmatprep.subr.bf16.mxu1 %v4572_v50  ;;  %4081 = vmatprep.subr.msk.bf16.mxu0 %vm632_vm3, %v4078_v54  ;;  %v4665_v50 = vld [vmem:[%s6705_s21 + $0x44] ss:$8 sps:$4 sm:$0xff]  }
 0x188   :  { %v4671_v54 = vld [vmem:[%s6705_s21 + $0x64] ss:$8 sps:$4 sm:$0xff]  }
 0x18a   :  { %703 = vmatpush1.bf16.msra.mxu1 %v4570_v51  ;;  %664 = vmatpush1.bf16.msra.mxu0 %v634_v58  ;;  %v4663_v51 = vld [vmem:[%s6705_s21 + $0x40] ss:$8 sps:$4 sm:$0xff]   ;;  %v4677_v58 = vld [vmem:[%s6705_s21 + $0x84] ss:$8 sps:$4 sm:$0xff]  }
 0x18b   :  { %4083 = vmatprep.subr.msk.bf16.mxu1 %vm632_vm3, %v4080_v55  ;;  %1052 = vmatprep.subr.bf16.mxu0 %v4579_v60  ;;  %v4669_v55 = vld [vmem:[%s6705_s21 + $0x60] ss:$8 sps:$4 sm:$0xff]   ;;  %v4680_v60 = vld [vmem:[%s6705_s21 + $0x94] ss:$8 sps:$4 sm:$0xff]   ;;  %vm3975_vm3 = vcmask 1045509  }
 0x18e   :  { %705 = vmatpush1.bf16.msra.mxu1 %v640_v59  ;;  %v4675_v59 = vld [vmem:[%s6705_s21 + $0x80] ss:$8 sps:$4 sm:$0xff]  }
 0x18f   :  { %1334 = vmatprep.subr.bf16.mxu1 %v4653_v43  ;;  %v4640_v43 = vld [vmem:[%s6704_s7 + $0x150] ss:$8 sps:$4 sm:$0xff]  }
 0x238   :  { %v287_v63 = vpop.f32.mrb[0].mxu0 }
 0x239   :  { %v374_v2 = vadd.f32 %v372_v61, %v287_v63  ;;  %v289_v3 = vpop.f32.mrb[1].mxu0  ;;  %v4678_v61 = vld [vmem:[%s6705_s21 + $0x90] ss:$8 sps:$4 sm:$0xff]   ;;  %v4681_v63 = vld [vmem:[%s6705_s21 + $0xa0] ss:$8 sps:$4 sm:$0xff]  }
 0x23a   :  { %v375_v4 = vadd.f32 %v373_v62, %v289_v3  ;;  %v4683_v62 = vld [vmem:[%s6705_s21 + $0xa4] ss:$8 sps:$4 sm:$0xff]   ;;  %v4684_v3 = vld [vmem:[%s6705_s21 + $0xb0] ss:$8 sps:$4 sm:$0xff]  }
 0x23b   :  { %v414_v8 = vpack.c.bf16 %v374_v2, %v374_v2  ;;  %v4686_v2 = vld [vmem:[%s6705_s21 + $0xb4] ss:$8 sps:$4 sm:$0xff]  }
 0x23c   :  { %v415_v5 = vpack.c.bf16 %v375_v4, %v375_v4  ;;  %v5606_v6 = vpop.f32.mrb[0].mxu1  ;;  %v4689_v4 = vld [vmem:[%s6705_s21 + $0xc4] ss:$8 sps:$4 sm:$0xff]  }
 0x23d   :  { %v5611_v9 = vpop.f32.mrb[1].mxu1 }
 0x23e   :  { %4082 = vmatprep.mubr.msk.bf16.mxu0 %vm628_vm4, %v415_v5  ;;  %4084 = vmatprep.mubr.msk.bf16.mxu1 %vm628_vm4, %v415_v5  ;;  %v4687_v5 = vld [vmem:[%s6705_s21 + $0xc0] ss:$8 sps:$4 sm:$0xff]  }
 0x23f   :  { %678 = vmatmul.mubr.bf16.vlgmr.msra.gmra.mrb[4].mxu0 %v414_v8  ;;  %719 = vmatmul.mubr.bf16.vlgmr.msra.gmra.mrb[4].mxu1 %v414_v8 }
 0x240   :  { %1053 = vmatpush1.bf16.msra.mxu0 %v4577_v7  ;;  %1335 = vmatpush1.bf16.msra.mxu1 %v4651_v42  ;;  %v5787_v7 = vshrl.u32 %v204_v12, 7  ;;  %v4642_v42 = vld [vmem:[%s6704_s7 + $0x154] ss:$8 sps:$4 sm:$0xff]  }
 0x241   :  { %1054 = vmatprep.subr.bf16.mxu0 %v4582_v10  ;;  %1336 = vmatprep.subr.bf16.mxu1 %v4656_v44  ;;  %v416_v10 = vld [vmem:[#allocation8] sm:$0xf] }
 0x242   :  { %v5790_v8 = vsub.s32 0, %v5787_v7  ;;  %v428_v44 = vsub.s32 2, %v5787_v7 }
 0x244   :  { %1055 = vmatpush1.bf16.msra.mxu0 %v4580_v11  ;;  %1337 = vmatpush1.bf16.msra.mxu1 %v4654_v45  ;;  %v5793_v11 = vsub.s32 1, %v5787_v7  ;;  %v4645_v45 = vld [vmem:[%s6704_s7 + $0x164] ss:$8 sps:$4 sm:$0xff]  }
 0x245   :  { %1056 = vmatprep.subr.bf16.mxu0 %v4585_v13  ;;  %1338 = vmatprep.subr.bf16.mxu1 %v4659_v46  ;;  %v432_v13 = vsub.s32 3, %v5787_v7  ;;  %v4643_v46 = vld [vmem:[%s6704_s7 + $0x160] ss:$8 sps:$4 sm:$0xff]  }
 0x248   :  { %1057 = vmatpush1.bf16.msra.mxu0 %v4583_v14  ;;  %1339 = vmatpush1.bf16.msra.mxu1 %v4657_v47  ;;  %v421_v14 = vrot.slane %v416_v10, %v5790_v8  ;;  %v429_v47 = vrot.slane %v416_v10, %v428_v44 }
 0x249   :  { %1058 = vmatprep.subr.bf16.mxu0 %v4588_v15  ;;  %1340 = vmatprep.subr.bf16.mxu1 %v4662_v48  ;;  %v425_v15 = vrot.slane %v416_v10, %v5793_v11  ;;  %v4648_v48 = vld [vmem:[%s6704_s7 + $0x174] ss:$8 sps:$4 sm:$0xff]  }
 0x24c   :  { %1059 = vmatpush1.bf16.msra.mxu0 %v4586_v16  ;;  %1341 = vmatpush1.bf16.msra.mxu1 %v4660_v49  ;;  %v433_v16 = vrot.slane %v416_v10, %v432_v13  ;;  %v779_v49 = vld [vmem:[%s6704_s7 + $0x180] sm:$0xff] }
 0x24d   :  { %1060 = vmatprep.subr.bf16.mxu0 %v4591_v17  ;;  %1342 = vmatprep.subr.bf16.mxu1 %v4665_v50  ;;  %v4646_v50 = vld [vmem:[%s6704_s7 + $0x170] ss:$8 sps:$4 sm:$0xff]  }
 0x250   :  { %1061 = vmatpush1.bf16.msra.mxu0 %v4589_v18  ;;  %1343 = vmatpush1.bf16.msra.mxu1 %v4663_v51 }
 0x251   :  { %1062 = vmatprep.subr.bf16.mxu0 %v4594_v19  ;;  %1344 = vmatprep.subr.bf16.mxu1 %v4668_v52  ;;  %v4134_v52 = vcombine.high %v779_v49, %v779_v49 }
 0x254   :  { %1063 = vmatpush1.bf16.msra.mxu0 %v4592_v20  ;;  %1345 = vmatpush1.bf16.msra.mxu1 %v4666_v53  ;;  %v4133_v53 = vcombine.low %v779_v49, %v779_v49  ;;  %v1612_v49 = vld [vmem:[%s6666_s14] sm:$0xff]  ;;  %s5217_s14 = smov [#allocation21]  }
 0x255   :  { %1064 = vmatprep.subr.bf16.mxu0 %v4597_v21  ;;  %1346 = vmatprep.subr.bf16.mxu1 %v4671_v54  ;;  %s4015_s26 = sshll.u32 %s5217_s14, 4  ;;  %s4016_s26 = int_to_ptr.vmem [resolvable:$true] %s4015_s26 }
 0x256   :  { %p5142_p11 = scmp.lt.s32.totalorder %s4016_s26, %s4016_s26 }
 0x258   :  { %1065 = vmatpush1.bf16.msra.mxu0 %v4595_v22  ;;  %1347 = vmatpush1.bf16.msra.mxu1 %v4669_v55  ;;  %v1047_v55 = vsel %vm1045_vm6, %v4133_v53, 0  ;;  %v1636_v53 = vcombine.high %v1612_v49, %v1612_v49 }
 0x259   :  { %1066 = vmatprep.subr.bf16.mxu0 %v4600_v23  ;;  %1348 = vmatprep.subr.bf16.mxu1 %v4674_v56 }
 0x25c   :  { %1067 = vmatpush1.bf16.msra.mxu0 %v4598_v24  ;;  %1349 = vmatpush1.bf16.msra.mxu1 %v4672_v57  ;;  %v4692_v57 = vld [vmem:[%s6705_s21 + $0xd4] ss:$8 sps:$4 sm:$0xff]  }
 0x25d   :  { %1068 = vmatprep.subr.bf16.mxu0 %v4603_v25  ;;  %1350 = vmatprep.subr.bf16.mxu1 %v4677_v58  ;;  %v4690_v58 = vld [vmem:[%s6705_s21 + $0xd0] ss:$8 sps:$4 sm:$0xff]  }
 0x260   :  { %1069 = vmatpush1.bf16.msra.mxu0 %v4601_v26  ;;  %1351 = vmatpush1.bf16.msra.mxu1 %v4675_v59  ;;  %v4695_v59 = vld [vmem:[%s6705_s21 + $0xe4] ss:$8 sps:$4 sm:$0xff]  }
 0x261   :  { %1070 = vmatprep.subr.bf16.mxu0 %v4606_v27  ;;  %1352 = vmatprep.subr.bf16.mxu1 %v4680_v60  ;;  %v4693_v60 = vld [vmem:[%s6705_s21 + $0xe0] ss:$8 sps:$4 sm:$0xff]  }
 0x264   :  { %1071 = vmatpush1.bf16.msra.mxu0 %v4604_v28  ;;  %1353 = vmatpush1.bf16.msra.mxu1 %v4678_v61  ;;  %v784_v61 = vld [vmem:[#allocation9] sm:$0x3] }
 0x265   :  { %1072 = vmatprep.subr.bf16.mxu0 %v4609_v29  ;;  %1354 = vmatprep.subr.bf16.mxu1 %v4683_v62  ;;  %v789_v62 = vrot.slane %v784_v61, %v5790_v8 }
 0x268   :  { %1073 = vmatpush1.bf16.msra.mxu0 %v4607_v30  ;;  %1355 = vmatpush1.bf16.msra.mxu1 %v4681_v63  ;;  %v793_v63 = vrot.slane %v784_v61, %v5793_v11  ;;  %v5932_v61 = vld [vmem:[#allocation17 + $0x20] ss:$16 sps:$4 sm:$0xff]  }
 0x269   :  { %1074 = vmatprep.subr.bf16.mxu0 %v4612_v31  ;;  %1356 = vmatprep.subr.bf16.mxu1 %v4686_v2  ;;  %v4625_v31 = vld [vmem:[%s6704_s7 + $0x100] ss:$8 sps:$4 sm:$0xff]  }
 0x26c   :  { %1075 = vmatpush1.bf16.msra.mxu0 %v4610_v32  ;;  %1357 = vmatpush1.bf16.msra.mxu1 %v4684_v3 }
 0x26d   :  { %1076 = vmatprep.subr.bf16.mxu0 %v4615_v33  ;;  %1358 = vmatprep.subr.bf16.mxu1 %v4689_v4  ;;  %v4630_v33 = vld [vmem:[%s6704_s7 + $0x114] ss:$8 sps:$4 sm:$0xff]  }
 0x270   :  { %1077 = vmatpush1.bf16.msra.mxu0 %v4613_v34  ;;  %1359 = vmatpush1.bf16.msra.mxu1 %v4687_v5 }
 0x271   :  { %1078 = vmatprep.subr.bf16.mxu0 %v4618_v35  ;;  %v4628_v35 = vld [vmem:[%s6704_s7 + $0x110] ss:$8 sps:$4 sm:$0xff]   ;;  %1360 = vmatprep.subr.bf16.mxu1 %v4692_v57 }
 0x274   :  { %1079 = vmatpush1.bf16.msra.mxu0 %v4616_v36  ;;  %v4633_v36 = vld [vmem:[%s6704_s7 + $0x124] ss:$8 sps:$4 sm:$0xff]   ;;  %1361 = vmatpush1.bf16.msra.mxu1 %v4690_v58 }
 0x275   :  { %1080 = vmatprep.subr.bf16.mxu0 %v4621_v37  ;;  %v4631_v37 = vld [vmem:[%s6704_s7 + $0x120] ss:$8 sps:$4 sm:$0xff]   ;;  %1362 = vmatprep.subr.bf16.mxu1 %v4695_v59  ;;  %v5927_v58 = vld [vmem:[#allocation17] ss:$16 sps:$4 sm:$0xff]  }
 0x278   :  { %1081 = vmatpush1.bf16.msra.mxu0 %v4619_v38  ;;  %v4636_v38 = vld [vmem:[%s6704_s7 + $0x134] ss:$8 sps:$4 sm:$0xff]   ;;  %1363 = vmatpush1.bf16.msra.mxu1 %v4693_v60  ;;  %v5929_v60 = vld [vmem:[#allocation17 + $0x24] ss:$16 sps:$4 sm:$0xff]  }
 0x279   :  { %1082 = vmatprep.subr.bf16.mxu0 %v4624_v39  ;;  %v4634_v39 = vld [vmem:[%s6704_s7 + $0x130] ss:$8 sps:$4 sm:$0xff]   ;;  %1486 = vmatprep.subr.bf16.mxu1 %v5211_v0 }
 0x27c   :  { %1083 = vmatpush1.bf16.msra.mxu0 %v4622_v40  ;;  %v4639_v40 = vld [vmem:[%s6704_s7 + $0x144] ss:$8 sps:$4 sm:$0xff]  }
 0x27d   :  { %1093 = vmatprep.subr.bf16.mxu0 %v4627_v41  ;;  %v4637_v41 = vld [vmem:[%s6704_s7 + $0x140] ss:$8 sps:$4 sm:$0xff]  }
 0x312   :  { %v679_v17 = vpop.f32.mrb[4].mxu0  ;;  %v720_v18 = vpop.f32.mrb[4].mxu1 }
 0x313   :  { %v680_v12 = vadd.f32 %v679_v17, %v421_v14  ;;  %v681_v19 = vpop.f32.mrb[5].mxu0  ;;  %v722_v20 = vpop.f32.mrb[5].mxu1  ;;  %v721_v51 = vadd.f32 %v720_v18, %v429_v47  ;;  %v4696_v18 = vld [vmem:[%s6662_s10] sm:$0xff]  }
 0x314   :  { %v682_v21 = vadd.f32 %v681_v19, %v425_v15  ;;  %v723_v22 = vadd.f32 %v722_v20, %v433_v16  ;;  %v683_v23 = vpop.f32.mrb[6].mxu0  ;;  %v724_v24 = vpop.f32.mrb[6].mxu1  ;;  %v4697_v19 = vld [vmem:[%s6662_s10 + $0x8] sm:$0xff]   ;;  %v4698_v20 = vld [vmem:[%s6662_s10 + $0x10] sm:$0xff]  }
 0x315   :  { %v727_v25 = vmax.f32 %v680_v12, 0.0  ;;  %v684_v26 = vpop.f32.mrb[7].mxu0  ;;  %v725_v27 = vpop.f32.mrb[7].mxu1  ;;  %v729_v54 = vmax.f32 %v721_v51, 0.0  ;;  %v4701_v23 = vld [vmem:[%s6662_s10 + $0x28] sm:$0xff]   ;;  %v4702_v24 = vld [vmem:[%s6662_s10 + $0x30] sm:$0xff]  }
 0x316   :  { %v728_v28 = vmax.f32 %v682_v21, 0.0  ;;  %v730_v29 = vmax.f32 %v723_v22, 0.0  ;;  %v4699_v21 = vld [vmem:[%s6662_s10 + $0x18] sm:$0xff]   ;;  %v4700_v22 = vld [vmem:[%s6662_s10 + $0x20] sm:$0xff]   ;;  %v4705_v27 = vld [vmem:[%s6662_s10 + $0x48] sm:$0xff]  }
 0x317   :  { %v780_v32 = vpack.c.bf16 %v727_v25, %v727_v25  ;;  %v782_v56 = vpack.c.bf16 %v729_v54, %v729_v54  ;;  %v4703_v25 = vld [vmem:[%s6662_s10 + $0x38] sm:$0xff]   ;;  %v4704_v26 = vld [vmem:[%s6662_s10 + $0x40] sm:$0xff]  }
 0x318   :  { %v781_v30 = vpack.c.bf16 %v728_v28, %v728_v28  ;;  %v783_v34 = vpack.c.bf16 %v730_v29, %v730_v29  ;;  %v4706_v28 = vld [vmem:[%s6662_s10 + $0x50] sm:$0xff]   ;;  %v4707_v29 = vld [vmem:[%s6662_s10 + $0x58] sm:$0xff]  }
 0x31a   :  { %1084 = vmatprep.mubr.bf16.mxu0 %v781_v30  ;;  %v1527_v30 = vld [vmem:[#allocation14] sm:$0xff] }
 0x31b   :  { %1085 = vmatmul.mubr.bf16.vlgmr.msra.gmra.mrb[8].mxu0 %v780_v32  ;;  %v5213_v32 = vmov 0.0|0.0  }
 0x31c   :  { %1094 = vmatpush1.bf16.msra.mxu0 %v4625_v31  ;;  %4136 = vmatprep.mubr.msk.bf16.mxu0 %vm1041_vm5, %v783_v34  ;;  %v1528_v31 = vld [vmem:[#allocation14 + $0x8] sm:$0xff]  ;;  %v1168_v34 = vld [vmem:[#allocation11] sm:$0x3]  ;;  %vm3978_vm5 = vcmask 1046534  }
 0x31d   :  { %1095 = vmatprep.subr.bf16.mxu0 %v4630_v33  ;;  %v4422_v33 = vpack.c.bf16 %v1528_v31, %v1527_v30  ;;  %v5990_v30 = vld [vmem:[#allocation17 + $0x48] ss:$16 sps:$4 sm:$0xff]   ;;  %v5993_v31 = vld [vmem:[#allocation17 + $0x6c] ss:$16 sps:$4 sm:$0xff]  }
 0x320   :  { %1096 = vmatpush1.bf16.msra.mxu0 %v4628_v35  ;;  %v1173_v35 = vrot.slane %v1168_v34, %v5790_v8 }
 0x321   :  { %1097 = vmatprep.subr.bf16.mxu0 %v4633_v36  ;;  %v1177_v36 = vrot.slane %v1168_v34, %v5793_v11  ;;  %v6002_v34 = vld [vmem:[#allocation17 + $0x88] ss:$16 sps:$4 sm:$0xff]  }
 0x324   :  { %1098 = vmatpush1.bf16.msra.mxu0 %v4631_v37 }
 0x325   :  { %1099 = vmatprep.subr.bf16.mxu0 %v4636_v38 }
 0x328   :  { %1100 = vmatpush1.bf16.msra.mxu0 %v4634_v39 }
 0x329   :  { %1101 = vmatprep.subr.bf16.mxu0 %v4639_v40 }
 0x32c   :  { %1102 = vmatpush1.bf16.msra.mxu0 %v4637_v41 }
 0x32d   :  { %1103 = vmatprep.subr.bf16.mxu0 %v4642_v42 }
 0x330   :  { %1104 = vmatpush1.bf16.msra.mxu0 %v4640_v43 }
 0x331   :  { %1105 = vmatprep.subr.bf16.mxu0 %v4645_v45 }
 0x334   :  { %1106 = vmatpush1.bf16.msra.mxu0 %v4643_v46 }
 0x335   :  { %1107 = vmatprep.subr.bf16.mxu0 %v4648_v48  ;;  %v1529_v48 = vld [vmem:[#allocation14 + $0x10] sm:$0xff] }
 0x338   :  { %1108 = vmatpush1.bf16.msra.mxu0 %v4646_v50  ;;  %v5215_v50 = vmov 1983009808  }
 0x339   :  { %4135 = vmatprep.subr.msk.bf16.mxu0 %vm1045_vm6, %v4134_v52  ;;  %v1638_v51 = vunpack.c.l.s4 %v5215_v50 }
 0x33b   :  { %v1639_v52 = vunpack.c.0.s8 %v1638_v51 }
 0x33c   :  { %1110 = vmatpush1.bf16.msra.mxu0 %v1047_v55  ;;  %v5924_v55 = vld [vmem:[#allocation17 + $0x4] ss:$16 sps:$4 sm:$0xff]  }
 0x33d   :  { %4421 = vmatprep.subr.bf16.mxu0 %v5213_v32  ;;  %v1642_v54 = vsub.s32 %v1639_v52, %v5787_v7  ;;  %v5996_v32 = vld [vmem:[#allocation17 + $0x68] ss:$16 sps:$4 sm:$0xff]  }
 0x33f   :  { %1126 = vmatmul.mubr.bf16.vlgmr.msra.gmra.mrb[8].mxu0 %v782_v56  ;;  %v1643_v56 = vrot.slane %v1612_v49, %v1642_v54  ;;  %v1650_v57 = vrot.slane %v1636_v53, %v1642_v54  ;;  %v1613_v53 = vld [vmem:[%s6668_s16] sm:$0xf] }
 0x340   :  { %4423 = vmatpush3.bf16.msra.mxu0 %v4422_v33  ;;  %4344 = vmatprep.mubr.msk.f32.mxu0 %vm5214_vm9, %v5212_v1  ;;  %v5999_v33 = vld [vmem:[#allocation17 + $0x8c] ss:$16 sps:$4 sm:$0xff]   ;;  %v1618_v54 = vrot.slane %v1613_v53, %v5790_v8 }
 0x341   :  { %4342 = vmatprep.subr.mxu0 %v5212_v1  ;;  %v1651_v59 = vcombine.high %v1643_v56, %v1643_v56 }
 0x344   :  { %4343 = vmatpush3.msra.mxu0 %v1529_v48 }
 0x345   :  { %4184 = vmatprep.subr.msk.mxu0 %vm1657_vm10, %v1651_v59 }
 0x412   :  { %v1127_v2 = vpop.f32.mrb[8].mxu0 }
 0x413   :  { %v4490_v3 = vadd.f32 %v1127_v2, %v789_v62  ;;  %v1129_v4 = vpop.f32.mrb[9].mxu0  ;;  %v5936_v62 = vld [vmem:[#allocation17 + $0x44] ss:$16 sps:$4 sm:$0xff]  }
 0x414   :  { %v4491_v5 = vadd.f32 %v1129_v4, %v793_v63  ;;  %v1131_v10 = vpop.f32.mrb[10].mxu0  ;;  %v5939_v63 = vld [vmem:[#allocation17 + $0x40] ss:$16 sps:$4 sm:$0xff]   ;;  %v5942_v2 = vld [vmem:[#allocation17 + $0x64] ss:$16 sps:$4 sm:$0xff]  }
 0x415   :  { %v1134_v14 = vmax.f32 %v4490_v3, 0.0  ;;  %v1132_v15 = vpop.f32.mrb[11].mxu0  ;;  %v5945_v3 = vld [vmem:[#allocation17 + $0x60] ss:$16 sps:$4 sm:$0xff]   ;;  %v5948_v4 = vld [vmem:[#allocation17 + $0x84] ss:$16 sps:$4 sm:$0xff]  }
 0x416   :  { %v1135_v16 = vmax.f32 %v4491_v5, 0.0  ;;  %v5951_v5 = vld [vmem:[#allocation17 + $0x80] ss:$16 sps:$4 sm:$0xff]   ;;  %v5954_v10 = vld [vmem:[#allocation17 + $0xa4] ss:$16 sps:$4 sm:$0xff]  }
 0x417   :  { %v1166_v12 = vpack.c.bf16 %v1134_v14, %v1134_v14  ;;  %v5957_v14 = vld [vmem:[#allocation17 + $0xa0] ss:$16 sps:$4 sm:$0xff]   ;;  %v5960_v15 = vld [vmem:[#allocation17 + $0xc4] ss:$16 sps:$4 sm:$0xff]  }
 0x418   :  { %v1167_v17 = vpack.c.bf16 %v1135_v16, %v1135_v16  ;;  %v5963_v16 = vld [vmem:[#allocation17 + $0xc0] ss:$16 sps:$4 sm:$0xff]  }
 0x41a   :  { %4167 = vmatprep.mubr.msk.bf16.mxu1 %vm1330_vm7, %v1167_v17  ;;  %v4168_v17 = vld [vmem:[#allocation12] ss:$0 sm:$0xff] }
 0x41b   :  { %1367 = vmatmul.mubr.bf16.vlgmr.msra.gmra.mrb[8].mxu1 %v1166_v12 }
 0x41c   :  { %1487 = vmatpush1.bf16.msra.mxu1 %v4696_v18 }
 0x41d   :  { %1488 = vmatprep.subr.bf16.mxu1 %v5211_v0 }
 0x420   :  { %1489 = vmatpush1.bf16.msra.mxu1 %v4697_v19 }
 0x421   :  { %1490 = vmatprep.subr.bf16.mxu1 %v5211_v0 }
 0x424   :  { %1491 = vmatpush1.bf16.msra.mxu1 %v4698_v20 }
 0x425   :  { %1492 = vmatprep.subr.bf16.mxu1 %v5211_v0 }
 0x428   :  { %1493 = vmatpush1.bf16.msra.mxu1 %v4699_v21 }
 0x429   :  { %1494 = vmatprep.subr.bf16.mxu1 %v5211_v0 }
 0x42c   :  { %1495 = vmatpush1.bf16.msra.mxu1 %v4700_v22 }
 0x42d   :  { %1496 = vmatprep.subr.bf16.mxu1 %v5211_v0 }
 0x430   :  { %1497 = vmatpush1.bf16.msra.mxu1 %v4701_v23  ;;  %v1652_v23 = vcombine.high %v1650_v57, %v1650_v57 }
 0x431   :  { %1498 = vmatprep.subr.bf16.mxu1 %v5211_v0 }
 0x434   :  { %1499 = vmatpush1.bf16.msra.mxu1 %v4702_v24  ;;  %v1611_v24 = vld [vmem:[%s6706_s9] sm:$0xff]  ;;  %s5137_s9 = scalar_lea.vmem %s4016_s26, 2048 }
 0x435   :  { %1500 = vmatprep.subr.bf16.mxu1 %v5211_v0  ;;  %p5138_p10 = scmp.ne.s32.totalorder %s4016_s26, %s5137_s9  ;;  %p5143_p12 = scmp.lt.s32.totalorder %s5137_s9, %s5137_s9 }
 0x437   :  { %p5144_p13 = por %p5143_p12, %p5142_p11 }
 0x438   :  { %1501 = vmatpush1.bf16.msra.mxu1 %v4703_v25  ;;  %v5973_v25 = vld [vmem:[#allocation17 + $0xc] ss:$16 sps:$4 sm:$0xff]  }
 0x439   :  { %1502 = vmatprep.subr.bf16.mxu1 %v5211_v0  ;;  %p5145_p0 = pnand %p5144_p13, %p5138_p10 }
 0x43c   :  { %1503 = vmatpush1.bf16.msra.mxu1 %v4704_v26  ;;  %v5977_v26 = vld [vmem:[#allocation17 + $0x8] ss:$16 sps:$4 sm:$0xff]  }
 0x43d   :  { %1504 = vmatprep.subr.bf16.mxu1 %v5211_v0 }
 0x440   :  { %1505 = vmatpush1.bf16.msra.mxu1 %v4705_v27  ;;  %v5980_v27 = vld [vmem:[#allocation17 + $0x2c] ss:$16 sps:$4 sm:$0xff]  }
 0x441   :  { %1506 = vmatprep.subr.bf16.mxu1 %v5211_v0 }
 0x444   :  { %1507 = vmatpush1.bf16.msra.mxu1 %v4706_v28  ;;  %v5983_v28 = vld [vmem:[#allocation17 + $0x28] ss:$16 sps:$4 sm:$0xff]  }
 0x445   :  { %1508 = vmatprep.subr.bf16.mxu1 %v5211_v0 }
 0x448   :  { %1509 = vmatpush1.bf16.msra.mxu1 %v4707_v29  ;;  %v5987_v29 = vld [vmem:[#allocation17 + $0x4c] ss:$16 sps:$4 sm:$0xff]  }
 0x449   :  { %2001 = vmatprep.subr.bf16.mxu1 %v5924_v55 }
 0x4ee   :  { %v1368_v37 = vpop.f32.mrb[8].mxu1 }
 0x4ef   :  { %v1369_v38 = vadd.f32 %v1368_v37, %v1173_v35  ;;  %v1370_v39 = vpop.f32.mrb[9].mxu1  ;;  %v6005_v35 = vld [vmem:[#allocation17 + $0xac] ss:$16 sps:$4 sm:$0xff]  }
 0x4f0   :  { %v1371_v40 = vadd.f32 %v1370_v39, %v1177_v36  ;;  %v1372_v41 = vpop.f32.mrb[10].mxu1  ;;  %v6008_v36 = vld [vmem:[#allocation17 + $0xa8] ss:$16 sps:$4 sm:$0xff]   ;;  %v6011_v37 = vld [vmem:[#allocation17 + $0xcc] ss:$16 sps:$4 sm:$0xff]  }
 0x4f1   :  { %v1375_v42 = vmax.f32 %v1369_v38, 0.0  ;;  %v1373_v43 = vpop.f32.mrb[11].mxu1  ;;  %v6014_v38 = vld [vmem:[#allocation17 + $0xc8] ss:$16 sps:$4 sm:$0xff]   ;;  %v6018_v39 = vld [vmem:[#allocation17 + $0xe4] ss:$16 sps:$4 sm:$0xff]  }
 0x4f2   :  { %v1376_v45 = vmax.f32 %v1371_v40, 0.0  ;;  %v6020_v40 = vld [vmem:[#allocation17 + $0xec] ss:$16 sps:$4 sm:$0xff]   ;;  %v6022_v41 = vld [vmem:[#allocation17 + $0xe0] ss:$16 sps:$4 sm:$0xff]  }
 0x4f3   :  { %v1401_v47 = vpack.c.bf16 %v1375_v42, %v1375_v42  ;;  %v6024_v42 = vld [vmem:[#allocation17 + $0xe8] ss:$16 sps:$4 sm:$0xff]   ;;  %v4182_v43 = vld [vmem:[#allocation15] ss:$0 sm:$0xff] }
 0x4f4   :  { %v1402_v46 = vpack.c.bf16 %v1376_v45, %v1376_v45 }
 0x4f6   :  { %4181 = vmatprep.mubr.msk.bf16.mxu1 %vm1482_vm8, %v1402_v46 }
 0x4f7   :  { %1519 = vmatmul.mubr.bf16.vlgmr.msra.gmra.mrb[12].mxu1 %v1401_v47 }
 0x4f8   :  { %2033 = vmatprep.mubr.bf16.mxu1 %v5211_v0  ;;  %2002 = vmatpush1.bf16.msra.mxu1 %v5927_v58 }
 0x4f9   :  { %2003 = vmatprep.subr.bf16.mxu1 %v5929_v60 }
 0x4fc   :  { %2004 = vmatpush1.bf16.msra.mxu1 %v5932_v61 }
 0x4fd   :  { %2005 = vmatprep.subr.bf16.mxu1 %v5936_v62 }
 0x500   :  { %2006 = vmatpush1.bf16.msra.mxu1 %v5939_v63 }
 0x501   :  { %2007 = vmatprep.subr.bf16.mxu1 %v5942_v2 }
 0x504   :  { %2008 = vmatpush1.bf16.msra.mxu1 %v5945_v3 }
 0x505   :  { %2009 = vmatprep.subr.bf16.mxu1 %v5948_v4 }
 0x508   :  { %2010 = vmatpush1.bf16.msra.mxu1 %v5951_v5 }
 0x509   :  { %2011 = vmatprep.subr.bf16.mxu1 %v5954_v10 }
 0x50c   :  { %2012 = vmatpush1.bf16.msra.mxu1 %v5957_v14 }
 0x50d   :  { %2013 = vmatprep.subr.bf16.mxu1 %v5960_v15 }
 0x510   :  { %2014 = vmatpush1.bf16.msra.mxu1 %v5963_v16 }
 0x511   :  { %2015 = vmatprep.subr.bf16.mxu1 %v6018_v39 }
 0x514   :  { %2016 = vmatpush1.bf16.msra.mxu1 %v6022_v41 }
 0x515   :  { %2178 = vmatprep.subr.bf16.mxu1 %v5924_v55 }
 0x5ca   :  { %v1520_v18 = vpop.f32.mrb[12].mxu1 }
 0x5cb   :  { %v1521_v12 = vadd.f32 %v4168_v17, %v1520_v18  ;;  %v1522_v19 = vpop.f32.mrb[13].mxu1 }
 0x5cc   :  { %v1523_v20 = vpop.f32.mrb[14].mxu1 }
 0x5cd   :  { %v1526_v21 = vmax.f32 %v1521_v12, 0.0  ;;  %v1524_v22 = vpop.f32.mrb[15].mxu1 }
 0x5cf   :  { %4345 = vmatmul.mubr.msk.f32.vlgmr.msra.gmra.mrb[2].mxu0 %vm1537_vm11, %v1526_v21  ;;  %v1630_v21 = vrot.slane %v1613_v53, %v432_v13 }
 0x5d0   :  { %4185 = vmatpush1.msk.msra.mxu0 %vm1657_vm10, %v1643_v56  ;;  %1730 = vmatprep.mubr.f32.mxu0 %v5212_v1  ;;  %v1622_v56 = vrot.slane %v1613_v53, %v5793_v11 }
 0x5d1   :  { %4187 = vmatprep.subr.msk.mxu0 %vm1657_vm10, %v1652_v23 }
 0x5d3   :  { %4186 = vmatmul.mubr.msk.f32.vlgmr.msra.gmra.mrb[12].mxu0 %vm1653_vm12, %v1611_v24 }
 0x5d4   :  { %4188 = vmatpush1.msk.msra.mxu0 %vm1657_vm10, %v1650_v57  ;;  %1801 = vmatprep.mubr.f32.mxu0 %v5212_v1 }
 0x5d5   :  { %2042 = vmatprep.subr.bf16.mxu0 %v5973_v25 }
 0x5d7   :  { %4189 = vmatmul.mubr.msk.f32.vlgmr.msra.gmra.mrb[14].mxu0 %vm1653_vm12, %v1611_v24 }
 0x5d8   :  { %2043 = vmatpush1.bf16.msra.mxu0 %v5977_v26  ;;  %2074 = vmatprep.mubr.bf16.mxu0 %v5211_v0 }
 0x5d9   :  { %2044 = vmatprep.subr.bf16.mxu0 %v5980_v27 }
 0x5dc   :  { %2045 = vmatpush1.bf16.msra.mxu0 %v5983_v28 }
 0x5dd   :  { %2046 = vmatprep.subr.bf16.mxu0 %v5987_v29 }
 0x5e0   :  { %2047 = vmatpush1.bf16.msra.mxu0 %v5990_v30 }
 0x5e1   :  { %2048 = vmatprep.subr.bf16.mxu0 %v5993_v31 }
 0x5e4   :  { %2049 = vmatpush1.bf16.msra.mxu0 %v5996_v32 }
 0x5e5   :  { %2050 = vmatprep.subr.bf16.mxu0 %v5999_v33 }
 0x5e8   :  { %2051 = vmatpush1.bf16.msra.mxu0 %v6002_v34 }
 0x5e9   :  { %2052 = vmatprep.subr.bf16.mxu0 %v6005_v35 }
 0x5ec   :  { %2053 = vmatpush1.bf16.msra.mxu0 %v6008_v36 }
 0x5ed   :  { %2054 = vmatprep.subr.bf16.mxu0 %v6011_v37 }
 0x5f0   :  { %2055 = vmatpush1.bf16.msra.mxu0 %v6014_v38 }
 0x5f1   :  { %2056 = vmatprep.subr.bf16.mxu0 %v6020_v40 }
 0x5f4   :  { %2057 = vmatpush1.bf16.msra.mxu0 %v6024_v42 }
 0x5f5   :  { %2219 = vmatprep.subr.bf16.mxu0 %v5973_v25 }
 0x6a2   :  { %v1607_v45 = vpop.f32.mrb[2].mxu0 }
 0x6a3   :  { %v6032_v46 = vadd.f32 %v4182_v43, %v1607_v45  ;;  %v4346_v47 = vpop.f32.mrb[3].mxu0 }
 0x6a5   :  { %v1840_v48 = vpack.c.bf16 %v6032_v46, %v6032_v46 }
 0x6a6   :  { %v1732_v49 = vpop.f32.mrb[12].mxu0 }
 0x6a7   :  { %2034 = vmatmul.mubr.bf16.vlgmr.msra.gmra.mrb[16].mxu1 %v1840_v48  ;;  %2075 = vmatmul.mubr.bf16.vlgmr.msra.gmra.mrb[16].mxu0 %v1840_v48  ;;  %v1734_v50 = vpop.f32.mrb[13].mxu0  ;;  %v6075_v57 = vadd.f32 %v1732_v49, %v1618_v54 }
 0x6a8   :  { %2179 = vmatpush1.bf16.msra.mxu1 %v5927_v58  ;;  %2220 = vmatpush1.bf16.msra.mxu0 %v5977_v26  ;;  %v6077_v59 = vadd.f32 %v1734_v50, %v1622_v56  ;;  %v1626_v50 = vrot.slane %v1613_v53, %v428_v44 }
 0x6a9   :  { %2180 = vmatprep.subr.bf16.mxu1 %v5929_v60  ;;  %2221 = vmatprep.subr.bf16.mxu0 %v5980_v27 }
 0x6aa   :  { %v1803_v51 = vpop.f32.mrb[14].mxu0  ;;  %2210 = vmatprep.mubr.bf16.mxu1 %v5211_v0  ;;  %2251 = vmatprep.mubr.bf16.mxu0 %v5211_v0 }
 0x6ab   :  { %v1805_v52 = vpop.f32.mrb[15].mxu0  ;;  %v6088_v56 = vadd.f32 %v1803_v51, %v1626_v50 }
 0x6ac   :  { %2181 = vmatpush1.bf16.msra.mxu1 %v5932_v61  ;;  %2222 = vmatpush1.bf16.msra.mxu0 %v5983_v28  ;;  %v6083_v49 = vadd.f32 %v1805_v52, %v1630_v21 }
 0x6ad   :  { %2182 = vmatprep.subr.bf16.mxu1 %v5936_v62  ;;  %2223 = vmatprep.subr.bf16.mxu0 %v5987_v29 }
 0x6b0   :  { %2183 = vmatpush1.bf16.msra.mxu1 %v5939_v63  ;;  %2224 = vmatpush1.bf16.msra.mxu0 %v5990_v30 }
 0x6b1   :  { %2184 = vmatprep.subr.bf16.mxu1 %v5942_v2  ;;  %2225 = vmatprep.subr.bf16.mxu0 %v5993_v31 }
 0x6b4   :  { %2185 = vmatpush1.bf16.msra.mxu1 %v5945_v3  ;;  %2226 = vmatpush1.bf16.msra.mxu0 %v5996_v32 }
 0x6b5   :  { %2186 = vmatprep.subr.bf16.mxu1 %v5948_v4  ;;  %2227 = vmatprep.subr.bf16.mxu0 %v5999_v33 }
 0x6b8   :  { %2187 = vmatpush1.bf16.msra.mxu1 %v5951_v5  ;;  %2228 = vmatpush1.bf16.msra.mxu0 %v6002_v34 }
 0x6b9   :  { %2188 = vmatprep.subr.bf16.mxu1 %v5954_v10  ;;  %2229 = vmatprep.subr.bf16.mxu0 %v6005_v35 }
 0x6bc   :  { %2189 = vmatpush1.bf16.msra.mxu1 %v5957_v14  ;;  %2230 = vmatpush1.bf16.msra.mxu0 %v6008_v36 }
 0x6bd   :  { %2190 = vmatprep.subr.bf16.mxu1 %v5960_v15  ;;  %2231 = vmatprep.subr.bf16.mxu0 %v6011_v37 }
 0x6c0   :  { %2191 = vmatpush1.bf16.msra.mxu1 %v5963_v16  ;;  %2232 = vmatpush1.bf16.msra.mxu0 %v6014_v38 }
 0x6c1   :  { %2192 = vmatprep.subr.bf16.mxu1 %v6018_v39  ;;  %2233 = vmatprep.subr.bf16.mxu0 %v6020_v40 }
 0x6c4   :  { %2193 = vmatpush1.bf16.msra.mxu1 %v6022_v41  ;;  %2234 = vmatpush1.bf16.msra.mxu0 %v6024_v42 }
 0x6c5   :  { %2355 = vmatprep.subr.bf16.mxu1 %v5924_v55  ;;  %2396 = vmatprep.subr.bf16.mxu0 %v5973_v25 }
 0x77a   :  { %v2035_v17 = vpop.f32.mrb[16].mxu1  ;;  %v2076_v18 = vpop.f32.mrb[16].mxu0 }
 0x77b   :  { %v2083_v12 = vadd.f32 %v2035_v17, %v6075_v57  ;;  %v2037_v19 = vpop.f32.mrb[17].mxu1  ;;  %v2078_v20 = vpop.f32.mrb[17].mxu0  ;;  %v2085_v17 = vadd.f32 %v2076_v18, %v6088_v56  ;;  %v5216_v18 = vmov 1966171168  }
 0x77c   :  { %v2084_v22 = vadd.f32 %v2037_v19, %v6077_v59  ;;  %v2039_v23 = vpop.f32.mrb[18].mxu1  ;;  %v2080_v24 = vpop.f32.mrb[18].mxu0  ;;  %v2086_v54 = vadd.f32 %v2078_v20, %v6083_v49 }
 0x77d   :  { %v4222_v43 = vmul.f32 -1.442695, %v2083_v12  ;;  %v2040_v45 = vpop.f32.mrb[19].mxu1  ;;  %v2081_v47 = vpop.f32.mrb[19].mxu0 }
 0x77e   :  { %v4223_v48 = vmul.f32 -1.442695, %v2084_v22  ;;  %v4224_v13 = vmul.f32 -1.442695, %v2086_v54  ;;  %v2114_v45 = vunpack.c.l.s4 %v5216_v18 }
 0x77f   :  { %4757 = vpow2.f32 %v4222_v43 }
 0x780   :  { %4759 = vpow2.f32 %v4223_v48  ;;  %v2115_v47 = vunpack.c.0.s8 %v2114_v45 }
 0x781   :  { %4761 = vpow2.f32 %v4224_v13 }
 0x782   :  { %4763 = vtanh.f32 %v2085_v17  ;;  %v6096_v50 = vsub.s32 %v2115_v47, %v5787_v7 }
 0x789   :  { %v4758_v19 = vpop.eup %4757 }
 0x78a   :  { %v4760_v23 = vpop.eup %4759  ;;  %v2090_v12 = vadd.f32 1.0, %v4758_v19 }
 0x78b   :  { %v2096_v22 = vadd.f32 1.0, %v4760_v23  ;;  %v4762_v52 = vpop.eup %4761 }
 0x78c   :  { %4765 = vrcp.f32 %v2090_v12  ;;  %v4764_v21 = vpop.eup %4763  ;;  %v2103_v53 = vadd.f32 1.0, %v4762_v52 }
 0x78d   :  { %4767 = vrcp.f32 %v2096_v22 }
 0x78e   :  { %4769 = vrcp.f32 %v2103_v53 }
 0x796   :  { %v4766_v24 = vpop.eup %4765 }
 0x797   :  { %v4768_v43 = vpop.eup %4767  ;;  %v2107_v44 = vmul.f32 %v4766_v24, %v4764_v21 }
 0x798   :  { %v2106_v51 = vmul.f32 %v4768_v43, %v6032_v46  ;;  %v4770_v48 = vpop.eup %4769 }
 0x79a   :  { %v6092_v20 = vadd.f32 %v2107_v44, %v2106_v51 }
 0x79c   :  { %4771 = vtanh.f32 %v6092_v20 }
 0x7a6   :  { %v4772_v54 = vpop.eup %4771 }
 0x7a7   :  { %v2110_v13 = vmul.f32 %v4772_v54, %v4770_v48 }
 0x7a9   :  { %v2112_v17 = vcombine.high %v2110_v13, %v2110_v13  ;;  %v2119_v19 = vrot.slane %v2110_v13, %v6096_v50  ;;  %v2177_v23 = vpack.c.bf16 %v2110_v13, %v2110_v13 }
 0x7ab   :  { %v2126_v46 = vrot.slane %v2112_v17, %v6096_v50  ;;  %v2127_v12 = vcombine.high %v2119_v19, %v2119_v19  ;;  %v2135_v22 = vrot.slane %v2119_v19, %v6096_v50  ;;  %4225 = vst.sshfl [vmem:[#allocation2] sm:$0x1 pattern:$0x73625140] %v2119_v19  ;;  %2211 = vmatmul.mubr.bf16.vlgmr.msra.gmra.mrb[20].mxu1 %v2177_v23 }
 0x7ac   :  { %2252 = vmatmul.mubr.bf16.vlgmr.msra.gmra.mrb[20].mxu0 %v2177_v23  ;;  %2356 = vmatpush1.bf16.msra.mxu1 %v5927_v58 }
 0x7ad   :  { %2397 = vmatpush1.bf16.msra.mxu0 %v5977_v26  ;;  %v2128_v7 = vcombine.high %v2126_v46, %v2126_v46  ;;  %v2142_v52 = vrot.slane %v2126_v46, %v6096_v50  ;;  %v2149_v21 = vrot.slane %v2127_v12, %v6096_v50  ;;  %v2157_v24 = vcombine.high %v2135_v22, %v2135_v22 }
 0x7ae   :  { %4226 = vst.sshfl [vmem:[#allocation2 + $0x8] sm:$0x1 pattern:$0x73625140] %v2127_v12  ;;  %2357 = vmatprep.subr.bf16.mxu1 %v5929_v60  ;;  %2398 = vmatprep.subr.bf16.mxu0 %v5980_v27 }
 0x7af   :  { %4227 = vst.sshfl [vmem:[#allocation2 + $0x20] sm:$0x1 pattern:$0x73625140] %v2126_v46  ;;  %2387 = vmatprep.mubr.bf16.mxu1 %v5211_v0  ;;  %v2156_v43 = vrot.slane %v2128_v7, %v6096_v50  ;;  %v2158_v44 = vcombine.high %v2142_v52, %v2142_v52  ;;  %v2159_v53 = vcombine.high %v2149_v21, %v2149_v21  ;;  %2171 = vst [vmem:[#allocation2 + $0x10] sm:$0x1] %v2157_v24 }
 0x7b0   :  { %4228 = vst.sshfl [vmem:[#allocation2 + $0x28] sm:$0x1 pattern:$0x73625140] %v2128_v7  ;;  %2428 = vmatprep.mubr.bf16.mxu0 %v5211_v0  ;;  %2358 = vmatpush1.bf16.msra.mxu1 %v5932_v61 }
 0x7b1   :  { %2399 = vmatpush1.bf16.msra.mxu0 %v5983_v28  ;;  %v2160_v51 = vcombine.high %v2156_v43, %v2156_v43  ;;  %2172 = vst [vmem:[#allocation2 + $0x18] sm:$0x1] %v2159_v53  ;;  %2175 = vst [vmem:[#allocation2 + $0x30] sm:$0x1] %v2158_v44  ;;  %2359 = vmatprep.subr.bf16.mxu1 %v5936_v62 }
 0x7b2   :  { %2400 = vmatprep.subr.bf16.mxu0 %v5987_v29 }
 0x7b3   :  { %2176 = vst [vmem:[#allocation2 + $0x38] sm:$0x1] %v2160_v51 }
 0x7b4   :  { %2360 = vmatpush1.bf16.msra.mxu1 %v5939_v63 }
 0x7b5   :  { %2401 = vmatpush1.bf16.msra.mxu0 %v5990_v30  ;;  %2361 = vmatprep.subr.bf16.mxu1 %v5942_v2 }
 0x7b6   :  { %2402 = vmatprep.subr.bf16.mxu0 %v5993_v31 }
 0x7b8   :  { %2362 = vmatpush1.bf16.msra.mxu1 %v5945_v3 }
 0x7b9   :  { %2403 = vmatpush1.bf16.msra.mxu0 %v5996_v32  ;;  %2363 = vmatprep.subr.bf16.mxu1 %v5948_v4 }
 0x7ba   :  { %2404 = vmatprep.subr.bf16.mxu0 %v5999_v33 }
 0x7bc   :  { %2364 = vmatpush1.bf16.msra.mxu1 %v5951_v5 }
 0x7bd   :  { %2405 = vmatpush1.bf16.msra.mxu0 %v6002_v34  ;;  %2365 = vmatprep.subr.bf16.mxu1 %v5954_v10 }
 0x7be   :  { %2406 = vmatprep.subr.bf16.mxu0 %v6005_v35 }
 0x7c0   :  { %2366 = vmatpush1.bf16.msra.mxu1 %v5957_v14 }
 0x7c1   :  { %2407 = vmatpush1.bf16.msra.mxu0 %v6008_v36  ;;  %2367 = vmatprep.subr.bf16.mxu1 %v5960_v15 }
 0x7c2   :  { %2408 = vmatprep.subr.bf16.mxu0 %v6011_v37 }
 0x7c4   :  { %2368 = vmatpush1.bf16.msra.mxu1 %v5963_v16 }
 0x7c5   :  { %2409 = vmatpush1.bf16.msra.mxu0 %v6014_v38  ;;  %2369 = vmatprep.subr.bf16.mxu1 %v6018_v39 }
 0x7c6   :  { %2410 = vmatprep.subr.bf16.mxu0 %v6020_v40 }
 0x7c8   :  { %2370 = vmatpush1.bf16.msra.mxu1 %v6022_v41 }
 0x7c9   :  { %2411 = vmatpush1.bf16.msra.mxu0 %v6024_v42  ;;  %2532 = vmatprep.subr.bf16.mxu1 %v5924_v55 }
 0x7ca   :  { %2573 = vmatprep.subr.bf16.mxu0 %v5973_v25 }
 0x87e   :  { %v2212_v18 = vpop.f32.mrb[20].mxu1 }
 0x87f   :  { %v2253_v45 = vpop.f32.mrb[20].mxu0  ;;  %v2260_v47 = vadd.f32 %v2212_v18, %v6075_v57  ;;  %v2214_v48 = vpop.f32.mrb[21].mxu1 }
 0x880   :  { %v2255_v54 = vpop.f32.mrb[21].mxu0  ;;  %v2261_v13 = vadd.f32 %v2214_v48, %v6077_v59  ;;  %v2216_v17 = vpop.f32.mrb[22].mxu1  ;;  %v2262_v21 = vadd.f32 %v2253_v45, %v6088_v56 }
 0x881   :  { %v2257_v19 = vpop.f32.mrb[22].mxu0  ;;  %v4229_v23 = vmul.f32 -1.442695, %v2260_v47  ;;  %v2217_v46 = vpop.f32.mrb[23].mxu1  ;;  %v2263_v7 = vadd.f32 %v2255_v54, %v6083_v49 }
 0x882   :  { %v2258_v12 = vpop.f32.mrb[23].mxu0  ;;  %v4230_v22 = vmul.f32 -1.442695, %v2261_v13 }
 0x883   :  { %4773 = vpow2.f32 %v4229_v23  ;;  %v4231_v52 = vmul.f32 -1.442695, %v2263_v7 }
 0x884   :  { %4775 = vpow2.f32 %v4230_v22 }
 0x885   :  { %4777 = vpow2.f32 %v4231_v52 }
 0x886   :  { %4779 = vtanh.f32 %v2262_v21 }
 0x88d   :  { %v4774_v24 = vpop.eup %4773 }
 0x88e   :  { %v4776_v43 = vpop.eup %4775  ;;  %v2267_v44 = vadd.f32 1.0, %v4774_v24 }
 0x88f   :  { %v2273_v53 = vadd.f32 1.0, %v4776_v43  ;;  %v4778_v51 = vpop.eup %4777 }
 0x890   :  { %4781 = vrcp.f32 %v2267_v44  ;;  %v4780_v18 = vpop.eup %4779  ;;  %v2280_v17 = vadd.f32 1.0, %v4778_v51 }
 0x891   :  { %4783 = vrcp.f32 %v2273_v53 }
 0x892   :  { %4785 = vrcp.f32 %v2280_v17 }
 0x89a   :  { %v4782_v47 = vpop.eup %4781 }
 0x89b   :  { %v4784_v48 = vpop.eup %4783  ;;  %v2284_v13 = vmul.f32 %v4782_v47, %v4780_v18 }
 0x89c   :  { %v2283_v19 = vmul.f32 %v4784_v48, %v6092_v20  ;;  %v4786_v45 = vpop.eup %4785 }
 0x89e   :  { %v6143_v54 = vadd.f32 %v2284_v13, %v2283_v19 }
 0x8a0   :  { %4787 = vtanh.f32 %v6143_v54 }
 0x8aa   :  { %v4788_v23 = vpop.eup %4787 }
 0x8ab   :  { %v2287_v46 = vmul.f32 %v4788_v23, %v4786_v45 }
 0x8ad   :  { %v2289_v12 = vcombine.high %v2287_v46, %v2287_v46  ;;  %v2296_v22 = vrot.slane %v2287_v46, %v6096_v50  ;;  %v2354_v7 = vpack.c.bf16 %v2287_v46, %v2287_v46 }
 0x8af   :  { %v2303_v52 = vrot.slane %v2289_v12, %v6096_v50  ;;  %v2304_v21 = vcombine.high %v2296_v22, %v2296_v22  ;;  %v2312_v24 = vrot.slane %v2296_v22, %v6096_v50  ;;  %4232 = vst.sshfl [vmem:[#allocation2 + $0x1] sm:$0x1 pattern:$0x73625140] %v2296_v22  ;;  %2388 = vmatmul.mubr.bf16.vlgmr.msra.gmra.mrb[24].mxu1 %v2354_v7 }
 0x8b0   :  { %2429 = vmatmul.mubr.bf16.vlgmr.msra.gmra.mrb[24].mxu0 %v2354_v7  ;;  %2533 = vmatpush1.bf16.msra.mxu1 %v5927_v58 }
 0x8b1   :  { %2574 = vmatpush1.bf16.msra.mxu0 %v5977_v26  ;;  %v2305_v20 = vcombine.high %v2303_v52, %v2303_v52  ;;  %v2319_v43 = vrot.slane %v2303_v52, %v6096_v50  ;;  %v2326_v44 = vrot.slane %v2304_v21, %v6096_v50  ;;  %v2334_v53 = vcombine.high %v2312_v24, %v2312_v24 }
 0x8b2   :  { %4233 = vst.sshfl [vmem:[#allocation2 + $0x9] sm:$0x1 pattern:$0x73625140] %v2304_v21  ;;  %2534 = vmatprep.subr.bf16.mxu1 %v5929_v60  ;;  %2575 = vmatprep.subr.bf16.mxu0 %v5980_v27 }
 0x8b3   :  { %4234 = vst.sshfl [vmem:[#allocation2 + $0x21] sm:$0x1 pattern:$0x73625140] %v2303_v52  ;;  %2564 = vmatprep.mubr.bf16.mxu1 %v5211_v0  ;;  %v2333_v51 = vrot.slane %v2305_v20, %v6096_v50  ;;  %v2335_v18 = vcombine.high %v2319_v43, %v2319_v43  ;;  %v2336_v47 = vcombine.high %v2326_v44, %v2326_v44  ;;  %2348 = vst [vmem:[#allocation2 + $0x11] sm:$0x1] %v2334_v53 }
 0x8b4   :  { %4235 = vst.sshfl [vmem:[#allocation2 + $0x29] sm:$0x1 pattern:$0x73625140] %v2305_v20  ;;  %2605 = vmatprep.mubr.bf16.mxu0 %v5211_v0  ;;  %2535 = vmatpush1.bf16.msra.mxu1 %v5932_v61 }
 0x8b5   :  { %2576 = vmatpush1.bf16.msra.mxu0 %v5983_v28  ;;  %v2337_v48 = vcombine.high %v2333_v51, %v2333_v51  ;;  %2349 = vst [vmem:[#allocation2 + $0x19] sm:$0x1] %v2336_v47  ;;  %2352 = vst [vmem:[#allocation2 + $0x31] sm:$0x1] %v2335_v18  ;;  %2536 = vmatprep.subr.bf16.mxu1 %v5936_v62 }
 0x8b6   :  { %2577 = vmatprep.subr.bf16.mxu0 %v5987_v29 }
 0x8b7   :  { %2353 = vst [vmem:[#allocation2 + $0x39] sm:$0x1] %v2337_v48 }
 0x8b8   :  { %2537 = vmatpush1.bf16.msra.mxu1 %v5939_v63 }
 0x8b9   :  { %2578 = vmatpush1.bf16.msra.mxu0 %v5990_v30  ;;  %2538 = vmatprep.subr.bf16.mxu1 %v5942_v2 }
 0x8ba   :  { %2579 = vmatprep.subr.bf16.mxu0 %v5993_v31 }
 0x8bc   :  { %2539 = vmatpush1.bf16.msra.mxu1 %v5945_v3 }
 0x8bd   :  { %2580 = vmatpush1.bf16.msra.mxu0 %v5996_v32  ;;  %2540 = vmatprep.subr.bf16.mxu1 %v5948_v4 }
 0x8be   :  { %2581 = vmatprep.subr.bf16.mxu0 %v5999_v33 }
 0x8c0   :  { %2541 = vmatpush1.bf16.msra.mxu1 %v5951_v5 }
 0x8c1   :  { %2582 = vmatpush1.bf16.msra.mxu0 %v6002_v34  ;;  %2542 = vmatprep.subr.bf16.mxu1 %v5954_v10 }
 0x8c2   :  { %2583 = vmatprep.subr.bf16.mxu0 %v6005_v35 }
 0x8c4   :  { %2543 = vmatpush1.bf16.msra.mxu1 %v5957_v14 }
 0x8c5   :  { %2584 = vmatpush1.bf16.msra.mxu0 %v6008_v36  ;;  %2544 = vmatprep.subr.bf16.mxu1 %v5960_v15 }
 0x8c6   :  { %2585 = vmatprep.subr.bf16.mxu0 %v6011_v37 }
 0x8c8   :  { %2545 = vmatpush1.bf16.msra.mxu1 %v5963_v16 }
 0x8c9   :  { %2586 = vmatpush1.bf16.msra.mxu0 %v6014_v38  ;;  %2546 = vmatprep.subr.bf16.mxu1 %v6018_v39 }
 0x8ca   :  { %2587 = vmatprep.subr.bf16.mxu0 %v6020_v40 }
 0x8cc   :  { %2547 = vmatpush1.bf16.msra.mxu1 %v6022_v41 }
 0x8cd   :  { %2588 = vmatpush1.bf16.msra.mxu0 %v6024_v42  ;;  %2709 = vmatprep.subr.bf16.mxu1 %v5924_v55 }
 0x8ce   :  { %2750 = vmatprep.subr.bf16.mxu0 %v5973_v25 }
 0x982   :  { %v2389_v13 = vpop.f32.mrb[24].mxu1 }
 0x983   :  { %v2430_v17 = vpop.f32.mrb[24].mxu0  ;;  %v2437_v19 = vadd.f32 %v2389_v13, %v6075_v57  ;;  %v2391_v45 = vpop.f32.mrb[25].mxu1 }
 0x984   :  { %v2432_v23 = vpop.f32.mrb[25].mxu0  ;;  %v2438_v46 = vadd.f32 %v2391_v45, %v6077_v59  ;;  %v2393_v12 = vpop.f32.mrb[26].mxu1  ;;  %v2439_v44 = vadd.f32 %v2430_v17, %v6088_v56 }
 0x985   :  { %v2434_v22 = vpop.f32.mrb[26].mxu0  ;;  %v4236_v7 = vmul.f32 -1.442695, %v2437_v19  ;;  %v2394_v52 = vpop.f32.mrb[27].mxu1  ;;  %v2440_v20 = vadd.f32 %v2432_v23, %v6083_v49 }
 0x986   :  { %v2435_v21 = vpop.f32.mrb[27].mxu0  ;;  %v4237_v24 = vmul.f32 -1.442695, %v2438_v46 }
 0x987   :  { %4789 = vpow2.f32 %v4236_v7  ;;  %v4238_v43 = vmul.f32 -1.442695, %v2440_v20 }
 0x988   :  { %4791 = vpow2.f32 %v4237_v24 }
 0x989   :  { %4793 = vpow2.f32 %v4238_v43 }
 0x98a   :  { %4795 = vtanh.f32 %v2439_v44 }
 0x991   :  { %v4790_v53 = vpop.eup %4789 }
 0x992   :  { %v4792_v51 = vpop.eup %4791  ;;  %v2444_v18 = vadd.f32 1.0, %v4790_v53 }
 0x993   :  { %v2450_v47 = vadd.f32 1.0, %v4792_v51  ;;  %v4794_v48 = vpop.eup %4793 }
 0x994   :  { %4797 = vrcp.f32 %v2444_v18  ;;  %v4796_v13 = vpop.eup %4795  ;;  %v2457_v12 = vadd.f32 1.0, %v4794_v48 }
 0x995   :  { %4799 = vrcp.f32 %v2450_v47 }
 0x996   :  { %4801 = vrcp.f32 %v2457_v12 }
 0x99e   :  { %v4798_v19 = vpop.eup %4797 }
 0x99f   :  { %v4800_v45 = vpop.eup %4799  ;;  %v2461_v46 = vmul.f32 %v4798_v19, %v4796_v13 }
 0x9a0   :  { %v2460_v22 = vmul.f32 %v4800_v45, %v6143_v54  ;;  %v4802_v17 = vpop.eup %4801 }
 0x9a2   :  { %v6191_v23 = vadd.f32 %v2461_v46, %v2460_v22 }
 0x9a4   :  { %4803 = vtanh.f32 %v6191_v23 }
 0x9ae   :  { %v4804_v7 = vpop.eup %4803 }
 0x9af   :  { %v2464_v52 = vmul.f32 %v4804_v7, %v4802_v17 }
 0x9b1   :  { %v2466_v21 = vcombine.high %v2464_v52, %v2464_v52  ;;  %v2473_v24 = vrot.slane %v2464_v52, %v6096_v50  ;;  %v2531_v20 = vpack.c.bf16 %v2464_v52, %v2464_v52 }
 0x9b3   :  { %v2480_v43 = vrot.slane %v2466_v21, %v6096_v50  ;;  %v2481_v44 = vcombine.high %v2473_v24, %v2473_v24  ;;  %v2489_v53 = vrot.slane %v2473_v24, %v6096_v50  ;;  %4239 = vst.sshfl [vmem:[#allocation2 + $0x2] sm:$0x1 pattern:$0x73625140] %v2473_v24  ;;  %2565 = vmatmul.mubr.bf16.vlgmr.msra.gmra.mrb[28].mxu1 %v2531_v20 }
 0x9b4   :  { %2606 = vmatmul.mubr.bf16.vlgmr.msra.gmra.mrb[28].mxu0 %v2531_v20  ;;  %2710 = vmatpush1.bf16.msra.mxu1 %v5927_v58 }
 0x9b5   :  { %2751 = vmatpush1.bf16.msra.mxu0 %v5977_v26  ;;  %v2482_v54 = vcombine.high %v2480_v43, %v2480_v43  ;;  %v2496_v51 = vrot.slane %v2480_v43, %v6096_v50  ;;  %v2503_v18 = vrot.slane %v2481_v44, %v6096_v50  ;;  %v2511_v47 = vcombine.high %v2489_v53, %v2489_v53 }
 0x9b6   :  { %4240 = vst.sshfl [vmem:[#allocation2 + $0xa] sm:$0x1 pattern:$0x73625140] %v2481_v44  ;;  %2711 = vmatprep.subr.bf16.mxu1 %v5929_v60  ;;  %2752 = vmatprep.subr.bf16.mxu0 %v5980_v27 }
 0x9b7   :  { %4241 = vst.sshfl [vmem:[#allocation2 + $0x22] sm:$0x1 pattern:$0x73625140] %v2480_v43  ;;  %2741 = vmatprep.mubr.bf16.mxu1 %v5211_v0  ;;  %v2510_v48 = vrot.slane %v2482_v54, %v6096_v50  ;;  %v2512_v13 = vcombine.high %v2496_v51, %v2496_v51  ;;  %v2513_v19 = vcombine.high %v2503_v18, %v2503_v18  ;;  %2525 = vst [vmem:[#allocation2 + $0x12] sm:$0x1] %v2511_v47 }
 0x9b8   :  { %4242 = vst.sshfl [vmem:[#allocation2 + $0x2a] sm:$0x1 pattern:$0x73625140] %v2482_v54  ;;  %2782 = vmatprep.mubr.bf16.mxu0 %v5211_v0  ;;  %2712 = vmatpush1.bf16.msra.mxu1 %v5932_v61 }
 0x9b9   :  { %2753 = vmatpush1.bf16.msra.mxu0 %v5983_v28  ;;  %v2514_v45 = vcombine.high %v2510_v48, %v2510_v48  ;;  %2526 = vst [vmem:[#allocation2 + $0x1a] sm:$0x1] %v2513_v19  ;;  %2529 = vst [vmem:[#allocation2 + $0x32] sm:$0x1] %v2512_v13  ;;  %2713 = vmatprep.subr.bf16.mxu1 %v5936_v62 }
 0x9ba   :  { %2754 = vmatprep.subr.bf16.mxu0 %v5987_v29 }
 0x9bb   :  { %2530 = vst [vmem:[#allocation2 + $0x3a] sm:$0x1] %v2514_v45 }
 0x9bc   :  { %2714 = vmatpush1.bf16.msra.mxu1 %v5939_v63 }
 0x9bd   :  { %2755 = vmatpush1.bf16.msra.mxu0 %v5990_v30  ;;  %2715 = vmatprep.subr.bf16.mxu1 %v5942_v2 }
 0x9be   :  { %2756 = vmatprep.subr.bf16.mxu0 %v5993_v31 }
 0x9c0   :  { %2716 = vmatpush1.bf16.msra.mxu1 %v5945_v3 }
 0x9c1   :  { %2757 = vmatpush1.bf16.msra.mxu0 %v5996_v32  ;;  %2717 = vmatprep.subr.bf16.mxu1 %v5948_v4 }
 0x9c2   :  { %2758 = vmatprep.subr.bf16.mxu0 %v5999_v33 }
 0x9c4   :  { %2718 = vmatpush1.bf16.msra.mxu1 %v5951_v5 }
 0x9c5   :  { %2759 = vmatpush1.bf16.msra.mxu0 %v6002_v34  ;;  %2719 = vmatprep.subr.bf16.mxu1 %v5954_v10 }
 0x9c6   :  { %2760 = vmatprep.subr.bf16.mxu0 %v6005_v35 }
 0x9c8   :  { %2720 = vmatpush1.bf16.msra.mxu1 %v5957_v14 }
 0x9c9   :  { %2761 = vmatpush1.bf16.msra.mxu0 %v6008_v36  ;;  %2721 = vmatprep.subr.bf16.mxu1 %v5960_v15 }
 0x9ca   :  { %2762 = vmatprep.subr.bf16.mxu0 %v6011_v37 }
 0x9cc   :  { %2722 = vmatpush1.bf16.msra.mxu1 %v5963_v16 }
 0x9cd   :  { %2763 = vmatpush1.bf16.msra.mxu0 %v6014_v38  ;;  %2723 = vmatprep.subr.bf16.mxu1 %v6018_v39 }
 0x9ce   :  { %2764 = vmatprep.subr.bf16.mxu0 %v6020_v40 }
 0x9d0   :  { %2724 = vmatpush1.bf16.msra.mxu1 %v6022_v41 }
 0x9d1   :  { %2765 = vmatpush1.bf16.msra.mxu0 %v6024_v42  ;;  %2886 = vmatprep.subr.bf16.mxu1 %v5924_v55 }
 0x9d2   :  { %2927 = vmatprep.subr.bf16.mxu0 %v5973_v25 }
 0xa86   :  { %v2566_v46 = vpop.f32.mrb[28].mxu1 }
 0xa87   :  { %v2607_v12 = vpop.f32.mrb[28].mxu0  ;;  %v2614_v22 = vadd.f32 %v2566_v46, %v6075_v57  ;;  %v2568_v17 = vpop.f32.mrb[29].mxu1 }
 0xa88   :  { %v2609_v7 = vpop.f32.mrb[29].mxu0  ;;  %v2615_v52 = vadd.f32 %v2568_v17, %v6077_v59  ;;  %v2570_v21 = vpop.f32.mrb[30].mxu1  ;;  %v2616_v51 = vadd.f32 %v2607_v12, %v6088_v56 }
 0xa89   :  { %v2611_v24 = vpop.f32.mrb[30].mxu0  ;;  %v4243_v20 = vmul.f32 -1.442695, %v2614_v22  ;;  %v2571_v43 = vpop.f32.mrb[31].mxu1  ;;  %v2617_v55 = vadd.f32 %v2609_v7, %v6083_v49 }
 0xa8a   :  { %v2612_v44 = vpop.f32.mrb[31].mxu0  ;;  %v4244_v53 = vmul.f32 -1.442695, %v2615_v52 }
 0xa8b   :  { %4805 = vpow2.f32 %v4243_v20  ;;  %v4245_v54 = vmul.f32 -1.442695, %v2617_v55 }
 0xa8c   :  { %4807 = vpow2.f32 %v4244_v53 }
 0xa8d   :  { %4809 = vpow2.f32 %v4245_v54 }
 0xa8e   :  { %4811 = vtanh.f32 %v2616_v51 }
 0xa95   :  { %v4806_v18 = vpop.eup %4805 }
 0xa96   :  { %v4808_v47 = vpop.eup %4807  ;;  %v2621_v48 = vadd.f32 1.0, %v4806_v18 }
 0xa97   :  { %v2627_v13 = vadd.f32 1.0, %v4808_v47  ;;  %v4810_v19 = vpop.eup %4809 }
 0xa98   :  { %4813 = vrcp.f32 %v2621_v48  ;;  %v4812_v45 = vpop.eup %4811  ;;  %v2634_v52 = vadd.f32 1.0, %v4810_v19 }
 0xa99   :  { %4815 = vrcp.f32 %v2627_v13 }
 0xa9a   :  { %4817 = vrcp.f32 %v2634_v52 }
 0xaa2   :  { %v4814_v46 = vpop.eup %4813 }
 0xaa3   :  { %v4816_v22 = vpop.eup %4815  ;;  %v2638_v17 = vmul.f32 %v4814_v46, %v4812_v45 }
 0xaa4   :  { %v2637_v21 = vmul.f32 %v4816_v22, %v6191_v23  ;;  %v4818_v12 = vpop.eup %4817 }
 0xaa6   :  { %v6239_v7 = vadd.f32 %v2638_v17, %v2637_v21 }
 0xaa8   :  { %4819 = vtanh.f32 %v6239_v7 }
 0xab2   :  { %v4820_v24 = vpop.eup %4819 }
 0xab3   :  { %v2641_v20 = vmul.f32 %v4820_v24, %v4818_v12 }
 0xab5   :  { %v2643_v43 = vcombine.high %v2641_v20, %v2641_v20  ;;  %v2650_v44 = vrot.slane %v2641_v20, %v6096_v50  ;;  %v2708_v53 = vpack.c.bf16 %v2641_v20, %v2641_v20  ;;  %v6298_v20 = vld [vmem:[#allocation17 + $0x8] ss:$16 sps:$4 sm:$0xff]  }
 0xab7   :  { %v2657_v55 = vrot.slane %v2643_v43, %v6096_v50  ;;  %v2658_v54 = vcombine.high %v2650_v44, %v2650_v44  ;;  %v2666_v51 = vrot.slane %v2650_v44, %v6096_v50  ;;  %4246 = vst.sshfl [vmem:[#allocation2 + $0x3] sm:$0x1 pattern:$0x73625140] %v2650_v44  ;;  %2742 = vmatmul.mubr.bf16.vlgmr.msra.gmra.mrb[32].mxu1 %v2708_v53 }
 0xab8   :  { %2783 = vmatmul.mubr.bf16.vlgmr.msra.gmra.mrb[32].mxu0 %v2708_v53  ;;  %2887 = vmatpush1.bf16.msra.mxu1 %v5927_v58 }
 0xab9   :  { %2928 = vmatpush1.bf16.msra.mxu0 %v5977_v26  ;;  %v2659_v23 = vcombine.high %v2657_v55, %v2657_v55  ;;  %v2673_v18 = vrot.slane %v2657_v55, %v6096_v50  ;;  %v2680_v47 = vrot.slane %v2658_v54, %v6096_v50  ;;  %v2688_v48 = vcombine.high %v2666_v51, %v2666_v51  ;;  %v6306_v51 = vld [vmem:[#allocation17 + $0x2c] ss:$16 sps:$4 sm:$0xff]  }
 0xaba   :  { %4247 = vst.sshfl [vmem:[#allocation2 + $0xb] sm:$0x1 pattern:$0x73625140] %v2658_v54  ;;  %2888 = vmatprep.subr.bf16.mxu1 %v5929_v60  ;;  %2929 = vmatprep.subr.bf16.mxu0 %v5980_v27  ;;  %v6280_v60 = vld [vmem:[#allocation17 + $0x4] ss:$16 sps:$4 sm:$0xff]  }
 0xabb   :  { %4248 = vst.sshfl [vmem:[#allocation2 + $0x23] sm:$0x1 pattern:$0x73625140] %v2657_v55  ;;  %2918 = vmatprep.mubr.bf16.mxu1 %v5211_v0  ;;  %v2687_v13 = vrot.slane %v2659_v23, %v6096_v50  ;;  %v2689_v19 = vcombine.high %v2673_v18, %v2673_v18  ;;  %v2690_v58 = vcombine.high %v2680_v47, %v2680_v47  ;;  %2702 = vst [vmem:[#allocation2 + $0x13] sm:$0x1] %v2688_v48 }
 0xabc   :  { %4249 = vst.sshfl [vmem:[#allocation2 + $0x2b] sm:$0x1 pattern:$0x73625140] %v2659_v23  ;;  %2959 = vmatprep.mubr.bf16.mxu0 %v5211_v0  ;;  %2889 = vmatpush1.bf16.msra.mxu1 %v5932_v61  ;;  %v6303_v54 = vld [vmem:[#allocation17 + $0x24] ss:$16 sps:$4 sm:$0xff]  }
 0xabd   :  { %2930 = vmatpush1.bf16.msra.mxu0 %v5983_v28  ;;  %v2691_v26 = vcombine.high %v2687_v13, %v2687_v13  ;;  %2703 = vst [vmem:[#allocation2 + $0x1b] sm:$0x1] %v2690_v58  ;;  %2706 = vst [vmem:[#allocation2 + $0x33] sm:$0x1] %v2689_v19  ;;  %2890 = vmatprep.subr.bf16.mxu1 %v5936_v62  ;;  %v6312_v48 = vld [vmem:[#allocation17 + $0x20] ss:$16 sps:$4 sm:$0xff]  }
 0xabe   :  { %2931 = vmatprep.subr.bf16.mxu0 %v5987_v29  ;;  %v6315_v13 = vld [vmem:[#allocation17 + $0x28] ss:$16 sps:$4 sm:$0xff]   ;;  %v6318_v58 = vld [vmem:[#allocation17 + $0x44] ss:$16 sps:$4 sm:$0xff]  }
 0xabf   :  { %2707 = vst [vmem:[#allocation2 + $0x3b] sm:$0x1] %v2691_v26  ;;  %v6321_v26 = vld [vmem:[#allocation17 + $0x4c] ss:$16 sps:$4 sm:$0xff]  }
 0xac0   :  { %2891 = vmatpush1.bf16.msra.mxu1 %v5939_v63 }
 0xac1   :  { %2932 = vmatpush1.bf16.msra.mxu0 %v5990_v30  ;;  %2892 = vmatprep.subr.bf16.mxu1 %v5942_v2 }
 0xac2   :  { %2933 = vmatprep.subr.bf16.mxu0 %v5993_v31 }
 0xac4   :  { %2893 = vmatpush1.bf16.msra.mxu1 %v5945_v3 }
 0xac5   :  { %2934 = vmatpush1.bf16.msra.mxu0 %v5996_v32  ;;  %2894 = vmatprep.subr.bf16.mxu1 %v5948_v4 }
 0xac6   :  { %2935 = vmatprep.subr.bf16.mxu0 %v5999_v33 }
 0xac8   :  { %2895 = vmatpush1.bf16.msra.mxu1 %v5951_v5 }
 0xac9   :  { %2936 = vmatpush1.bf16.msra.mxu0 %v6002_v34  ;;  %2896 = vmatprep.subr.bf16.mxu1 %v5954_v10 }
 0xaca   :  { %2937 = vmatprep.subr.bf16.mxu0 %v6005_v35 }
 0xacc   :  { %2897 = vmatpush1.bf16.msra.mxu1 %v5957_v14 }
 0xacd   :  { %2938 = vmatpush1.bf16.msra.mxu0 %v6008_v36  ;;  %2898 = vmatprep.subr.bf16.mxu1 %v5960_v15 }
 0xace   :  { %2939 = vmatprep.subr.bf16.mxu0 %v6011_v37 }
 0xad0   :  { %2899 = vmatpush1.bf16.msra.mxu1 %v5963_v16 }
 0xad1   :  { %2940 = vmatpush1.bf16.msra.mxu0 %v6014_v38  ;;  %2900 = vmatprep.subr.bf16.mxu1 %v6018_v39 }
 0xad2   :  { %2941 = vmatprep.subr.bf16.mxu0 %v6020_v40 }
 0xad4   :  { %2901 = vmatpush1.bf16.msra.mxu1 %v6022_v41 }
 0xad5   :  { %2942 = vmatpush1.bf16.msra.mxu0 %v6024_v42  ;;  %3063 = vmatprep.subr.bf16.mxu1 %v6280_v60 }
 0xad6   :  { %3104 = vmatprep.subr.bf16.mxu0 %v5973_v25 }
 0xb8a   :  { %v2743_v61 = vpop.f32.mrb[32].mxu1 }
 0xb8b   :  { %v2784_v62 = vpop.f32.mrb[32].mxu0  ;;  %v2791_v63 = vadd.f32 %v2743_v61, %v6075_v57  ;;  %v2745_v2 = vpop.f32.mrb[33].mxu1  ;;  %v6324_v61 = vld [vmem:[#allocation17 + $0x40] ss:$16 sps:$4 sm:$0xff]  }
 0xb8c   :  { %v2786_v3 = vpop.f32.mrb[33].mxu0  ;;  %v2792_v4 = vadd.f32 %v2745_v2, %v6077_v59  ;;  %v2747_v5 = vpop.f32.mrb[34].mxu1  ;;  %v2793_v25 = vadd.f32 %v2784_v62, %v6088_v56  ;;  %v6327_v62 = vld [vmem:[#allocation17 + $0x48] ss:$16 sps:$4 sm:$0xff]   ;;  %v6333_v2 = vld [vmem:[#allocation17 + $0x6c] ss:$16 sps:$4 sm:$0xff]  }
 0xb8d   :  { %v2788_v10 = vpop.f32.mrb[34].mxu0  ;;  %v4250_v14 = vmul.f32 -1.442695, %v2791_v63  ;;  %v2748_v15 = vpop.f32.mrb[35].mxu1  ;;  %v2794_v28 = vadd.f32 %v2786_v3, %v6083_v49  ;;  %v6330_v63 = vld [vmem:[#allocation17 + $0x64] ss:$16 sps:$4 sm:$0xff]  }
 0xb8e   :  { %v2789_v16 = vpop.f32.mrb[35].mxu0  ;;  %v4251_v27 = vmul.f32 -1.442695, %v2792_v4  ;;  %v6336_v3 = vld [vmem:[#allocation17 + $0x60] ss:$16 sps:$4 sm:$0xff]  }
 0xb8f   :  { %4821 = vpow2.f32 %v4250_v14  ;;  %v4252_v29 = vmul.f32 -1.442695, %v2794_v28  ;;  %v6339_v4 = vld [vmem:[#allocation17 + $0x68] ss:$16 sps:$4 sm:$0xff]   ;;  %v6342_v5 = vld [vmem:[#allocation17 + $0x84] ss:$16 sps:$4 sm:$0xff]  }
 0xb90   :  { %4823 = vpow2.f32 %v4251_v27  ;;  %v6345_v10 = vld [vmem:[#allocation17 + $0x8c] ss:$16 sps:$4 sm:$0xff]   ;;  %v6348_v14 = vld [vmem:[#allocation17 + $0x80] ss:$16 sps:$4 sm:$0xff]   ;;  %v6351_v15 = vld [vmem:[#allocation17 + $0x88] ss:$16 sps:$4 sm:$0xff]  }
 0xb91   :  { %4825 = vpow2.f32 %v4252_v29  ;;  %v6354_v16 = vld [vmem:[#allocation17 + $0xa4] ss:$16 sps:$4 sm:$0xff]   ;;  %v6357_v27 = vld [vmem:[#allocation17 + $0xac] ss:$16 sps:$4 sm:$0xff]   ;;  %v6360_v28 = vld [vmem:[#allocation17 + $0xa0] ss:$16 sps:$4 sm:$0xff]  }
 0xb92   :  { %4827 = vtanh.f32 %v2793_v25  ;;  %v6363_v29 = vld [vmem:[#allocation17 + $0xa8] ss:$16 sps:$4 sm:$0xff]   ;;  %v6366_v25 = vld [vmem:[#allocation17 + $0xc4] ss:$16 sps:$4 sm:$0xff]  }
 0xb99   :  { %v4822_v30 = vpop.eup %4821 }
 0xb9a   :  { %v4824_v31 = vpop.eup %4823  ;;  %v2798_v32 = vadd.f32 1.0, %v4822_v30  ;;  %v6369_v30 = vld [vmem:[#allocation17 + $0xcc] ss:$16 sps:$4 sm:$0xff]  }
 0xb9b   :  { %v2804_v33 = vadd.f32 1.0, %v4824_v31  ;;  %v4826_v34 = vpop.eup %4825  ;;  %v6372_v31 = vld [vmem:[#allocation17 + $0xc0] ss:$16 sps:$4 sm:$0xff]  }
 0xb9c   :  { %4829 = vrcp.f32 %v2798_v32  ;;  %v4828_v35 = vpop.eup %4827  ;;  %v2811_v39 = vadd.f32 1.0, %v4826_v34  ;;  %v6375_v32 = vld [vmem:[#allocation17 + $0xc8] ss:$16 sps:$4 sm:$0xff]   ;;  %v6381_v34 = vld [vmem:[#allocation17 + $0xec] ss:$16 sps:$4 sm:$0xff]  }
 0xb9d   :  { %4831 = vrcp.f32 %v2804_v33  ;;  %v6378_v33 = vld [vmem:[#allocation17 + $0xe4] ss:$16 sps:$4 sm:$0xff]  }
 0xb9e   :  { %4833 = vrcp.f32 %v2811_v39 }
 0xba6   :  { %v4830_v36 = vpop.eup %4829 }
 0xba7   :  { %v4832_v37 = vpop.eup %4831  ;;  %v2815_v38 = vmul.f32 %v4830_v36, %v4828_v35  ;;  %v6384_v35 = vld [vmem:[#allocation17 + $0xe0] ss:$16 sps:$4 sm:$0xff]   ;;  %v6387_v36 = vld [vmem:[#allocation17 + $0xe8] ss:$16 sps:$4 sm:$0xff]  }
 0xba8   :  { %v2814_v40 = vmul.f32 %v4832_v37, %v6239_v7  ;;  %v4834_v42 = vpop.eup %4833  ;;  %v6295_v7 = vld [vmem:[#allocation17] ss:$16 sps:$4 sm:$0xff]   ;;  %v4916_v37 = vld [vmem:[#allocation17 + $0xc] ss:$16 sps:$4 sm:$0xff]  }
 0xbaa   :  { %v6289_v41 = vadd.f32 %v2815_v38, %v2814_v40 }
 0xbac   :  { %4835 = vtanh.f32 %v6289_v41 }
 0xbb6   :  { %v4836_v45 = vpop.eup %4835 }
 0xbb7   :  { %v2818_v46 = vmul.f32 %v4836_v45, %v4834_v42 }
 0xbb9   :  { %v2820_v22 = vcombine.high %v2818_v46, %v2818_v46  ;;  %v2827_v17 = vrot.slane %v2818_v46, %v6096_v50  ;;  %v2885_v52 = vpack.c.bf16 %v2818_v46, %v2818_v46 }
 0xbbb   :  { %v2834_v21 = vrot.slane %v2820_v22, %v6096_v50  ;;  %v2835_v12 = vcombine.high %v2827_v17, %v2827_v17  ;;  %v2843_v24 = vrot.slane %v2827_v17, %v6096_v50  ;;  %4253 = vst.sshfl [vmem:[#allocation2 + $0x4] sm:$0x1 pattern:$0x73625140] %v2827_v17  ;;  %2919 = vmatmul.mubr.bf16.vlgmr.msra.gmra.mrb[36].mxu1 %v2885_v52 }
 0xbbc   :  { %2960 = vmatmul.mubr.bf16.vlgmr.msra.gmra.mrb[36].mxu0 %v2885_v52  ;;  %3064 = vmatpush1.bf16.msra.mxu1 %v6295_v7 }
 0xbbd   :  { %3105 = vmatpush1.bf16.msra.mxu0 %v6298_v20  ;;  %v2836_v43 = vcombine.high %v2834_v21, %v2834_v21  ;;  %v2850_v44 = vrot.slane %v2834_v21, %v6096_v50  ;;  %v2857_v53 = vrot.slane %v2835_v12, %v6096_v50  ;;  %v2865_v55 = vcombine.high %v2843_v24, %v2843_v24 }
 0xbbe   :  { %4254 = vst.sshfl [vmem:[#allocation2 + $0xc] sm:$0x1 pattern:$0x73625140] %v2835_v12  ;;  %3065 = vmatprep.subr.bf16.mxu1 %v6303_v54  ;;  %3106 = vmatprep.subr.bf16.mxu0 %v6306_v51 }
 0xbbf   :  { %4255 = vst.sshfl [vmem:[#allocation2 + $0x24] sm:$0x1 pattern:$0x73625140] %v2834_v21  ;;  %3095 = vmatprep.mubr.bf16.mxu1 %v5211_v0  ;;  %v2864_v23 = vrot.slane %v2836_v43, %v6096_v50  ;;  %v2866_v18 = vcombine.high %v2850_v44, %v2850_v44  ;;  %v2867_v47 = vcombine.high %v2857_v53, %v2857_v53  ;;  %2879 = vst [vmem:[#allocation2 + $0x14] sm:$0x1] %v2865_v55 }
 0xbc0   :  { %4256 = vst.sshfl [vmem:[#allocation2 + $0x2c] sm:$0x1 pattern:$0x73625140] %v2836_v43  ;;  %3136 = vmatprep.mubr.bf16.mxu0 %v5211_v0  ;;  %3066 = vmatpush1.bf16.msra.mxu1 %v6312_v48 }
 0xbc1   :  { %3107 = vmatpush1.bf16.msra.mxu0 %v6315_v13  ;;  %v2868_v19 = vcombine.high %v2864_v23, %v2864_v23  ;;  %2880 = vst [vmem:[#allocation2 + $0x1c] sm:$0x1] %v2867_v47  ;;  %2883 = vst [vmem:[#allocation2 + $0x34] sm:$0x1] %v2866_v18  ;;  %3067 = vmatprep.subr.bf16.mxu1 %v6318_v58 }
 0xbc2   :  { %3108 = vmatprep.subr.bf16.mxu0 %v6321_v26 }
 0xbc3   :  { %2884 = vst [vmem:[#allocation2 + $0x3c] sm:$0x1] %v2868_v19 }
 0xbc4   :  { %3068 = vmatpush1.bf16.msra.mxu1 %v6324_v61 }
 0xbc5   :  { %3109 = vmatpush1.bf16.msra.mxu0 %v6327_v62  ;;  %3069 = vmatprep.subr.bf16.mxu1 %v6330_v63 }
 0xbc6   :  { %3110 = vmatprep.subr.bf16.mxu0 %v6333_v2 }
 0xbc8   :  { %3070 = vmatpush1.bf16.msra.mxu1 %v6336_v3 }
 0xbc9   :  { %3111 = vmatpush1.bf16.msra.mxu0 %v6339_v4  ;;  %3071 = vmatprep.subr.bf16.mxu1 %v6342_v5 }
 0xbca   :  { %3112 = vmatprep.subr.bf16.mxu0 %v6345_v10 }
 0xbcc   :  { %3072 = vmatpush1.bf16.msra.mxu1 %v6348_v14 }
 0xbcd   :  { %3113 = vmatpush1.bf16.msra.mxu0 %v6351_v15  ;;  %3073 = vmatprep.subr.bf16.mxu1 %v6354_v16 }
 0xbce   :  { %3114 = vmatprep.subr.bf16.mxu0 %v6357_v27 }
 0xbd0   :  { %3074 = vmatpush1.bf16.msra.mxu1 %v6360_v28 }
 0xbd1   :  { %3115 = vmatpush1.bf16.msra.mxu0 %v6363_v29  ;;  %3075 = vmatprep.subr.bf16.mxu1 %v6366_v25 }
 0xbd2   :  { %3116 = vmatprep.subr.bf16.mxu0 %v6369_v30 }
 0xbd4   :  { %3076 = vmatpush1.bf16.msra.mxu1 %v6372_v31 }
 0xbd5   :  { %3117 = vmatpush1.bf16.msra.mxu0 %v6375_v32  ;;  %3077 = vmatprep.subr.bf16.mxu1 %v6378_v33 }
 0xbd6   :  { %3118 = vmatprep.subr.bf16.mxu0 %v6381_v34 }
 0xbd8   :  { %3078 = vmatpush1.bf16.msra.mxu1 %v6384_v35 }
 0xbd9   :  { %3119 = vmatpush1.bf16.msra.mxu0 %v6387_v36  ;;  %3240 = vmatprep.subr.bf16.mxu1 %v6280_v60 }
 0xbda   :  { %3281 = vmatprep.subr.bf16.mxu0 %v4916_v37 }
 0xc8e   :  { %v2920_v38 = vpop.f32.mrb[36].mxu1 }
 0xc8f   :  { %v2961_v39 = vpop.f32.mrb[36].mxu0  ;;  %v2968_v40 = vadd.f32 %v2920_v38, %v6075_v57  ;;  %v2922_v42 = vpop.f32.mrb[37].mxu1 }
 0xc90   :  { %v2963_v45 = vpop.f32.mrb[37].mxu0  ;;  %v2969_v46 = vadd.f32 %v2922_v42, %v6077_v59  ;;  %v2924_v22 = vpop.f32.mrb[38].mxu1  ;;  %v2970_v44 = vadd.f32 %v2961_v39, %v6088_v56 }
 0xc91   :  { %v2965_v17 = vpop.f32.mrb[38].mxu0  ;;  %v4257_v52 = vmul.f32 -1.442695, %v2968_v40  ;;  %v2925_v21 = vpop.f32.mrb[39].mxu1  ;;  %v2971_v60 = vadd.f32 %v2963_v45, %v6083_v49 }
 0xc92   :  { %v2966_v12 = vpop.f32.mrb[39].mxu0  ;;  %v4258_v24 = vmul.f32 -1.442695, %v2969_v46 }
 0xc93   :  { %4837 = vpow2.f32 %v4257_v52  ;;  %v4259_v43 = vmul.f32 -1.442695, %v2971_v60 }
 0xc94   :  { %4839 = vpow2.f32 %v4258_v24 }
 0xc95   :  { %4841 = vpow2.f32 %v4259_v43 }
 0xc96   :  { %4843 = vtanh.f32 %v2970_v44 }
 0xc9d   :  { %v4838_v53 = vpop.eup %4837 }
 0xc9e   :  { %v4840_v55 = vpop.eup %4839  ;;  %v2975_v23 = vadd.f32 1.0, %v4838_v53 }
 0xc9f   :  { %v2981_v18 = vadd.f32 1.0, %v4840_v55  ;;  %v4842_v47 = vpop.eup %4841 }
 0xca0   :  { %4845 = vrcp.f32 %v2975_v23  ;;  %v4844_v19 = vpop.eup %4843  ;;  %v2988_v42 = vadd.f32 1.0, %v4842_v47 }
 0xca1   :  { %4847 = vrcp.f32 %v2981_v18 }
 0xca2   :  { %4849 = vrcp.f32 %v2988_v42 }
 0xcaa   :  { %v4846_v37 = vpop.eup %4845 }
 0xcab   :  { %v4848_v38 = vpop.eup %4847  ;;  %v2992_v40 = vmul.f32 %v4846_v37, %v4844_v19 }
 0xcac   :  { %v2991_v46 = vmul.f32 %v4848_v38, %v6289_v41  ;;  %v4850_v39 = vpop.eup %4849 }
 0xcae   :  { %v6396_v45 = vadd.f32 %v2992_v40, %v2991_v46 }
 0xcb0   :  { %4851 = vtanh.f32 %v6396_v45 }
 0xcba   :  { %v4852_v22 = vpop.eup %4851 }
 0xcbb   :  { %v2995_v17 = vmul.f32 %v4852_v22, %v4850_v39 }
 0xcbd   :  { %v2997_v52 = vcombine.high %v2995_v17, %v2995_v17  ;;  %v3004_v21 = vrot.slane %v2995_v17, %v6096_v50  ;;  %v3062_v12 = vpack.c.bf16 %v2995_v17, %v2995_v17 }
 0xcbf   :  { %v3011_v24 = vrot.slane %v2997_v52, %v6096_v50  ;;  %v3012_v60 = vcombine.high %v3004_v21, %v3004_v21  ;;  %v3020_v43 = vrot.slane %v3004_v21, %v6096_v50  ;;  %4260 = vst.sshfl [vmem:[#allocation2 + $0x5] sm:$0x1 pattern:$0x73625140] %v3004_v21  ;;  %3096 = vmatmul.mubr.bf16.vlgmr.msra.gmra.mrb[40].mxu1 %v3062_v12 }
 0xcc0   :  { %3137 = vmatmul.mubr.bf16.vlgmr.msra.gmra.mrb[40].mxu0 %v3062_v12  ;;  %3241 = vmatpush1.bf16.msra.mxu1 %v6295_v7 }
 0xcc1   :  { %3282 = vmatpush1.bf16.msra.mxu0 %v6298_v20  ;;  %v3013_v41 = vcombine.high %v3011_v24, %v3011_v24  ;;  %v3027_v44 = vrot.slane %v3011_v24, %v6096_v50  ;;  %v3034_v53 = vrot.slane %v3012_v60, %v6096_v50  ;;  %v3042_v55 = vcombine.high %v3020_v43, %v3020_v43  ;;  %v3425_v43 = vld [vmem:[%s6669_s17 + $0x8] sm:$0xff] }
 0xcc2   :  { %4261 = vst.sshfl [vmem:[#allocation2 + $0xd] sm:$0x1 pattern:$0x73625140] %v3012_v60  ;;  %3242 = vmatprep.subr.bf16.mxu1 %v6303_v54  ;;  %3283 = vmatprep.subr.bf16.mxu0 %v6306_v51  ;;  %v3424_v60 = vld [vmem:[%s6669_s17] sm:$0xff] }
 0xcc3   :  { %4262 = vst.sshfl [vmem:[#allocation2 + $0x25] sm:$0x1 pattern:$0x73625140] %v3011_v24  ;;  %3272 = vmatprep.mubr.bf16.mxu1 %v5211_v0  ;;  %v3041_v23 = vrot.slane %v3013_v41, %v6096_v50  ;;  %v3043_v18 = vcombine.high %v3027_v44, %v3027_v44  ;;  %v3044_v7 = vcombine.high %v3034_v53, %v3034_v53  ;;  %3056 = vst [vmem:[#allocation2 + $0x15] sm:$0x1] %v3042_v55 }
 0xcc4   :  { %4263 = vst.sshfl [vmem:[#allocation2 + $0x2d] sm:$0x1 pattern:$0x73625140] %v3013_v41  ;;  %3313 = vmatprep.mubr.bf16.mxu0 %v5211_v0  ;;  %3243 = vmatpush1.bf16.msra.mxu1 %v6312_v48  ;;  %v4424_v41 = vpack.c.bf16 %v3425_v43, %v3424_v60  ;;  %v3426_v44 = vld [vmem:[%s6669_s17 + $0x10] sm:$0xff]  ;;  %v3427_v53 = vld [vmem:[%s6669_s17 + $0x18] sm:$0xff] }
 0xcc5   :  { %3284 = vmatpush1.bf16.msra.mxu0 %v6315_v13  ;;  %v3045_v20 = vcombine.high %v3041_v23, %v3041_v23  ;;  %3057 = vst [vmem:[#allocation2 + $0x1d] sm:$0x1] %v3044_v7  ;;  %3060 = vst [vmem:[#allocation2 + $0x35] sm:$0x1] %v3043_v18  ;;  %3244 = vmatprep.subr.bf16.mxu1 %v6318_v58  ;;  %v4428_v55 = vpack.c.bf16 %v3427_v53, %v3426_v44  ;;  %v3428_v23 = vld [vmem:[%s6669_s17 + $0x20] sm:$0xff]  ;;  %v3429_v18 = vld [vmem:[%s6669_s17 + $0x28] sm:$0xff] }
 0xcc6   :  { %3285 = vmatprep.subr.bf16.mxu0 %v6321_v26  ;;  %v4432_v7 = vpack.c.bf16 %v3429_v18, %v3428_v23 }
 0xcc7   :  { %3061 = vst [vmem:[#allocation2 + $0x3d] sm:$0x1] %v3045_v20  ;;  %v3430_v20 = vld [vmem:[%s6669_s17 + $0x30] sm:$0xff] }
 0xcc8   :  { %3245 = vmatpush1.bf16.msra.mxu1 %v6324_v61 }
 0xcc9   :  { %3286 = vmatpush1.bf16.msra.mxu0 %v6327_v62  ;;  %3246 = vmatprep.subr.bf16.mxu1 %v6330_v63 }
 0xcca   :  { %3287 = vmatprep.subr.bf16.mxu0 %v6333_v2 }
 0xccc   :  { %3247 = vmatpush1.bf16.msra.mxu1 %v6336_v3 }
 0xccd   :  { %3288 = vmatpush1.bf16.msra.mxu0 %v6339_v4  ;;  %3248 = vmatprep.subr.bf16.mxu1 %v6342_v5 }
 0xcce   :  { %3289 = vmatprep.subr.bf16.mxu0 %v6345_v10 }
 0xcd0   :  { %3249 = vmatpush1.bf16.msra.mxu1 %v6348_v14 }
 0xcd1   :  { %3290 = vmatpush1.bf16.msra.mxu0 %v6351_v15  ;;  %3250 = vmatprep.subr.bf16.mxu1 %v6354_v16 }
 0xcd2   :  { %3291 = vmatprep.subr.bf16.mxu0 %v6357_v27 }
 0xcd4   :  { %3251 = vmatpush1.bf16.msra.mxu1 %v6360_v28 }
 0xcd5   :  { %3292 = vmatpush1.bf16.msra.mxu0 %v6363_v29  ;;  %3252 = vmatprep.subr.bf16.mxu1 %v6366_v25 }
 0xcd6   :  { %3293 = vmatprep.subr.bf16.mxu0 %v6369_v30 }
 0xcd8   :  { %3253 = vmatpush1.bf16.msra.mxu1 %v6372_v31 }
 0xcd9   :  { %3294 = vmatpush1.bf16.msra.mxu0 %v6375_v32  ;;  %3254 = vmatprep.subr.bf16.mxu1 %v6378_v33 }
 0xcda   :  { %3295 = vmatprep.subr.bf16.mxu0 %v6381_v34 }
 0xcdc   :  { %3255 = vmatpush1.bf16.msra.mxu1 %v6384_v35 }
 0xcdd   :  { %3296 = vmatpush1.bf16.msra.mxu0 %v6387_v36  ;;  %4425 = vmatprep.subr.bf16.mxu1 %v4424_v41 }
 0xd92   :  { %v3097_v0 = vpop.f32.mrb[40].mxu1 }
 0xd93   :  { %v3138_v54 = vpop.f32.mrb[40].mxu0  ;;  %v3145_v51 = vadd.f32 %v3097_v0, %v6075_v57  ;;  %v3099_v48 = vpop.f32.mrb[41].mxu1  ;;  %v3431_v0 = vld [vmem:[%s6669_s17 + $0x38] sm:$0xff] }
 0xd94   :  { %v3140_v13 = vpop.f32.mrb[41].mxu0  ;;  %v3146_v58 = vadd.f32 %v3099_v48, %v6077_v59  ;;  %v3101_v26 = vpop.f32.mrb[42].mxu1  ;;  %v3147_v10 = vadd.f32 %v3138_v54, %v6088_v56  ;;  %v4436_v54 = vpack.c.bf16 %v3431_v0, %v3430_v20  ;;  %v3433_v48 = vld [vmem:[%s6669_s17 + $0x48] sm:$0xff] }
 0xd95   :  { %v3142_v61 = vpop.f32.mrb[42].mxu0  ;;  %v4264_v62 = vmul.f32 -1.442695, %v3145_v51  ;;  %v3102_v63 = vpop.f32.mrb[43].mxu1  ;;  %v3148_v4 = vadd.f32 %v3140_v13, %v6083_v49  ;;  %v3432_v51 = vld [vmem:[%s6669_s17 + $0x40] sm:$0xff]  ;;  %v3435_v26 = vld [vmem:[%s6669_s17 + $0x58] sm:$0xff] }
 0xd96   :  { %v3143_v2 = vpop.f32.mrb[43].mxu0  ;;  %v4265_v3 = vmul.f32 -1.442695, %v3146_v58  ;;  %v4440_v13 = vpack.c.bf16 %v3433_v48, %v3432_v51  ;;  %v3434_v58 = vld [vmem:[%s6669_s17 + $0x50] sm:$0xff]  ;;  %v3437_v63 = vld [vmem:[%s6669_s17 + $0x68] sm:$0xff] }
 0xd97   :  { %4853 = vpow2.f32 %v4264_v62  ;;  %v4266_v5 = vmul.f32 -1.442695, %v3148_v4  ;;  %v4444_v61 = vpack.c.bf16 %v3435_v26, %v3434_v58  ;;  %v3436_v62 = vld [vmem:[%s6669_s17 + $0x60] sm:$0xff]  ;;  %v3439_v4 = vld [vmem:[%s6669_s17 + $0x78] sm:$0xff] }
 0xd98   :  { %4855 = vpow2.f32 %v4265_v3  ;;  %v4448_v2 = vpack.c.bf16 %v3437_v63, %v3436_v62  ;;  %v3438_v3 = vld [vmem:[%s6669_s17 + $0x70] sm:$0xff] }
 0xd99   :  { %4857 = vpow2.f32 %v4266_v5  ;;  %v4452_v5 = vpack.c.bf16 %v3439_v4, %v3438_v3  ;;  %v3562_v63 = vld [vmem:[%s6671_s19 + $0x10] sm:$0xff]  ;;  %v3564_v4 = vld [vmem:[%s6671_s19 + $0x20] sm:$0xf] }
 0xd9a   :  { %4859 = vtanh.f32 %v3147_v10  ;;  %v3560_v10 = vld [vmem:[%s6671_s19] sm:$0xff] }
 0xda1   :  { %v4854_v14 = vpop.eup %4853 }
 0xda2   :  { %v4856_v15 = vpop.eup %4855  ;;  %v3152_v16 = vadd.f32 1.0, %v4854_v14  ;;  %v3561_v14 = vld [vmem:[%s6671_s19 + $0x8] sm:$0xff] }
 0xda3   :  { %v3158_v27 = vadd.f32 1.0, %v4856_v15  ;;  %v4858_v28 = vpop.eup %4857  ;;  %v4456_v15 = vpack.c.bf16 %v3561_v14, %v3560_v10  ;;  %v3716_v10 = vld [vmem:[#allocation18 + $0x18] sm:$0xff]  ;;  %v3713_v14 = vld [vmem:[#allocation18] sm:$0xff] }
 0xda4   :  { %4861 = vrcp.f32 %v3152_v16  ;;  %v4860_v29 = vpop.eup %4859  ;;  %v3165_v32 = vadd.f32 1.0, %v4858_v28 }
 0xda5   :  { %4863 = vrcp.f32 %v3158_v27  ;;  %4457 = vmatprep.subr.bf16.mxu0 %v4456_v15 }
 0xda6   :  { %4865 = vrcp.f32 %v3165_v32 }
 0xdae   :  { %v4862_v25 = vpop.eup %4861 }
 0xdaf   :  { %v4864_v30 = vpop.eup %4863  ;;  %v3169_v31 = vmul.f32 %v4862_v25, %v4860_v29 }
 0xdb0   :  { %v3168_v33 = vmul.f32 %v4864_v30, %v6396_v45  ;;  %v4866_v35 = vpop.eup %4865 }
 0xdb2   :  { %v6442_v34 = vadd.f32 %v3169_v31, %v3168_v33 }
 0xdb4   :  { %4867 = vtanh.f32 %v6442_v34 }
 0xdbe   :  { %v4868_v36 = vpop.eup %4867 }
 0xdbf   :  { %v3172_v47 = vmul.f32 %v4868_v36, %v4866_v35 }
 0xdc1   :  { %v3174_v19 = vcombine.high %v3172_v47, %v3172_v47  ;;  %v3181_v37 = vrot.slane %v3172_v47, %v6096_v50  ;;  %v3239_v38 = vpack.c.bf16 %v3172_v47, %v3172_v47 }
 0xdc3   :  { %v3188_v40 = vrot.slane %v3174_v19, %v6096_v50  ;;  %v3189_v42 = vcombine.high %v3181_v37, %v3181_v37  ;;  %v3197_v46 = vrot.slane %v3181_v37, %v6096_v50  ;;  %4267 = vst.sshfl [vmem:[#allocation2 + $0x6] sm:$0x1 pattern:$0x73625140] %v3181_v37  ;;  %3273 = vmatmul.mubr.bf16.vlgmr.msra.gmra.mrb[44].mxu1 %v3239_v38 }
 0xdc4   :  { %3314 = vmatmul.mubr.bf16.vlgmr.msra.gmra.mrb[44].mxu0 %v3239_v38  ;;  %4427 = vmatpush3.bf16.msra.mxu1 %v4424_v41 }
 0xdc5   :  { %v3190_v45 = vcombine.high %v3188_v40, %v3188_v40  ;;  %v3204_v39 = vrot.slane %v3188_v40, %v6096_v50  ;;  %v3211_v22 = vrot.slane %v3189_v42, %v6096_v50  ;;  %v3219_v17 = vcombine.high %v3197_v46, %v3197_v46  ;;  %4268 = vst.sshfl [vmem:[#allocation2 + $0xe] sm:$0x1 pattern:$0x73625140] %v3189_v42 }
 0xdc6   :  { %4269 = vst.sshfl [vmem:[#allocation2 + $0x26] sm:$0x1 pattern:$0x73625140] %v3188_v40  ;;  %4429 = vmatprep.subr.bf16.mxu1 %v4428_v55  ;;  %4459 = vmatpush3.bf16.msra.mxu0 %v4456_v15 }
 0xdc7   :  { %v3218_v52 = vrot.slane %v3190_v45, %v6096_v50  ;;  %v3220_v21 = vcombine.high %v3204_v39, %v3204_v39  ;;  %v3221_v12 = vcombine.high %v3211_v22, %v3211_v22  ;;  %3233 = vst [vmem:[#allocation2 + $0x16] sm:$0x1] %v3219_v17  ;;  %4270 = vst.sshfl [vmem:[#allocation2 + $0x2e] sm:$0x1 pattern:$0x73625140] %v3190_v45 }
 0xdc8   :  { %4431 = vmatpush3.bf16.msra.mxu1 %v4428_v55 }
 0xdc9   :  { %v3222_v24 = vcombine.high %v3218_v52, %v3218_v52  ;;  %3234 = vst [vmem:[#allocation2 + $0x1e] sm:$0x1] %v3221_v12  ;;  %3237 = vst [vmem:[#allocation2 + $0x36] sm:$0x1] %v3220_v21  ;;  %4433 = vmatprep.subr.bf16.mxu1 %v4432_v7 }
 0xdcb   :  { %3238 = vst [vmem:[#allocation2 + $0x3e] sm:$0x1] %v3222_v24 }
 0xdcc   :  { %4435 = vmatpush3.bf16.msra.mxu1 %v4432_v7 }
 0xdcd   :  { %4437 = vmatprep.subr.bf16.mxu1 %v4436_v54 }
 0xdd0   :  { %4439 = vmatpush3.bf16.msra.mxu1 %v4436_v54 }
 0xdd1   :  { %4441 = vmatprep.subr.bf16.mxu1 %v4440_v13 }
 0xdd4   :  { %4443 = vmatpush3.bf16.msra.mxu1 %v4440_v13 }
 0xdd5   :  { %4445 = vmatprep.subr.bf16.mxu1 %v4444_v61 }
 0xdd8   :  { %4447 = vmatpush3.bf16.msra.mxu1 %v4444_v61 }
 0xdd9   :  { %4449 = vmatprep.subr.bf16.mxu1 %v4448_v2 }
 0xddc   :  { %4451 = vmatpush3.bf16.msra.mxu1 %v4448_v2  ;;  %v3563_v2 = vld [vmem:[%s6671_s19 + $0x18] sm:$0xff] }
 0xddd   :  { %4453 = vmatprep.subr.bf16.mxu1 %v4452_v5  ;;  %v4460_v3 = vpack.c.bf16 %v3563_v2, %v3562_v63 }
 0xddf   :  { %4461 = vmatprep.subr.bf16.mxu0 %v4460_v3 }
 0xde0   :  { %4455 = vmatpush3.bf16.msra.mxu1 %v4452_v5  ;;  %4463 = vmatpush3.bf16.msra.mxu0 %v4460_v3  ;;  %v3714_v5 = vld [vmem:[#allocation18 + $0x8] sm:$0xff] }
 0xde1   :  { %4399 = vmatprep.subr.msk.mxu0 %vm1045_vm6, %v3564_v4  ;;  %v4464_v15 = vpack.c.bf16 %v3716_v10, %v3714_v5 }
 0xde3   :  { %4480 = vmatprep.subr.bf16.mxu1 %v4464_v15 }
 0xde4   :  { %4400 = vmatpush3.msk.msra.mxu0 %vm1045_vm6, %v3564_v4 }
 0xde5   :  { %4465 = vmatprep.subr.bf16.mxu0 %v4464_v15 }
 0xe96   :  { %v3274_v16 = vpop.f32.mrb[44].mxu1 }
 0xe97   :  { %v3315_v27 = vpop.f32.mrb[44].mxu0  ;;  %v3322_v28 = vadd.f32 %v3274_v16, %v6075_v57  ;;  %v3276_v29 = vpop.f32.mrb[45].mxu1  ;;  %v3715_v16 = vld [vmem:[#allocation18 + $0x10] sm:$0xff] }
 0xe98   :  { %v3317_v25 = vpop.f32.mrb[45].mxu0  ;;  %v3323_v30 = vadd.f32 %v3276_v29, %v6077_v59  ;;  %v3278_v31 = vpop.f32.mrb[46].mxu1  ;;  %v3324_v38 = vadd.f32 %v3315_v27, %v6088_v56  ;;  %v3718_v27 = vld [vmem:[#allocation18 + $0x28] sm:$0xff]  ;;  %v4466_v29 = vpack.c.bf16 %v3715_v16, %v3713_v14 }
 0xe99   :  { %v3319_v32 = vpop.f32.mrb[46].mxu0  ;;  %v4271_v33 = vmul.f32 -1.442695, %v3322_v28  ;;  %v3279_v35 = vpop.f32.mrb[47].mxu1  ;;  %v3325_v19 = vadd.f32 %v3317_v25, %v6083_v49  ;;  %v3720_v28 = vld [vmem:[#allocation18 + $0x38] sm:$0xff]  ;;  %v3719_v31 = vld [vmem:[#allocation18 + $0x30] sm:$0xff] }
 0xe9a   :  { %v3320_v36 = vpop.f32.mrb[47].mxu0  ;;  %v4272_v47 = vmul.f32 -1.442695, %v3323_v30  ;;  %v4468_v25 = vpack.c.bf16 %v3720_v28, %v3718_v27  ;;  %v3717_v30 = vld [vmem:[#allocation18 + $0x20] sm:$0xff]  ;;  %v3722_v32 = vld [vmem:[#allocation18 + $0x48] sm:$0xff] }
 0xe9b   :  { %4869 = vpow2.f32 %v4271_v33  ;;  %v4273_v37 = vmul.f32 -1.442695, %v3325_v19  ;;  %v3724_v33 = vld [vmem:[#allocation18 + $0x58] sm:$0xff]  ;;  %v4470_v35 = vpack.c.bf16 %v3719_v31, %v3717_v30  ;;  %v3723_v19 = vld [vmem:[#allocation18 + $0x50] sm:$0xff] }
 0xe9c   :  { %4871 = vpow2.f32 %v4272_v47  ;;  %v4472_v36 = vpack.c.bf16 %v3724_v33, %v3722_v32  ;;  %v3721_v47 = vld [vmem:[#allocation18 + $0x40] sm:$0xff] }
 0xe9d   :  { %4873 = vpow2.f32 %v4273_v37  ;;  %v3726_v37 = vld [vmem:[#allocation18 + $0x68] sm:$0xff] }
 0xe9e   :  { %4875 = vtanh.f32 %v3324_v38  ;;  %v3728_v38 = vld [vmem:[#allocation18 + $0x78] sm:$0xff] }
 0xea5   :  { %v4870_v40 = vpop.eup %4869 }
 0xea6   :  { %v4872_v42 = vpop.eup %4871  ;;  %v3329_v57 = vadd.f32 1.0, %v4870_v40  ;;  %v4474_v40 = vpack.c.bf16 %v3723_v19, %v3721_v47 }
 0xea7   :  { %v3335_v46 = vadd.f32 1.0, %v4872_v42  ;;  %v4874_v59 = vpop.eup %4873  ;;  %v4476_v42 = vpack.c.bf16 %v3728_v38, %v3726_v37  ;;  %v3731_v37 = vld [vmem:[%s6707_s13] sm:$0x3] }
 0xea8   :  { %4877 = vrcp.f32 %v3329_v57  ;;  %v4876_v45 = vpop.eup %4875  ;;  %v3342_v52 = vadd.f32 1.0, %v4874_v59  ;;  %v3725_v57 = vld [vmem:[#allocation18 + $0x60] sm:$0xff]  ;;  %v6561_v38 = vrot.slane %v3731_v37, %v5790_v8 }
 0xea9   :  { %4879 = vrcp.f32 %v3335_v46  ;;  %v3727_v46 = vld [vmem:[#allocation18 + $0x70] sm:$0xff] }
 0xeaa   :  { %4881 = vrcp.f32 %v3342_v52  ;;  %v4478_v59 = vpack.c.bf16 %v3727_v46, %v3725_v57  ;;  %v3899_v46 = vrot.slane %v5606_v6, 1 }
 0xeb2   :  { %v4878_v39 = vpop.eup %4877 }
 0xeb3   :  { %v4880_v22 = vpop.eup %4879  ;;  %v3346_v17 = vmul.f32 %v4878_v39, %v4876_v45  ;;  %v4278_v45 = vld [vmem:[%s6670_s18] ss:$0 sm:$0xff] }
 0xeb4   :  { %v3345_v21 = vmul.f32 %v4880_v22, %v6442_v34  ;;  %v4882_v56 = vpop.eup %4881 }
 0xeb6   :  { %v3347_v49 = vadd.f32 %v3346_v17, %v3345_v21 }
 0xeb8   :  { %4883 = vtanh.f32 %v3347_v49 }
 0xec2   :  { %v4884_v12 = vpop.eup %4883 }
 0xec3   :  { %v3349_v24 = vmul.f32 %v4884_v12, %v4882_v56 }
 0xec5   :  { %v3351_v60 = vcombine.high %v3349_v24, %v3349_v24  ;;  %v3358_v43 = vrot.slane %v3349_v24, %v6096_v50 }
 0xec7   :  { %v3365_v41 = vrot.slane %v3351_v60, %v6096_v50  ;;  %v3366_v44 = vcombine.high %v3358_v43, %v3358_v43  ;;  %v3374_v53 = vrot.slane %v3358_v43, %v6096_v50  ;;  %4274 = vst.sshfl [vmem:[#allocation2 + $0x7] sm:$0x1 pattern:$0x73625140] %v3358_v43 }
 0xec9   :  { %v3367_v55 = vcombine.high %v3365_v41, %v3365_v41  ;;  %v3381_v23 = vrot.slane %v3365_v41, %v6096_v50  ;;  %v3388_v34 = vrot.slane %v3366_v44, %v6096_v50  ;;  %v3396_v18 = vcombine.high %v3374_v53, %v3374_v53  ;;  %4275 = vst.sshfl [vmem:[#allocation2 + $0xf] sm:$0x1 pattern:$0x73625140] %v3366_v44 }
 0xeca   :  { %4276 = vst.sshfl [vmem:[#allocation2 + $0x27] sm:$0x1 pattern:$0x73625140] %v3365_v41 }
 0xecb   :  { %v3395_v7 = vrot.slane %v3367_v55, %v6096_v50  ;;  %v3397_v20 = vcombine.high %v3381_v23, %v3381_v23  ;;  %v3398_v0 = vcombine.high %v3388_v34, %v3388_v34  ;;  %3410 = vst [vmem:[#allocation2 + $0x17] sm:$0x1] %v3396_v18  ;;  %4277 = vst.sshfl [vmem:[#allocation2 + $0x2f] sm:$0x1 pattern:$0x73625140] %v3367_v55 }
 0xecd   :  { %v3399_v54 = vcombine.high %v3395_v7, %v3395_v7  ;;  %3411 = vst [vmem:[#allocation2 + $0x1f] sm:$0x1] %v3398_v0  ;;  %3414 = vst [vmem:[#allocation2 + $0x37] sm:$0x1] %v3397_v20 }
 0xece   :  { %v3416_v51 = vld [vmem:[#allocation2] sm:$0xff] }
 0xecf   :  { %3415 = vst [vmem:[#allocation2 + $0x3f] sm:$0x1] %v3399_v54  ;;  %4379 = vmatprep.mubr.f32.mxu1 %v3416_v51 }
 0xed0   :  { %v3417_v48 = vld [vmem:[#allocation2 + $0x8] sm:$0xff] }
 0xed1   :  { %4380 = vmatmul.mubr.f32.vlgmr.msra.gmra.mrb[2].mxu1 %v3417_v48  ;;  %v3420_v26 = vld [vmem:[#allocation2 + $0x20] sm:$0xff] }
 0xed2   :  { %v3418_v13 = vld [vmem:[#allocation2 + $0x10] sm:$0xff]  ;;  %v3421_v61 = vld [vmem:[#allocation2 + $0x28] sm:$0xff]  ;;  %4485 = vmatpush1.bf16.msra.mxu1 %v4466_v29 }
 0xed3   :  { %4382 = vmatprep.mubr.f32.mxu1 %v3418_v13  ;;  %4481 = vmatprep.subr.bf16.mxu1 %v4468_v25  ;;  %v3730_v13 = vld [vmem:[#allocation18 + $0x88] sm:$0xff] }
 0xed4   :  { %v3419_v58 = vld [vmem:[#allocation2 + $0x18] sm:$0xff]  ;;  %v3422_v50 = vld [vmem:[#allocation2 + $0x30] sm:$0xff] }
 0xed5   :  { %4383 = vmatmul.mubr.f32.gmra.mrb[48].mxu1 %v3419_v58  ;;  %v3729_v58 = vld [vmem:[#allocation18 + $0x80] sm:$0xff] }
 0xed6   :  { %4385 = vmatprep.mubr.f32.mxu1 %v3420_v26  ;;  %v3423_v62 = vld [vmem:[#allocation2 + $0x38] sm:$0xff]  ;;  %4486 = vmatpush1.bf16.msra.mxu1 %v4470_v35  ;;  %v4279_v26 = vld [vmem:[%s6672_s20] ss:$0 sm:$0xff] }
 0xed7   :  { %4482 = vmatprep.subr.bf16.mxu1 %v4472_v36 }
 0xed9   :  { %4386 = vmatmul.mubr.f32.gmra.mrb[50].mxu1 %v3421_v61 }
 0xeda   :  { %4388 = vmatprep.mubr.f32.mxu1 %v3422_v50  ;;  %4487 = vmatpush1.bf16.msra.mxu1 %v4474_v40 }
 0xedb   :  { %4483 = vmatprep.subr.bf16.mxu1 %v4476_v42 }
 0xedd   :  { %4389 = vmatmul.mubr.f32.gmra.mrb[52].mxu1 %v3423_v62 }
 0xede   :  { %3868 = vmatprep.mubr.f32.mxu1 %v5212_v1  ;;  %4488 = vmatpush1.bf16.msra.mxu1 %v4478_v59 }
 0xedf   :  { %4484 = vmatprep.subr.mxu1 %v3730_v13 }
 0xee2   :  { %4489 = vmatpush1.msra.mxu1 %v3729_v58 }
 0xfa4   :  { %v4381_v39 = vpop.f32.mrb[2].mxu1 }
 0xfa5   :  { %v3519_v22 = vadd.f32 %v4381_v39, %v4278_v45  ;;  %v3513_v17 = vpop.f32.mrb[3].mxu1 }
 0xfa6   :  { %v3514_v52 = vadd.f32 %v4278_v45, %v3513_v17 }
 0xfa7   :  { %v3553_v56 = vmax.f32 %v3519_v22, 0.0 }
 0xfa8   :  { %v3552_v21 = vmax.f32 %v3514_v52, 0.0  ;;  %v4384_v49 = vpop.f32.mrb[48].mxu1 }
 0xfa9   :  { %v3529_v12 = vadd.f32 %v4384_v49, %v4278_v45  ;;  %v3523_v24 = vpop.f32.mrb[49].mxu1  ;;  %v3902_v49 = vrot.slane %v5611_v9, 2 }
 0xfaa   :  { %v3524_v60 = vadd.f32 %v4278_v45, %v3523_v24  ;;  %4401 = vmatprep.mubr.msk.f32.mxu0 %vm3572_vm13, %v3552_v21 }
 0xfab   :  { %4402 = vmatmul.mubr.msk.f32.vlgmr.msra.gmra.mrb[48].mxu0 %vm3572_vm13, %v3553_v56  ;;  %v3555_v44 = vmax.f32 %v3529_v12, 0.0 }
 0xfac   :  { %v3554_v43 = vmax.f32 %v3524_v60, 0.0  ;;  %v4387_v41 = vpop.f32.mrb[50].mxu1  ;;  %4467 = vmatpush1.bf16.msra.mxu0 %v4466_v29 }
 0xfad   :  { %v3539_v53 = vadd.f32 %v4387_v41, %v4278_v45  ;;  %v3533_v55 = vpop.f32.mrb[51].mxu1  ;;  %4469 = vmatprep.subr.bf16.mxu0 %v4468_v25 }
 0xfae   :  { %v3534_v23 = vadd.f32 %v4278_v45, %v3533_v55  ;;  %4404 = vmatprep.mubr.msk.f32.mxu0 %vm3572_vm13, %v3554_v43 }
 0xfaf   :  { %4405 = vmatmul.mubr.msk.f32.gmra.mrb[50].mxu0 %vm3572_vm13, %v3555_v44  ;;  %v3557_v7 = vmax.f32 %v3539_v53, 0.0  ;;  %v3903_v44 = vrot.slane %v5606_v6, 3 }
 0xfb0   :  { %v3556_v34 = vmax.f32 %v3534_v23, 0.0  ;;  %v4390_v18 = vpop.f32.mrb[52].mxu1  ;;  %4471 = vmatpush1.bf16.msra.mxu0 %v4470_v35 }
 0xfb1   :  { %v3549_v20 = vadd.f32 %v4390_v18, %v4278_v45  ;;  %v3543_v0 = vpop.f32.mrb[53].mxu1  ;;  %4473 = vmatprep.subr.bf16.mxu0 %v4472_v36  ;;  %v3904_v18 = vrot.slane %v5611_v9, 3 }
 0xfb2   :  { %v3544_v54 = vadd.f32 %v4278_v45, %v3543_v0  ;;  %4407 = vmatprep.mubr.msk.f32.mxu0 %vm3572_vm13, %v3556_v34  ;;  %v3900_v45 = vrot.slane %v5611_v9, 1  ;;  %v3905_v0 = vrot.slane %v5606_v6, 4 }
 0xfb3   :  { %4408 = vmatmul.mubr.msk.f32.gmra.mrb[52].mxu0 %vm3572_vm13, %v3557_v7  ;;  %v3559_v48 = vmax.f32 %v3549_v20, 0.0 }
 0xfb4   :  { %v3558_v51 = vmax.f32 %v3544_v54, 0.0  ;;  %4475 = vmatpush1.bf16.msra.mxu0 %v4474_v40  ;;  %v6564_v40 = vrot.slane %v3731_v37, %v5793_v11  ;;  %v3901_v11 = vrot.slane %v5606_v6, 2 }
 0xfb5   :  { %4477 = vmatprep.subr.bf16.mxu0 %v4476_v42 }
 0xfb6   :  { %4410 = vmatprep.mubr.msk.f32.mxu0 %vm3572_vm13, %v3558_v51 }
 0xfb7   :  { %4411 = vmatmul.mubr.msk.f32.gmra.mrb[54].mxu0 %vm3572_vm13, %v3559_v48 }
 0xfb8   :  { %4479 = vmatpush1.bf16.msra.mxu0 %v4478_v59  ;;  %3832 = vmatprep.mubr.f32.mxu0 %v5212_v1 }
 0xfb9   :  { %3784 = vmatprep.subr.mxu0 %v3730_v13 }
 0xfbc   :  { %3785 = vmatpush1.msra.mxu0 %v3729_v58  ;;  %v3911_v58 = vrot.slane %v5606_v6, 7 }
0x107e   :  { %v4403_v61 = vpop.f32.mrb[48].mxu0 }
0x107f   :  { %v3666_v50 = vpop.f32.mrb[49].mxu0  ;;  %v3672_v63 = vadd.f32 %v4403_v61, %v4279_v26 }
0x1080   :  { %v3667_v62 = vadd.f32 %v4279_v26, %v3666_v50 }
0x1081   :  { %v3706_v5 = vmax.f32 %v3672_v63, 0.0  ;;  %v3906_v63 = vrot.slane %v5611_v9, 4 }
0x1082   :  { %v3705_v2 = vmax.f32 %v3667_v62, 0.0  ;;  %v4406_v3 = vpop.f32.mrb[50].mxu0 }
0x1083   :  { %v3676_v4 = vpop.f32.mrb[51].mxu0  ;;  %v3682_v16 = vadd.f32 %v4406_v3, %v4279_v26 }
0x1084   :  { %4289 = vmatmul.mubr.msk.f32.vlgmr.msra.gmra.mrb[56].mxu0 %vm3743_vm14, %v3705_v2  ;;  %v3677_v10 = vadd.f32 %v4279_v26, %v3676_v4 }
0x1085   :  { %3838 = vmatprep.mubr.f32.mxu0 %v5212_v1  ;;  %v3708_v30 = vmax.f32 %v3682_v16, 0.0 }
0x1086   :  { %v4409_v14 = vpop.f32.mrb[52].mxu0  ;;  %v3707_v27 = vmax.f32 %v3677_v10, 0.0  ;;  %v3912_v10 = vrot.slane %v5611_v9, 7 }
0x1087   :  { %v3686_v15 = vpop.f32.mrb[53].mxu0  ;;  %v3692_v35 = vadd.f32 %v4409_v14, %v4279_v26 }
0x1088   :  { %4290 = vmatmul.mubr.msk.f32.gmra.mrb[58].mxu0 %vm3743_vm14, %v3706_v5  ;;  %v3687_v31 = vadd.f32 %v4279_v26, %v3686_v15 }
0x1089   :  { %3844 = vmatprep.mubr.f32.mxu0 %v5212_v1  ;;  %v3710_v19 = vmax.f32 %v3692_v35, 0.0 }
0x108a   :  { %v4412_v28 = vpop.f32.mrb[54].mxu0  ;;  %v3709_v36 = vmax.f32 %v3687_v31, 0.0 }
0x108b   :  { %v3696_v29 = vpop.f32.mrb[55].mxu0  ;;  %v3702_v32 = vadd.f32 %v4412_v28, %v4279_v26 }
0x108c   :  { %v3697_v25 = vadd.f32 %v4279_v26, %v3696_v29  ;;  %4291 = vmatmul.mubr.msk.f32.gmra.mrb[60].mxu0 %vm3743_vm14, %v3707_v27 }
0x108d   :  { %3850 = vmatprep.mubr.f32.mxu0 %v5212_v1  ;;  %v3712_v47 = vmax.f32 %v3702_v32, 0.0 }
0x108e   :  { %v3711_v33 = vmax.f32 %v3697_v25, 0.0 }
0x1090   :  { %4292 = vmatmul.mubr.msk.f32.gmra.mrb[62].mxu0 %vm3743_vm14, %v3708_v30  ;;  %4295 = vmatmul.mubr.msk.f32.vlgmr.msra.gmra.mrb[54].mxu1 %vm3743_vm14, %v3711_v33  ;;  %v3907_v33 = vrot.slane %v5606_v6, 5 }
0x1091   :  { %3856 = vmatprep.mubr.f32.mxu0 %v5212_v1  ;;  %3874 = vmatprep.mubr.f32.mxu1 %v5212_v1 }
0x1094   :  { %4293 = vmatmul.mubr.msk.f32.gmra.mrb[64].mxu0 %vm3743_vm14, %v3709_v36  ;;  %4296 = vmatmul.mubr.msk.f32.gmra.mrb[56].mxu1 %vm3743_vm14, %v3712_v47 }
0x1095   :  { %3862 = vmatprep.mubr.f32.mxu0 %v5212_v1 }
0x1098   :  { %4294 = vmatmul.mubr.msk.f32.gmra.mrb[66].mxu0 %vm3743_vm14, %v3710_v19 }
0x1157   :  { %v3834_v42 = vpop.f32.mrb[56].mxu0 }
0x1158   :  { %v3835_v57 = vadd.f32 %v3834_v42, %v6561_v38  ;;  %v3836_v59 = vpop.f32.mrb[57].mxu0  ;;  %v3908_v42 = vrot.slane %v5611_v9, 5 }
0x1159   :  { %v3837_v1 = vadd.f32 %v3836_v59, %v6564_v40 }
0x115a   :  { %3881 = vst [vmem:[#allocation21] sm:$0xff] %v3835_v57  ;;  %v3929_v39 = vsub.f32 %v3835_v57, %v3899_v46 }
0x115b   :  { %3882 = vst.msk [vmem:[#allocation21 + $0x8] sm:$0xff] %vm628_vm4, %v3837_v1  ;;  %v3930_v22 = vsub.f32 %v3837_v1, %v3900_v45  ;;  %v3840_v8 = vpop.f32.mrb[58].mxu0 }
0x115c   :  { %v3841_v17 = vadd.f32 %v3840_v8, %v6561_v38  ;;  %v3842_v52 = vpop.f32.mrb[59].mxu0  ;;  %v3961_v60 = vrot.slane %v3929_v39, 7 }
0x115d   :  { %v3843_v21 = vadd.f32 %v3842_v52, %v6564_v40  ;;  %v3982_v55 = vrot.slane %v3930_v22, 7  ;;  %v3909_v52 = vrot.slane %v5606_v6, 6 }
0x115e   :  { %3883 = vst [vmem:[#allocation21 + $0x10] sm:$0xff] %v3841_v17  ;;  %v3931_v56 = vsub.f32 %v3841_v17, %v3901_v11 }
0x115f   :  { %3884 = vst.msk [vmem:[#allocation21 + $0x18] sm:$0xff] %vm628_vm4, %v3843_v21  ;;  %v3932_v12 = vsub.f32 %v3843_v21, %v3902_v49  ;;  %v3846_v24 = vpop.f32.mrb[60].mxu0 }
0x1160   :  { %v3962_v43 = vrot.slane %v3931_v56, 6  ;;  %v3847_v41 = vadd.f32 %v3846_v24, %v6561_v38  ;;  %v3848_v53 = vpop.f32.mrb[61].mxu0 }
0x1161   :  { %v3983_v23 = vrot.slane %v3932_v12, 6  ;;  %v3849_v34 = vadd.f32 %v3848_v53, %v6564_v40  ;;  %v3910_v12 = vrot.slane %v5611_v9, 6 }
0x1162   :  { %v3964_v7 = vsel %vm3963_vm15, %v3962_v43, %v3961_v60  ;;  %3885 = vst [vmem:[#allocation21 + $0x20] sm:$0xff] %v3847_v41  ;;  %v3933_v20 = vsub.f32 %v3847_v41, %v3903_v44 }
0x1163   :  { %v3984_v54 = vsel %vm3963_vm15, %v3983_v23, %v3982_v55  ;;  %3886 = vst.msk [vmem:[#allocation21 + $0x28] sm:$0xff] %vm628_vm4, %v3849_v34  ;;  %v3934_v51 = vsub.f32 %v3849_v34, %v3904_v18  ;;  %v3852_v48 = vpop.f32.mrb[62].mxu0  ;;  %v3870_v13 = vpop.f32.mrb[54].mxu1 }
0x1164   :  { %v3965_v26 = vrot.slane %v3933_v20, 5  ;;  %v3853_v61 = vadd.f32 %v3852_v48, %v6561_v38  ;;  %v3871_v50 = vadd.f32 %v3870_v13, %v6561_v38  ;;  %v3854_v62 = vpop.f32.mrb[63].mxu0  ;;  %v3872_v2 = vpop.f32.mrb[55].mxu1 }
0x1165   :  { %v3985_v3 = vrot.slane %v3934_v51, 5  ;;  %v3855_v4 = vadd.f32 %v3854_v62, %v6564_v40  ;;  %v3873_v5 = vadd.f32 %v3872_v2, %v6564_v40 }
0x1166   :  { %v3967_v14 = vsel %vm3966_vm0, %v3965_v26, %v3964_v7  ;;  %3887 = vst [vmem:[#allocation21 + $0x30] sm:$0xff] %v3853_v61  ;;  %v3935_v15 = vsub.f32 %v3853_v61, %v3905_v0  ;;  %3893 = vst [vmem:[#allocation21 + $0x60] sm:$0xff] %v3871_v50  ;;  %v6592_v16 = vsub.f32 %v3871_v50, %v3911_v58 }
0x1167   :  { %v3986_v27 = vsel %vm3966_vm0, %v3985_v3, %v3984_v54  ;;  %3888 = vst.msk [vmem:[#allocation21 + $0x38] sm:$0xff] %vm628_vm4, %v3855_v4  ;;  %v3936_v28 = vsub.f32 %v3855_v4, %v3906_v63  ;;  %3894 = vst.msk [vmem:[#allocation21 + $0x68] sm:$0xff] %vm628_vm4, %v3873_v5  ;;  %v6597_v29 = vsub.f32 %v3873_v5, %v3912_v10  ;;  %v3858_v25 = vpop.f32.mrb[64].mxu0  ;;  %v3876_v30 = vpop.f32.mrb[56].mxu1 }
0x1168   :  { %v3968_v31 = vrot.slane %v3935_v15, 4  ;;  %v3859_v32 = vadd.f32 %v3858_v25, %v6561_v38  ;;  %v3877_v35 = vadd.f32 %v3876_v30, %v6561_v38  ;;  %v3860_v36 = vpop.f32.mrb[65].mxu0  ;;  %v3878_v47 = vpop.f32.mrb[57].mxu1 }
0x1169   :  { %v3987_v19 = vrot.slane %v3936_v28, 4  ;;  %v3861_v37 = vadd.f32 %v3860_v36, %v6564_v40  ;;  %v3879_v57 = vadd.f32 %v3878_v47, %v6564_v40 }
0x116a   :  { %v3970_v46 = vsel %vm3969_vm1, %v3968_v31, %v3967_v14  ;;  %3889 = vst [vmem:[#allocation21 + $0x40] sm:$0xff] %v3859_v32  ;;  %v3937_v59 = vsub.f32 %v3859_v32, %v3907_v33  ;;  %3895 = vst [vmem:[#allocation21 + $0x70] sm:$0xff] %v3877_v35  ;;  %v3943_v1 = vsub.f32 %v3877_v35, %v5606_v6 }
0x116b   :  { %v3988_v45 = vsel %vm3969_vm1, %v3987_v19, %v3986_v27  ;;  %3890 = vst.msk [vmem:[#allocation21 + $0x48] sm:$0xff] %vm628_vm4, %v3861_v37  ;;  %v3938_v39 = vsub.f32 %v3861_v37, %v3908_v42  ;;  %3896 = vst.msk [vmem:[#allocation21 + $0x78] sm:$0xff] %vm628_vm4, %v3879_v57  ;;  %v3944_v22 = vsub.f32 %v3879_v57, %v5611_v9  ;;  %v3864_v8 = vpop.f32.mrb[66].mxu0 }
0x116c   :  { %v3971_v17 = vrot.slane %v3937_v59, 3  ;;  %v3865_v11 = vadd.f32 %v3864_v8, %v6561_v38  ;;  %v3866_v21 = vpop.f32.mrb[67].mxu0 }
0x116d   :  { %v3989_v49 = vrot.slane %v3938_v39, 3  ;;  %v3867_v56 = vadd.f32 %v3866_v21, %v6564_v40 }
0x116e   :  { %v3973_v24 = vsel %vm3972_vm2, %v3971_v17, %v3970_v46  ;;  %3891 = vst [vmem:[#allocation21 + $0x50] sm:$0xff] %v3865_v11  ;;  %v3939_v60 = vsub.f32 %v3865_v11, %v3909_v52 }
0x116f   :  { %v3990_v43 = vsel %vm3972_vm2, %v3989_v49, %v3988_v45  ;;  %3892 = vst.msk [vmem:[#allocation21 + $0x58] sm:$0xff] %vm628_vm4, %v3867_v56  ;;  %v3940_v41 = vsub.f32 %v3867_v56, %v3910_v12 }
0x1170   :  { %v3974_v38 = vrot.slane %v3939_v60, 2 }
0x1171   :  { %5148 = shalt.err (!%p5145_p0)
}
0x1172   :  { %s6708_s16 = sld [smem:[#allocation42_spill]] }
0x1178   :  { %s5149_s11 = scalar_lea.hbm %s6708_s16, 2048 }
0x1179   :  { %p5150_p1 = scmp.ne.s32.totalorder %s6708_s16, %s5149_s11  ;;  %p5153_p2 = scmp.lt.u32.totalorder %s5149_s11, %s6708_s16 }
0x117b   :  { %p5155_p3 = pnand %p5153_p2, %p5150_p1 }
0x117d   :  { %5158 = shalt.err (!%p5155_p3)
}
0x117e   :  { %4021 = dma.vmem_to_hbm [thread:$0]  %s4016_s26, 2048, %s6708_s16, [#allocation22], %s5198_s25, %s5198_s25, %s5199_s8   ;;  %v3977_v6 = vrot.slane %v6592_v16, 1  ;;  %v3991_v9 = vrot.slane %v3940_v41, 2  ;;  %vm3980_vm6 = vcmask 1047559   ;;  %v3993_v40 = vrot.slane %v6597_v29, 1 }
0x117f   :  { %s5218_s6 = smov [#allocation20]   ;;  %v3976_v44 = vsel %vm3975_vm3, %v3974_v38, %v3973_v24 }
0x1180   :  { %s4006_s1 = sshll.u32 %s5218_s6, 4  ;;  %v3992_v53 = vsel %vm3975_vm3, %v3991_v9, %v3990_v43  ;;  %v3979_v55 = vsel %vm3978_vm5, %v3977_v6, %v3976_v44  ;;  %s4007_s1 = int_to_ptr.vmem [resolvable:$true] %s4006_s1 }
0x1181   :  { %v3981_v23 = vsel %vm3980_vm6, %v3943_v1, %v3979_v55  ;;  %v3994_v34 = vsel %vm3978_vm5, %v3993_v40, %v3992_v53  ;;  %s5159_s25 = scalar_lea.vmem %s4007_s1, 256  ;;  %p5164_p5 = scmp.lt.s32.totalorder %s4007_s1, %s4007_s1 }
0x1182   :  { %v3995_v18 = vsel %vm3980_vm6, %v3944_v22, %v3994_v34  ;;  %3998 = vst [vmem:[#allocation20] sm:$0xff] %v3981_v23  ;;  %p5160_p4 = scmp.ne.s32.totalorder %s4007_s1, %s5159_s25  ;;  %p5165_p6 = scmp.lt.s32.totalorder %s5159_s25, %s5159_s25 }
0x1183   :  { %3999 = vst.msk [vmem:[#allocation20 + $0x8] sm:$0xff] %vm628_vm4, %v3995_v18 }
0x1184   :  { %p5166_p7 = por %p5165_p6, %p5164_p5 }
0x1186   :  { %p5167_p8 = pnand %p5166_p7, %p5160_p4 }
0x1188   :  { %5170 = shalt.err (!%p5167_p8)
}
0x1189   :  { %s6709_s17 = sld [smem:[#allocation41_spill]] }
0x118f   :  { %s5171_s7 = scalar_lea.hbm %s6709_s17, 256 }
0x1190   :  { %p5172_p9 = scmp.ne.s32.totalorder %s6709_s17, %s5171_s7  ;;  %p5175_p10 = scmp.lt.u32.totalorder %s5171_s7, %s6709_s17 }
0x1192   :  { %p5177_p11 = pnand %p5175_p10, %p5172_p9 }
0x1194   :  { %5180 = shalt.err (!%p5177_p11)
}
0x1195   :  { %4009 = dma.vmem_to_hbm [thread:$0]  %s4007_s1, 256, %s6709_s17, [#allocation5]  }
0x1196   :  { %5193 = dma.done.wait [#allocation5], 256  }
0x1197   :  { %5194 = vsyncadd [#allocation5], 4294967040 }
0x1198   :  { %5195 = dma.done.wait [#allocation22], 2048  }
0x1199   :  { %5196 = vsyncadd [#allocation22], 4294965248 }
0x119a   :  { %4028 = vsyncpa [#allocation4], 1 }
0x119b   :  { %4029 = vsyncpa [#allocation7], 1 }
0x119c   :  { %4030 = vsyncpa [#allocation10], 1 }
0x119d   :  { %4031 = vsyncpa [#allocation13], 1 }
0x119e   :  { %4032 = vsyncpa [#allocation16], 1 }
0x119f   :  { %4033 = vsyncpa [#allocation19], 1 }
0x11a0   :  { %4034 = vsyncpa [#allocation5], 1 }
0x11a1   :  { %4035 = vsyncpa [#allocation22], 1 }

</bundles_post_ra>
